<compile_context>
chip_gen: v7x
topology: tpu7x:2x2x1
jax: 0.10.0
libtpu: 0.0.40
codegen_flags: <defaults>
</compile_context>

<pallas_src>
import functools
import math

import jax
import jax.numpy as jnp
from jax.experimental import pallas as pl
from jax.experimental.pallas import tpu as pltpu


# ----------------------------------------------------------------------------
# 1x1-conv projection with positional + idx embedding add fused into epilogue.
# One grid step per image (all batches of one image handled in a single tile).
# ----------------------------------------------------------------------------
def _project_kernel(x_ref, w_ref, b_ref, e_ref, o_ref):
    # x_ref: (B*HW, C) f32, w_ref: (C, D) bf16, b_ref: (1, D) f32,
    # e_ref: (HW, D) f32 (pos + idx embedding for this image), o_ref: (B, HW, D) bf16
    B, HW, D = o_ref.shape
    x = x_ref[...].astype(jnp.bfloat16)
    acc = jnp.dot(x, w_ref[...], preferred_element_type=jnp.float32)
    acc = acc + b_ref[...].astype(jnp.float32)
    # HW is a multiple of 8 for the demo shapes -> layout-preserving reshape.
    acc = acc.reshape(B, HW, D) + e_ref[...].astype(jnp.float32)
    o_ref[...] = acc.astype(o_ref.dtype)


def project_embed(x_stacked, w, b, extra, out_dtype=jnp.bfloat16):
    """x_stacked: (2, B*HW, C); extra: (2, HW, D) -> (B, 2, HW, D) bf16."""
    _, BHW, C = x_stacked.shape
    HW = extra.shape[1]
    B = BHW // HW
    D = w.shape[1]
    return pl.pallas_call(
        _project_kernel,
        out_shape=jax.ShapeDtypeStruct((B, 2, HW, D), out_dtype),
        grid=(2,),
        in_specs=[
            pl.BlockSpec((None, BHW, C), lambda img: (img, 0, 0)),
            pl.BlockSpec((C, D), lambda img: (0, 0)),
            pl.BlockSpec((1, D), lambda img: (0, 0)),
            pl.BlockSpec((None, HW, D), lambda img: (img, 0, 0)),
        ],
        out_specs=pl.BlockSpec((B, None, HW, D), lambda img: (0, img, 0, 0)),
        compiler_params=pltpu.CompilerParams(dimension_semantics=("parallel",)),
    )(x_stacked, w, b.reshape(1, D), extra)


# ----------------------------------------------------------------------------
# Fused attention block: QKV proj + per-head attention + out-proj + residual +
# LayerNorm1.  Grid = (batch, head); head axis is a reduction (out-proj partial
# sums accumulate in a VMEM scratch); batch axis is megacore-parallel.
# Head-major weight layout -> no in-kernel lane slicing, no concat.
# ----------------------------------------------------------------------------
def _attn_block_kernel(x_ref, wq_ref, wk_ref, wv_ref, bq_ref, bk_ref, bv_ref,
                       wo_ref, bo_ref, g_ref, bt_ref, o_ref, acc_ref,
                       *, scale, eps):
    h = pl.program_id(1)

    @pl.when(h == 0)
    def _():
        acc_ref[...] = jnp.zeros_like(acc_ref)

    x = x_ref[...]                                               # (L, D) bf16
    q = (jnp.dot(x, wq_ref[...], preferred_element_type=jnp.float32)
         + bq_ref[...].astype(jnp.float32)) * scale              # (L, Dh)
    k = (jnp.dot(x, wk_ref[...], preferred_element_type=jnp.float32)
         + bk_ref[...].astype(jnp.float32))
    v = (jnp.dot(x, wv_ref[...], preferred_element_type=jnp.float32)
         + bv_ref[...].astype(jnp.float32))

    # TODO(synk): for L >~ 1k switch to flash-style KV tiling (online softmax)
    # so the (L, L) score tile stays within v7x's 64 MiB VMEM.
    s = jax.lax.dot_general(q.astype(jnp.bfloat16), k.astype(jnp.bfloat16),
                            (((1,), (1,)), ((), ())),
                            preferred_element_type=jnp.float32)  # (L, L)
    m = jnp.max(s, axis=-1, keepdims=True)
    p = jnp.exp(s - m)
    denom = jnp.sum(p, axis=-1, keepdims=True)
    attn = (p * pl.reciprocal(denom, approx=True)).astype(jnp.bfloat16)
    ctx = jnp.dot(attn, v.astype(jnp.bfloat16),
                  preferred_element_type=jnp.float32)            # (L, Dh)
    # per-head contribution of the output projection, accumulated across heads
    acc_ref[...] += jnp.dot(ctx.astype(jnp.bfloat16), wo_ref[...],
                            preferred_element_type=jnp.float32)  # (L, D)

    @pl.when(h == pl.num_programs(1) - 1)
    def _():
        acc = (acc_ref[...] + bo_ref[...].astype(jnp.float32)
               + x_ref[...].astype(jnp.float32))                 # residual
        mu = jnp.mean(acc, axis=-1, keepdims=True)
        var = jnp.mean((acc - mu) ** 2, axis=-1, keepdims=True)
        y = (acc - mu) * jax.lax.rsqrt(var + eps)
        o_ref[...] = (y * g_ref[...].astype(jnp.float32)
                      + bt_ref[...].astype(jnp.float32)).astype(o_ref.dtype)


def attention_block(feat, lp, *, eps=1e-5):
    """feat: (B, L, D) bf16 -> LayerNorm1(MHA(feat) @ Wo + bo + feat), bf16."""
    B, L, D = feat.shape
    n_head, _, Dh = lp["wq"].shape
    scale = 1.0 / math.sqrt(Dh)
    kern = functools.partial(_attn_block_kernel, scale=scale, eps=eps)
    return pl.pallas_call(
        kern,
        out_shape=jax.ShapeDtypeStruct((B, L, D), feat.dtype),
        grid=(B, n_head),
        in_specs=[
            pl.BlockSpec((None, L, D), lambda b, h: (b, 0, 0)),    # x (resident per b)
            pl.BlockSpec((None, D, Dh), lambda b, h: (h, 0, 0)),   # wq (head-major)
            pl.BlockSpec((None, D, Dh), lambda b, h: (h, 0, 0)),   # wk
            pl.BlockSpec((None, D, Dh), lambda b, h: (h, 0, 0)),   # wv
            pl.BlockSpec((None, 1, Dh), lambda b, h: (h, 0, 0)),   # bq
            pl.BlockSpec((None, 1, Dh), lambda b, h: (h, 0, 0)),   # bk
            pl.BlockSpec((None, 1, Dh), lambda b, h: (h, 0, 0)),   # bv
            pl.BlockSpec((None, Dh, D), lambda b, h: (h, 0, 0)),   # wo rows for head h
            pl.BlockSpec((1, D), lambda b, h: (0, 0)),             # bo
            pl.BlockSpec((1, D), lambda b, h: (0, 0)),             # ln1 gamma
            pl.BlockSpec((1, D), lambda b, h: (0, 0)),             # ln1 beta
        ],
        out_specs=pl.BlockSpec((None, L, D), lambda b, h: (b, 0, 0)),
        scratch_shapes=[pltpu.VMEM((L, D), jnp.float32)],
        compiler_params=pltpu.CompilerParams(
            dimension_semantics=("parallel", "arbitrary")),
    )(feat, lp["wq"], lp["wk"], lp["wv"], lp["bq"], lp["bk"], lp["bv"],
      lp["wo"], lp["bo"].reshape(1, D), lp["ln1_w"].reshape(1, D),
      lp["ln1_b"].reshape(1, D))


# ----------------------------------------------------------------------------
# Fused FFN block: (x @ W1 + b1).relu() @ W2 + b2 + x -> LayerNorm2.
# M-tiled; the (tm, dff) intermediate stays in VMEM (no HBM round trip).
# ----------------------------------------------------------------------------
def _ffn_block_kernel(x_ref, w1_ref, b1_ref, w2_ref, b2_ref, g_ref, bt_ref,
                      o_ref, *, eps):
    x = x_ref[...]                                               # (tm, D) bf16
    mid = jnp.dot(x, w1_ref[...], preferred_element_type=jnp.float32)
    mid = jnp.maximum(mid + b1_ref[...].astype(jnp.float32), 0.0)
    acc = jnp.dot(mid.astype(jnp.bfloat16), w2_ref[...],
                  preferred_element_type=jnp.float32)            # (tm, D)
    acc = acc + b2_ref[...].astype(jnp.float32) + x_ref[...].astype(jnp.float32)
    mu = jnp.mean(acc, axis=-1, keepdims=True)
    var = jnp.mean((acc - mu) ** 2, axis=-1, keepdims=True)
    y = (acc - mu) * jax.lax.rsqrt(var + eps)
    o_ref[...] = (y * g_ref[...].astype(jnp.float32)
                  + bt_ref[...].astype(jnp.float32)).astype(o_ref.dtype)


def _pick_tm(M, cap=512):
    # biggest tile that (a) divides M, (b) leaves >=2 grid steps for v7x megacore
    for tm in (cap, 256, 128, 64, 32, 16, 8):
        if tm <= max(M // 2, 8) and M % tm == 0:
            return tm
    return M


def ffn_block(x, lp, *, eps=1e-5, tm_cap=512):
    """x: (M, D) bf16 -> LayerNorm2(relu(x@W1+b1)@W2+b2 + x), bf16. Tiled over M."""
    M, D = x.shape
    dff = lp["w1"].shape[1]
    tm = _pick_tm(M, tm_cap)
    # explicit scoped-VMEM budget derived from the actual tile footprint
    # (double-buffered bf16 x/out tiles, resident bf16 weights, f32 intermediates)
    footprint = (4 * tm * D * 2 + D * dff * 2 + dff * D * 2
                 + tm * dff * 4 + 2 * tm * D * 4 + (4 * D + 2 * dff) * 4)
    vmem_limit = int(min(max(2 * footprint, 24 << 20), 64 << 20))
    # TODO(synk): add dff tiling with two-pass LN accumulation for very large
    # dff on v7x (64 MiB VMEM); demo/typical dff=2048 fits without it.
    kern = functools.partial(_ffn_block_kernel, eps=eps)
    return pl.pallas_call(
        kern,
        out_shape=jax.ShapeDtypeStruct((M, D), x.dtype),
        grid=(M // tm,),
        in_specs=[
            pl.BlockSpec((tm, D), lambda i: (i, 0)),
            pl.BlockSpec((D, dff), lambda i: (0, 0)),
            pl.BlockSpec((1, dff), lambda i: (0, 0)),
            pl.BlockSpec((dff, D), lambda i: (0, 0)),
            pl.BlockSpec((1, D), lambda i: (0, 0)),
            pl.BlockSpec((1, D), lambda i: (0, 0)),
            pl.BlockSpec((1, D), lambda i: (0, 0)),
        ],
        out_specs=pl.BlockSpec((tm, D), lambda i: (i, 0)),
        compiler_params=pltpu.CompilerParams(
            dimension_semantics=("parallel",),
            vmem_limit_bytes=vmem_limit),
    )(x, lp["w1"], lp["b1"].reshape(1, dff), lp["w2"],
      lp["b2"].reshape(1, D), lp["ln2_w"].reshape(1, D), lp["ln2_b"].reshape(1, D))


# ----------------------------------------------------------------------------
# Full MCCFormers_S forward
# ----------------------------------------------------------------------------
def mccformers_s_forward(params, img_feat1, img_feat2):
    B, C, H, W = img_feat1.shape
    D = params["proj_w"].shape[1]
    HW = H * W

    # NCHW -> token-major (B, HW, C); stack both images -> (2, B*HW, C)
    def to_tokens(x):
        return x.reshape(B, C, HW).transpose(0, 2, 1)

    x_stacked = jnp.stack([to_tokens(img_feat1), to_tokens(img_feat2)],
                          axis=0).reshape(2, B * HW, C)

    # positional embedding pe[r, c] = [w_emb[c] ; h_emb[r]] (matches the PyTorch
    # cat order), plus per-image idx embedding -> one "extra" slab fused into the
    # projection epilogue.
    embed_w = params["w_emb"]                  # (W, D/2)
    embed_h = params["h_emb"]                  # (H, D/2)
    pe = jnp.concatenate(
        [jnp.broadcast_to(embed_w[None, :, :], (H, W, D // 2)),
         jnp.broadcast_to(embed_h[:, None, :], (H, W, D // 2))],
        axis=-1,
    ).reshape(HW, D)
    extra = pe[None, :, :] + params["idx_emb"][:, None, :]   # (2, HW, D) f32

    feat = project_embed(x_stacked, params["proj_w"], params["proj_b"], extra)
    feat = feat.reshape(B, 2 * HW, D)          # (B, L, D) bf16, L = 2*HW

    # transformer encoder: two fused kernels per layer, bf16 activations throughout
    for lp in params["layers"]:
        feat = attention_block(feat, lp)                          # MHA+outproj+res+LN1
        feat = ffn_block(feat.reshape(B * 2 * HW, D), lp).reshape(B, 2 * HW, D)

    # output: (HW, B, 2D) — concat of the two image streams along feature dim
    out = jnp.concatenate([feat[:, :HW, :], feat[:, HW:, :]], axis=-1)  # (B, HW, 2D)
    return out.transpose(1, 0, 2).astype(jnp.float32)                   # (HW, B, 2D)


# ----------------------------------------------------------------------------
# Deterministic parameter init (synthetic, matching module shapes).
# Matmul weights are stored bf16 ONCE, pre-transposed to (in, out) layout and
# pre-split head-major:
#   wq[h] = in_proj_weight[h*Dh:(h+1)*Dh, :].T          (D, Dh)
#   wo[h] = out_proj.weight.T[h*Dh:(h+1)*Dh, :]         (Dh, D)
# ----------------------------------------------------------------------------
def init_params(key, feature_dim, h, w, d_model, n_head, n_layers, dff):
    keys = iter(jax.random.split(key, 8 + 16 * n_layers))
    dh = d_model // n_head

    def nrm(shape, s=0.02, dtype=jnp.float32):
        return (jax.random.normal(next(keys), shape, jnp.float32) * s).astype(dtype)

    params = {
        "proj_w": nrm((feature_dim, d_model), dtype=jnp.bfloat16),  # Conv2d 1x1 (C_in, C_out)
        "proj_b": nrm((d_model,)),
        "idx_emb": nrm((2, d_model)),
        "w_emb": nrm((w, d_model // 2)),
        "h_emb": nrm((h, d_model // 2)),
        "layers": [],
    }
    for _ in range(n_layers):
        params["layers"].append({
            "wq": nrm((n_head, d_model, dh), dtype=jnp.bfloat16),
            "wk": nrm((n_head, d_model, dh), dtype=jnp.bfloat16),
            "wv": nrm((n_head, d_model, dh), dtype=jnp.bfloat16),
            "bq": nrm((n_head, 1, dh)),
            "bk": nrm((n_head, 1, dh)),
            "bv": nrm((n_head, 1, dh)),
            "wo": nrm((n_head, dh, d_model), dtype=jnp.bfloat16),
            "bo": nrm((d_model,)),
            "ln1_w": jnp.ones((d_model,), jnp.float32),
            "ln1_b": jnp.zeros((d_model,), jnp.float32),
            "w1": nrm((d_model, dff), dtype=jnp.bfloat16),
            "b1": nrm((dff,)),
            "w2": nrm((dff, d_model), dtype=jnp.bfloat16),
            "b2": nrm((d_model,)),
            "ln2_w": jnp.ones((d_model,), jnp.float32),
            "ln2_b": jnp.zeros((d_model,), jnp.float32),
        })
    return params


# ----------------------------------------------------------------------------
if __name__ == "__main__":
    # small shapes consistent with the module
    B, C, H, W = 2, 4, 8, 8          # batch, feature_dim, h, w
    d_model, n_head, n_layers, dff = 32, 4, 2, 64

    key = jax.random.PRNGKey(0)
    k1, k2, kp = jax.random.split(key, 3)
    img_feat1 = jax.random.normal(k1, (B, C, H, W), jnp.float32)
    img_feat2 = jax.random.normal(k2, (B, C, H, W), jnp.float32)
    params = init_params(kp, C, H, W, d_model, n_head, n_layers, dff)

    fwd = jax.jit(mccformers_s_forward)
    out = fwd(params, img_feat1, img_feat2)
    jax.block_until_ready(out)

    assert out.shape == (H * W, B, 2 * d_model), out.shape
    assert bool(jnp.all(jnp.isfinite(out)))
    # TODO(synk): dropout in TransformerEncoderLayer is modeled as eval-mode identity.
    print("KERNEL_OK")
</pallas_src>

<mosaic_0001>
module attributes {stable_mosaic.version = 11 : i64} {
  func.func @_ffn_block_kernel(%arg0: i32, %arg1: memref<128x32xbf16, #tpu.memory_space<vmem>>, %arg2: memref<32x64xbf16, #tpu.memory_space<vmem>>, %arg3: memref<1x64xf32, #tpu.memory_space<vmem>>, %arg4: memref<64x32xbf16, #tpu.memory_space<vmem>>, %arg5: memref<1x32xf32, #tpu.memory_space<vmem>>, %arg6: memref<1x32xf32, #tpu.memory_space<vmem>>, %arg7: memref<1x32xf32, #tpu.memory_space<vmem>>, %arg8: memref<128x32xbf16, #tpu.memory_space<vmem>>) attributes {dimension_semantics = [#tpu.dimension_semantics<parallel>], iteration_bounds = array<i64: 2>, scalar_prefetch = 0 : i64, scratch_operands = 0 : i64, tpu.core_type = #tpu.core_type<tc>, window_params = [{transform_indices = @transform_0, window_bounds = array<i64: 128, 32>}, {pipeline_mode = #tpu.pipeline_mode<synchronous>, transform_indices = @transform_1, window_bounds = array<i64: 32, 64>}, {pipeline_mode = #tpu.pipeline_mode<synchronous>, transform_indices = @transform_2, window_bounds = array<i64: 1, 64>}, {pipeline_mode = #tpu.pipeline_mode<synchronous>, transform_indices = @transform_3, window_bounds = array<i64: 64, 32>}, {pipeline_mode = #tpu.pipeline_mode<synchronous>, transform_indices = @transform_4, window_bounds = array<i64: 1, 32>}, {pipeline_mode = #tpu.pipeline_mode<synchronous>, transform_indices = @transform_5, window_bounds = array<i64: 1, 32>}, {pipeline_mode = #tpu.pipeline_mode<synchronous>, transform_indices = @transform_6, window_bounds = array<i64: 1, 32>}, {transform_indices = @transform_7, window_bounds = array<i64: 128, 32>}]} {
    %c0 = arith.constant 0 : index
    %c0_0 = arith.constant 0 : index
    %0 = vector.load %arg1[%c0, %c0_0] : memref<128x32xbf16, #tpu.memory_space<vmem>>, vector<128x32xbf16>
    %c0_1 = arith.constant 0 : index
    %c0_2 = arith.constant 0 : index
    %1 = vector.load %arg2[%c0_1, %c0_2] : memref<32x64xbf16, #tpu.memory_space<vmem>>, vector<32x64xbf16>
    %cst = arith.constant dense<0.000000e+00> : vector<128x64xf32>
    %2 = tpu.matmul %0, %1, %cst {dimension_numbers = #tpu.dot_dimension_numbers<[1], [0], [0], [1], [0, 0, 1, 1], [], []>} : vector<128x32xbf16>, vector<32x64xbf16>, vector<128x64xf32> -> vector<128x64xf32>
    %c0_3 = arith.constant 0 : index
    %c0_4 = arith.constant 0 : index
    %3 = vector.load %arg3[%c0_3, %c0_4] : memref<1x64xf32, #tpu.memory_space<vmem>>, vector<1x64xf32>
    %4 = vector.broadcast %3 : vector<1x64xf32> to vector<128x64xf32>
    %5 = arith.addf %2, %4 : vector<128x64xf32>
    %cst_5 = arith.constant 0.000000e+00 : f32
    %6 = vector.broadcast %cst_5 : f32 to vector<128x64xf32>
    %7 = arith.maximumf %5, %6 : vector<128x64xf32>
    %8 = arith.truncf %7 : vector<128x64xf32> to vector<128x64xbf16>
    %c0_6 = arith.constant 0 : index
    %c0_7 = arith.constant 0 : index
    %9 = vector.load %arg4[%c0_6, %c0_7] : memref<64x32xbf16, #tpu.memory_space<vmem>>, vector<64x32xbf16>
    %cst_8 = arith.constant dense<0.000000e+00> : vector<128x32xf32>
    %10 = tpu.matmul %8, %9, %cst_8 {dimension_numbers = #tpu.dot_dimension_numbers<[1], [0], [0], [1], [0, 0, 1, 1], [], []>} : vector<128x64xbf16>, vector<64x32xbf16>, vector<128x32xf32> -> vector<128x32xf32>
    %c0_9 = arith.constant 0 : index
    %c0_10 = arith.constant 0 : index
    %11 = vector.load %arg5[%c0_9, %c0_10] : memref<1x32xf32, #tpu.memory_space<vmem>>, vector<1x32xf32>
    %12 = vector.broadcast %11 : vector<1x32xf32> to vector<128x32xf32>
    %13 = arith.addf %10, %12 : vector<128x32xf32>
    %c0_11 = arith.constant 0 : index
    %c0_12 = arith.constant 0 : index
    %14 = vector.load %arg1[%c0_11, %c0_12] : memref<128x32xbf16, #tpu.memory_space<vmem>>, vector<128x32xbf16>
    %15 = arith.extf %14 : vector<128x32xbf16> to vector<128x32xf32>
    %16 = arith.addf %13, %15 : vector<128x32xf32>
    %cst_13 = arith.constant dense<0.000000e+00> : vector<128xf32>
    %17 = vector.multi_reduction <add>, %16, %cst_13 [1] : vector<128x32xf32> to vector<128xf32>
    %18 = vector.shape_cast %17 : vector<128xf32> to vector<128x1xf32>
    %cst_14 = arith.constant 3.200000e+01 : f32
    %19 = vector.broadcast %cst_14 : f32 to vector<128x1xf32>
    %20 = arith.divf %18, %19 : vector<128x1xf32>
    %21 = vector.broadcast %20 : vector<128x1xf32> to vector<128x32xf32>
    %22 = arith.subf %16, %21 : vector<128x32xf32>
    %23 = arith.mulf %22, %22 : vector<128x32xf32>
    %cst_15 = arith.constant dense<0.000000e+00> : vector<128xf32>
    %24 = vector.multi_reduction <add>, %23, %cst_15 [1] : vector<128x32xf32> to vector<128xf32>
    %25 = vector.shape_cast %24 : vector<128xf32> to vector<128x1xf32>
    %cst_16 = arith.constant 3.200000e+01 : f32
    %26 = vector.broadcast %cst_16 : f32 to vector<128x1xf32>
    %27 = arith.divf %25, %26 : vector<128x1xf32>
    %28 = vector.broadcast %20 : vector<128x1xf32> to vector<128x32xf32>
    %29 = arith.subf %16, %28 : vector<128x32xf32>
    %cst_17 = arith.constant 9.99999974E-6 : f32
    %30 = vector.broadcast %cst_17 : f32 to vector<128x1xf32>
    %31 = arith.addf %27, %30 : vector<128x1xf32>
    %32 = math.rsqrt %31 : vector<128x1xf32>
    %33 = vector.broadcast %32 : vector<128x1xf32> to vector<128x32xf32>
    %34 = arith.mulf %29, %33 : vector<128x32xf32>
    %c0_18 = arith.constant 0 : index
    %c0_19 = arith.constant 0 : index
    %35 = vector.load %arg6[%c0_18, %c0_19] : memref<1x32xf32, #tpu.memory_space<vmem>>, vector<1x32xf32>
    %36 = vector.broadcast %35 : vector<1x32xf32> to vector<128x32xf32>
    %37 = arith.mulf %34, %36 : vector<128x32xf32>
    %c0_20 = arith.constant 0 : index
    %c0_21 = arith.constant 0 : index
    %38 = vector.load %arg7[%c0_20, %c0_21] : memref<1x32xf32, #tpu.memory_space<vmem>>, vector<1x32xf32>
    %39 = vector.broadcast %38 : vector<1x32xf32> to vector<128x32xf32>
    %40 = arith.addf %37, %39 : vector<128x32xf32>
    %41 = arith.truncf %40 : vector<128x32xf32> to vector<128x32xbf16>
    %c0_22 = arith.constant 0 : index
    %c0_23 = arith.constant 0 : index
    %42 = vector.load %arg8[%c0_22, %c0_23] : memref<128x32xbf16, #tpu.memory_space<vmem>>, vector<128x32xbf16>
    tpu.vector_store %arg8[%c0_22, %c0_23], %41 {strides = array<i32>} : memref<128x32xbf16, #tpu.memory_space<vmem>>, vector<128x32xbf16>,
    return
  }
  func.func @transform_0(%arg0: i32) -> (i32, i32) {
    %c0_i32 = arith.constant 0 : i32
    %c0_i32_0 = arith.constant 0 : i32
    return %arg0, %c0_i32 : i32, i32
  }
  func.func @transform_1(%arg0: i32) -> (i32, i32) {
    %c0_i32 = arith.constant 0 : i32
    %c0_i32_0 = arith.constant 0 : i32
    %c0_i32_1 = arith.constant 0 : i32
    return %c0_i32, %c0_i32_0 : i32, i32
  }
  func.func @transform_2(%arg0: i32) -> (i32, i32) {
    %c0_i32 = arith.constant 0 : i32
    %c0_i32_0 = arith.constant 0 : i32
    %c0_i32_1 = arith.constant 0 : i32
    return %c0_i32, %c0_i32_0 : i32, i32
  }
  func.func @transform_3(%arg0: i32) -> (i32, i32) {
    %c0_i32 = arith.constant 0 : i32
    %c0_i32_0 = arith.constant 0 : i32
    %c0_i32_1 = arith.constant 0 : i32
    return %c0_i32, %c0_i32_0 : i32, i32
  }
  func.func @transform_4(%arg0: i32) -> (i32, i32) {
    %c0_i32 = arith.constant 0 : i32
    %c0_i32_0 = arith.constant 0 : i32
    %c0_i32_1 = arith.constant 0 : i32
    return %c0_i32, %c0_i32_0 : i32, i32
  }
  func.func @transform_5(%arg0: i32) -> (i32, i32) {
    %c0_i32 = arith.constant 0 : i32
    %c0_i32_0 = arith.constant 0 : i32
    %c0_i32_1 = arith.constant 0 : i32
    return %c0_i32, %c0_i32_0 : i32, i32
  }
  func.func @transform_6(%arg0: i32) -> (i32, i32) {
    %c0_i32 = arith.constant 0 : i32
    %c0_i32_0 = arith.constant 0 : i32
    %c0_i32_1 = arith.constant 0 : i32
    return %c0_i32, %c0_i32_0 : i32, i32
  }
  func.func @transform_7(%arg0: i32) -> (i32, i32) {
    %c0_i32 = arith.constant 0 : i32
    %c0_i32_0 = arith.constant 0 : i32
    return %arg0, %c0_i32 : i32, i32
  }
}

module attributes {stable_mosaic.version = 11 : i64} {
  func.func @_project_kernel(%arg0: i32, %arg1: memref<1x128x4xf32, #tpu.memory_space<vmem>>, %arg2: memref<4x32xbf16, #tpu.memory_space<vmem>>, %arg3: memref<1x32xf32, #tpu.memory_space<vmem>>, %arg4: memref<1x64x32xf32, #tpu.memory_space<vmem>>, %arg5: memref<2x1x64x32xbf16, #tpu.memory_space<vmem>>) attributes {dimension_semantics = [#tpu.dimension_semantics<parallel>], iteration_bounds = array<i64: 2>, scalar_prefetch = 0 : i64, scratch_operands = 0 : i64, tpu.core_type = #tpu.core_type<tc>, window_params = [{transform_indices = @transform_0, window_bounds = array<i64: 1, 128, 4>}, {pipeline_mode = #tpu.pipeline_mode<synchronous>, transform_indices = @transform_1, window_bounds = array<i64: 4, 32>}, {pipeline_mode = #tpu.pipeline_mode<synchronous>, transform_indices = @transform_2, window_bounds = array<i64: 1, 32>}, {transform_indices = @transform_3, window_bounds = array<i64: 1, 64, 32>}, {transform_indices = @transform_4, window_bounds = array<i64: 2, 1, 64, 32>}]} {
    %c0 = arith.constant 0 : index
    %c0_0 = arith.constant 0 : index
    %c0_1 = arith.constant 0 : index
    %0 = vector.load %arg1[%c0, %c0_0, %c0_1] : memref<1x128x4xf32, #tpu.memory_space<vmem>>, vector<1x128x4xf32>
    %1 = vector.shape_cast %0 : vector<1x128x4xf32> to vector<128x4xf32>
    %2 = arith.truncf %1 : vector<128x4xf32> to vector<128x4xbf16>
    %c0_2 = arith.constant 0 : index
    %c0_3 = arith.constant 0 : index
    %3 = vector.load %arg2[%c0_2, %c0_3] : memref<4x32xbf16, #tpu.memory_space<vmem>>, vector<4x32xbf16>
    %cst = arith.constant dense<0.000000e+00> : vector<128x32xf32>
    %4 = tpu.matmul %2, %3, %cst {dimension_numbers = #tpu.dot_dimension_numbers<[1], [0], [0], [1], [0, 0, 1, 1], [], []>} : vector<128x4xbf16>, vector<4x32xbf16>, vector<128x32xf32> -> vector<128x32xf32>
    %c0_4 = arith.constant 0 : index
    %c0_5 = arith.constant 0 : index
    %5 = vector.load %arg3[%c0_4, %c0_5] : memref<1x32xf32, #tpu.memory_space<vmem>>, vector<1x32xf32>
    %6 = vector.broadcast %5 : vector<1x32xf32> to vector<128x32xf32>
    %7 = arith.addf %4, %6 : vector<128x32xf32>
    %8 = vector.shape_cast %7 : vector<128x32xf32> to vector<2x64x32xf32>
    %c0_6 = arith.constant 0 : index
    %c0_7 = arith.constant 0 : index
    %c0_8 = arith.constant 0 : index
    %9 = vector.load %arg4[%c0_6, %c0_7, %c0_8] : memref<1x64x32xf32, #tpu.memory_space<vmem>>, vector<1x64x32xf32>
    %10 = vector.shape_cast %9 : vector<1x64x32xf32> to vector<64x32xf32>
    %11 = vector.shape_cast %10 : vector<64x32xf32> to vector<1x64x32xf32>
    %12 = vector.broadcast %11 : vector<1x64x32xf32> to vector<2x64x32xf32>
    %13 = arith.addf %8, %12 : vector<2x64x32xf32>
    %14 = arith.truncf %13 : vector<2x64x32xf32> to vector<2x64x32xbf16>
    %c0_9 = arith.constant 0 : index
    %c0_10 = arith.constant 0 : index
    %c0_11 = arith.constant 0 : index
    %c0_12 = arith.constant 0 : index
    %15 = vector.load %arg5[%c0_9, %c0_10, %c0_11, %c0_12] : memref<2x1x64x32xbf16, #tpu.memory_space<vmem>>, vector<2x1x64x32xbf16>
    %16 = vector.shape_cast %15 : vector<2x1x64x32xbf16> to vector<2x64x32xbf16>
    %17 = vector.shape_cast %14 : vector<2x64x32xbf16> to vector<2x1x64x32xbf16>
    tpu.vector_store %arg5[%c0_9, %c0_10, %c0_11, %c0_12], %17 {strides = array<i32>} : memref<2x1x64x32xbf16, #tpu.memory_space<vmem>>, vector<2x1x64x32xbf16>,
    return
  }
  func.func @transform_0(%arg0: i32) -> (i32, i32, i32) {
    %c0_i32 = arith.constant 0 : i32
    %c0_i32_0 = arith.constant 0 : i32
    %c0_i32_1 = arith.constant 0 : i32
    return %arg0, %c0_i32, %c0_i32_0 : i32, i32, i32
  }
  func.func @transform_1(%arg0: i32) -> (i32, i32) {
    %c0_i32 = arith.constant 0 : i32
    %c0_i32_0 = arith.constant 0 : i32
    %c0_i32_1 = arith.constant 0 : i32
    return %c0_i32, %c0_i32_0 : i32, i32
  }
  func.func @transform_2(%arg0: i32) -> (i32, i32) {
    %c0_i32 = arith.constant 0 : i32
    %c0_i32_0 = arith.constant 0 : i32
    %c0_i32_1 = arith.constant 0 : i32
    return %c0_i32, %c0_i32_0 : i32, i32
  }
  func.func @transform_3(%arg0: i32) -> (i32, i32, i32) {
    %c0_i32 = arith.constant 0 : i32
    %c0_i32_0 = arith.constant 0 : i32
    %c0_i32_1 = arith.constant 0 : i32
    return %arg0, %c0_i32, %c0_i32_0 : i32, i32, i32
  }
  func.func @transform_4(%arg0: i32) -> (i32, i32, i32, i32) {
    %c0_i32 = arith.constant 0 : i32
    %c0_i32_0 = arith.constant 0 : i32
    %c0_i32_1 = arith.constant 0 : i32
    %c0_i32_2 = arith.constant 0 : i32
    return %c0_i32, %arg0, %c0_i32_0, %c0_i32_1 : i32, i32, i32, i32
  }
}

module attributes {stable_mosaic.version = 11 : i64} {
  func.func @_attn_block_kernel(%arg0: i32, %arg1: i32, %arg2: memref<1x128x32xbf16, #tpu.memory_space<vmem>>, %arg3: memref<1x32x8xbf16, #tpu.memory_space<vmem>>, %arg4: memref<1x32x8xbf16, #tpu.memory_space<vmem>>, %arg5: memref<1x32x8xbf16, #tpu.memory_space<vmem>>, %arg6: memref<1x1x8xf32, #tpu.memory_space<vmem>>, %arg7: memref<1x1x8xf32, #tpu.memory_space<vmem>>, %arg8: memref<1x1x8xf32, #tpu.memory_space<vmem>>, %arg9: memref<1x8x32xbf16, #tpu.memory_space<vmem>>, %arg10: memref<1x32xf32, #tpu.memory_space<vmem>>, %arg11: memref<1x32xf32, #tpu.memory_space<vmem>>, %arg12: memref<1x32xf32, #tpu.memory_space<vmem>>, %arg13: memref<1x128x32xbf16, #tpu.memory_space<vmem>>, %arg14: memref<128x32xf32, #tpu.memory_space<vmem>>) attributes {dimension_semantics = [#tpu.dimension_semantics<parallel>, #tpu.dimension_semantics<arbitrary>], iteration_bounds = array<i64: 2, 4>, scalar_prefetch = 0 : i64, scratch_operands = 1 : i64, tpu.core_type = #tpu.core_type<tc>, window_params = [{transform_indices = @transform_0, window_bounds = array<i64: 1, 128, 32>}, {transform_indices = @transform_1, window_bounds = array<i64: 1, 32, 8>}, {transform_indices = @transform_2, window_bounds = array<i64: 1, 32, 8>}, {transform_indices = @transform_3, window_bounds = array<i64: 1, 32, 8>}, {transform_indices = @transform_4, window_bounds = array<i64: 1, 1, 8>}, {transform_indices = @transform_5, window_bounds = array<i64: 1, 1, 8>}, {transform_indices = @transform_6, window_bounds = array<i64: 1, 1, 8>}, {transform_indices = @transform_7, window_bounds = array<i64: 1, 8, 32>}, {pipeline_mode = #tpu.pipeline_mode<synchronous>, transform_indices = @transform_8, window_bounds = array<i64: 1, 32>}, {pipeline_mode = #tpu.pipeline_mode<synchronous>, transform_indices = @transform_9, window_bounds = array<i64: 1, 32>}, {pipeline_mode = #tpu.pipeline_mode<synchronous>, transform_indices = @transform_10, window_bounds = array<i64: 1, 32>}, {transform_indices = @transform_11, window_bounds = array<i64: 1, 128, 32>}]} {
    %c0_i32 = arith.constant 0 : i32
    %0 = arith.cmpi eq, %arg1, %c0_i32 : i32
    %1 = arith.extui %0 : i1 to i32
    %c0_i32_0 = arith.constant 0 : i32
    %2 = arith.cmpi ne, %1, %c0_i32_0 : i32
    scf.if %2 {
      %cst_37 = arith.constant 0.000000e+00 : f32
      %54 = vector.broadcast %cst_37 : f32 to vector<128x32xf32>
      %c0_38 = arith.constant 0 : index
      %c0_39 = arith.constant 0 : index
      %55 = vector.load %arg14[%c0_38, %c0_39] : memref<128x32xf32, #tpu.memory_space<vmem>>, vector<128x32xf32>
      tpu.vector_store %arg14[%c0_38, %c0_39], %54 {strides = array<i32>} : memref<128x32xf32, #tpu.memory_space<vmem>>, vector<128x32xf32>,
    } else {
    }
    %c0 = arith.constant 0 : index
    %c0_1 = arith.constant 0 : index
    %c0_2 = arith.constant 0 : index
    %3 = vector.load %arg2[%c0, %c0_1, %c0_2] : memref<1x128x32xbf16, #tpu.memory_space<vmem>>, vector<1x128x32xbf16>
    %4 = vector.shape_cast %3 : vector<1x128x32xbf16> to vector<128x32xbf16>
    %c0_3 = arith.constant 0 : index
    %c0_4 = arith.constant 0 : index
    %c0_5 = arith.constant 0 : index
    %5 = vector.load %arg3[%c0_3, %c0_4, %c0_5] : memref<1x32x8xbf16, #tpu.memory_space<vmem>>, vector<1x32x8xbf16>
    %6 = vector.shape_cast %5 : vector<1x32x8xbf16> to vector<32x8xbf16>
    %cst = arith.constant dense<0.000000e+00> : vector<128x8xf32>
    %7 = tpu.matmul %4, %6, %cst {dimension_numbers = #tpu.dot_dimension_numbers<[1], [0], [0], [1], [0, 0, 1, 1], [], []>} : vector<128x32xbf16>, vector<32x8xbf16>, vector<128x8xf32> -> vector<128x8xf32>
    %c0_6 = arith.constant 0 : index
    %c0_7 = arith.constant 0 : index
    %c0_8 = arith.constant 0 : index
    %8 = vector.load %arg6[%c0_6, %c0_7, %c0_8] : memref<1x1x8xf32, #tpu.memory_space<vmem>>, vector<1x1x8xf32>
    %9 = vector.shape_cast %8 : vector<1x1x8xf32> to vector<1x8xf32>
    %10 = vector.broadcast %9 : vector<1x8xf32> to vector<128x8xf32>
    %11 = arith.addf %7, %10 : vector<128x8xf32>
    %cst_9 = arith.constant 0.353553385 : f32
    %12 = vector.broadcast %cst_9 : f32 to vector<128x8xf32>
    %13 = arith.mulf %11, %12 : vector<128x8xf32>
    %c0_10 = arith.constant 0 : index
    %c0_11 = arith.constant 0 : index
    %c0_12 = arith.constant 0 : index
    %14 = vector.load %arg4[%c0_10, %c0_11, %c0_12] : memref<1x32x8xbf16, #tpu.memory_space<vmem>>, vector<1x32x8xbf16>
    %15 = vector.shape_cast %14 : vector<1x32x8xbf16> to vector<32x8xbf16>
    %cst_13 = arith.constant dense<0.000000e+00> : vector<128x8xf32>
    %16 = tpu.matmul %4, %15, %cst_13 {dimension_numbers = #tpu.dot_dimension_numbers<[1], [0], [0], [1], [0, 0, 1, 1], [], []>} : vector<128x32xbf16>, vector<32x8xbf16>, vector<128x8xf32> -> vector<128x8xf32>
    %c0_14 = arith.constant 0 : index
    %c0_15 = arith.constant 0 : index
    %c0_16 = arith.constant 0 : index
    %17 = vector.load %arg7[%c0_14, %c0_15, %c0_16] : memref<1x1x8xf32, #tpu.memory_space<vmem>>, vector<1x1x8xf32>
    %18 = vector.shape_cast %17 : vector<1x1x8xf32> to vector<1x8xf32>
    %19 = vector.broadcast %18 : vector<1x8xf32> to vector<128x8xf32>
    %20 = arith.addf %16, %19 : vector<128x8xf32>
    %c0_17 = arith.constant 0 : index
    %c0_18 = arith.constant 0 : index
    %c0_19 = arith.constant 0 : index
    %21 = vector.load %arg5[%c0_17, %c0_18, %c0_19] : memref<1x32x8xbf16, #tpu.memory_space<vmem>>, vector<1x32x8xbf16>
    %22 = vector.shape_cast %21 : vector<1x32x8xbf16> to vector<32x8xbf16>
    %cst_20 = arith.constant dense<0.000000e+00> : vector<128x8xf32>
    %23 = tpu.matmul %4, %22, %cst_20 {dimension_numbers = #tpu.dot_dimension_numbers<[1], [0], [0], [1], [0, 0, 1, 1], [], []>} : vector<128x32xbf16>, vector<32x8xbf16>, vector<128x8xf32> -> vector<128x8xf32>
    %c0_21 = arith.constant 0 : index
    %c0_22 = arith.constant 0 : index
    %c0_23 = arith.constant 0 : index
    %24 = vector.load %arg8[%c0_21, %c0_22, %c0_23] : memref<1x1x8xf32, #tpu.memory_space<vmem>>, vector<1x1x8xf32>
    %25 = vector.shape_cast %24 : vector<1x1x8xf32> to vector<1x8xf32>
    %26 = vector.broadcast %25 : vector<1x8xf32> to vector<128x8xf32>
    %27 = arith.addf %23, %26 : vector<128x8xf32>
    %28 = arith.truncf %13 : vector<128x8xf32> to vector<128x8xbf16>
    %29 = arith.truncf %20 : vector<128x8xf32> to vector<128x8xbf16>
    %cst_24 = arith.constant dense<0.000000e+00> : vector<128x128xf32>
    %30 = tpu.matmul %28, %29, %cst_24 {dimension_numbers = #tpu.dot_dimension_numbers<[1], [1], [0], [0], [0, 0, 1, 0], [], []>} : vector<128x8xbf16>, vector<128x8xbf16>, vector<128x128xf32> -> vector<128x128xf32>
    %cst_25 = arith.constant dense<0xFF800000> : vector<128xf32>
    %31 = vector.multi_reduction <maximumf>, %30, %cst_25 [1] : vector<128x128xf32> to vector<128xf32>
    %32 = vector.shape_cast %31 : vector<128xf32> to vector<128x1xf32>
    %33 = vector.broadcast %32 : vector<128x1xf32> to vector<128x128xf32>
    %34 = arith.subf %30, %33 : vector<128x128xf32>
    %35 = math.exp %34 : vector<128x128xf32>
    %cst_26 = arith.constant dense<0.000000e+00> : vector<128xf32>
    %36 = vector.multi_reduction <add>, %35, %cst_26 [1] : vector<128x128xf32> to vector<128xf32>
    %37 = vector.shape_cast %36 : vector<128xf32> to vector<128x1xf32>
    %38 = tpu.reciprocal %37 {approx = true} : vector<128x1xf32> -> vector<128x1xf32>
    %39 = vector.broadcast %38 : vector<128x1xf32> to vector<128x128xf32>
    %40 = arith.mulf %35, %39 : vector<128x128xf32>
    %41 = arith.truncf %40 : vector<128x128xf32> to vector<128x128xbf16>
    %42 = arith.truncf %27 : vector<128x8xf32> to vector<128x8xbf16>
    %cst_27 = arith.constant dense<0.000000e+00> : vector<128x8xf32>
    %43 = tpu.matmul %41, %42, %cst_27 {dimension_numbers = #tpu.dot_dimension_numbers<[1], [0], [0], [1], [0, 0, 1, 1], [], []>} : vector<128x128xbf16>, vector<128x8xbf16>, vector<128x8xf32> -> vector<128x8xf32>
    %c0_28 = arith.constant 0 : index
    %c0_29 = arith.constant 0 : index
    %44 = vector.load %arg14[%c0_28, %c0_29] : memref<128x32xf32, #tpu.memory_space<vmem>>, vector<128x32xf32>
    %45 = arith.truncf %43 : vector<128x8xf32> to vector<128x8xbf16>
    %c0_30 = arith.constant 0 : index
    %c0_31 = arith.constant 0 : index
    %c0_32 = arith.constant 0 : index
    %46 = vector.load %arg9[%c0_30, %c0_31, %c0_32] : memref<1x8x32xbf16, #tpu.memory_space<vmem>>, vector<1x8x32xbf16>
    %47 = vector.shape_cast %46 : vector<1x8x32xbf16> to vector<8x32xbf16>
    %cst_33 = arith.constant dense<0.000000e+00> : vector<128x32xf32>
    %48 = tpu.matmul %45, %47, %cst_33 {dimension_numbers = #tpu.dot_dimension_numbers<[1], [0], [0], [1], [0, 0, 1, 1], [], []>} : vector<128x8xbf16>, vector<8x32xbf16>, vector<128x32xf32> -> vector<128x32xf32>
    %49 = arith.addf %44, %48 : vector<128x32xf32>
    %c0_34 = arith.constant 0 : index
    %c0_35 = arith.constant 0 : index
    %50 = vector.load %arg14[%c0_34, %c0_35] : memref<128x32xf32, #tpu.memory_space<vmem>>, vector<128x32xf32>
    tpu.vector_store %arg14[%c0_34, %c0_35], %49 {strides = array<i32>} : memref<128x32xf32, #tpu.memory_space<vmem>>, vector<128x32xf32>,
    %c3_i32 = arith.constant 3 : i32
    %51 = arith.cmpi eq, %arg1, %c3_i32 : i32
    %52 = arith.extui %51 : i1 to i32
    %c0_i32_36 = arith.constant 0 : i32
    %53 = arith.cmpi ne, %52, %c0_i32_36 : i32
    scf.if %53 {
      %c0_37 = arith.constant 0 : index
      %c0_38 = arith.constant 0 : index
      %54 = vector.load %arg14[%c0_37, %c0_38] : memref<128x32xf32, #tpu.memory_space<vmem>>, vector<128x32xf32>
      %c0_39 = arith.constant 0 : index
      %c0_40 = arith.constant 0 : index
      %55 = vector.load %arg10[%c0_39, %c0_40] : memref<1x32xf32, #tpu.memory_space<vmem>>, vector<1x32xf32>
      %56 = vector.broadcast %55 : vector<1x32xf32> to vector<128x32xf32>
      %57 = arith.addf %54, %56 : vector<128x32xf32>
      %c0_41 = arith.constant 0 : index
      %c0_42 = arith.constant 0 : index
      %c0_43 = arith.constant 0 : index
      %58 = vector.load %arg2[%c0_41, %c0_42, %c0_43] : memref<1x128x32xbf16, #tpu.memory_space<vmem>>, vector<1x128x32xbf16>
      %59 = vector.shape_cast %58 : vector<1x128x32xbf16> to vector<128x32xbf16>
      %60 = arith.extf %59 : vector<128x32xbf16> to vector<128x32xf32>
      %61 = arith.addf %57, %60 : vector<128x32xf32>
      %cst_44 = arith.constant dense<0.000000e+00> : vector<128xf32>
      %62 = vector.multi_reduction <add>, %61, %cst_44 [1] : vector<128x32xf32> to vector<128xf32>
      %63 = vector.shape_cast %62 : vector<128xf32> to vector<128x1xf32>
      %cst_45 = arith.constant 3.200000e+01 : f32
      %64 = vector.broadcast %cst_45 : f32 to vector<128x1xf32>
      %65 = arith.divf %63, %64 : vector<128x1xf32>
      %66 = vector.broadcast %65 : vector<128x1xf32> to vector<128x32xf32>
      %67 = arith.subf %61, %66 : vector<128x32xf32>
      %68 = arith.mulf %67, %67 : vector<128x32xf32>
      %cst_46 = arith.constant dense<0.000000e+00> : vector<128xf32>
      %69 = vector.multi_reduction <add>, %68, %cst_46 [1] : vector<128x32xf32> to vector<128xf32>
      %70 = vector.shape_cast %69 : vector<128xf32> to vector<128x1xf32>
      %cst_47 = arith.constant 3.200000e+01 : f32
      %71 = vector.broadcast %cst_47 : f32 to vector<128x1xf32>
      %72 = arith.divf %70, %71 : vector<128x1xf32>
      %73 = vector.broadcast %65 : vector<128x1xf32> to vector<128x32xf32>
      %74 = arith.subf %61, %73 : vector<128x32xf32>
      %cst_48 = arith.constant 9.99999974E-6 : f32
      %75 = vector.broadcast %cst_48 : f32 to vector<128x1xf32>
      %76 = arith.addf %72, %75 : vector<128x1xf32>
      %77 = math.rsqrt %76 : vector<128x1xf32>
      %78 = vector.broadcast %77 : vector<128x1xf32> to vector<128x32xf32>
      %79 = arith.mulf %74, %78 : vector<128x32xf32>
      %c0_49 = arith.constant 0 : index
      %c0_50 = arith.constant 0 : index
      %80 = vector.load %arg11[%c0_49, %c0_50] : memref<1x32xf32, #tpu.memory_space<vmem>>, vector<1x32xf32>
      %81 = vector.broadcast %80 : vector<1x32xf32> to vector<128x32xf32>
      %82 = arith.mulf %79, %81 : vector<128x32xf32>
      %c0_51 = arith.constant 0 : index
      %c0_52 = arith.constant 0 : index
      %83 = vector.load %arg12[%c0_51, %c0_52] : memref<1x32xf32, #tpu.memory_space<vmem>>, vector<1x32xf32>
      %84 = vector.broadcast %83 : vector<1x32xf32> to vector<128x32xf32>
      %85 = arith.addf %82, %84 : vector<128x32xf32>
      %86 = arith.truncf %85 : vector<128x32xf32> to vector<128x32xbf16>
      %c0_53 = arith.constant 0 : index
      %c0_54 = arith.constant 0 : index
      %c0_55 = arith.constant 0 : index
      %87 = vector.load %arg13[%c0_53, %c0_54, %c0_55] : memref<1x128x32xbf16, #tpu.memory_space<vmem>>, vector<1x128x32xbf16>
      %88 = vector.shape_cast %87 : vector<1x128x32xbf16> to vector<128x32xbf16>
      %89 = vector.shape_cast %86 : vector<128x32xbf16> to vector<1x128x32xbf16>
      tpu.vector_store %arg13[%c0_53, %c0_54, %c0_55], %89 {strides = array<i32>} : memref<1x128x32xbf16, #tpu.memory_space<vmem>>, vector<1x128x32xbf16>,
    } else {
    }
    return
  }
  func.func @transform_0(%arg0: i32, %arg1: i32) -> (i32, i32, i32) {
    %c0_i32 = arith.constant 0 : i32
    %c0_i32_0 = arith.constant 0 : i32
    %c0_i32_1 = arith.constant 0 : i32
    return %arg0, %c0_i32, %c0_i32_0 : i32, i32, i32
  }
  func.func @transform_1(%arg0: i32, %arg1: i32) -> (i32, i32, i32) {
    %c0_i32 = arith.constant 0 : i32
    %c0_i32_0 = arith.constant 0 : i32
    %c0_i32_1 = arith.constant 0 : i32
    return %arg1, %c0_i32, %c0_i32_0 : i32, i32, i32
  }
  func.func @transform_2(%arg0: i32, %arg1: i32) -> (i32, i32, i32) {
    %c0_i32 = arith.constant 0 : i32
    %c0_i32_0 = arith.constant 0 : i32
    %c0_i32_1 = arith.constant 0 : i32
    return %arg1, %c0_i32, %c0_i32_0 : i32, i32, i32
  }
  func.func @transform_3(%arg0: i32, %arg1: i32) -> (i32, i32, i32) {
    %c0_i32 = arith.constant 0 : i32
    %c0_i32_0 = arith.constant 0 : i32
    %c0_i32_1 = arith.constant 0 : i32
    return %arg1, %c0_i32, %c0_i32_0 : i32, i32, i32
  }
  func.func @transform_4(%arg0: i32, %arg1: i32) -> (i32, i32, i32) {
    %c0_i32 = arith.constant 0 : i32
    %c0_i32_0 = arith.constant 0 : i32
    %c0_i32_1 = arith.constant 0 : i32
    return %arg1, %c0_i32, %c0_i32_0 : i32, i32, i32
  }
  func.func @transform_5(%arg0: i32, %arg1: i32) -> (i32, i32, i32) {
    %c0_i32 = arith.constant 0 : i32
    %c0_i32_0 = arith.constant 0 : i32
    %c0_i32_1 = arith.constant 0 : i32
    return %arg1, %c0_i32, %c0_i32_0 : i32, i32, i32
  }
  func.func @transform_6(%arg0: i32, %arg1: i32) -> (i32, i32, i32) {
    %c0_i32 = arith.constant 0 : i32
    %c0_i32_0 = arith.constant 0 : i32
    %c0_i32_1 = arith.constant 0 : i32
    return %arg1, %c0_i32, %c0_i32_0 : i32, i32, i32
  }
  func.func @transform_7(%arg0: i32, %arg1: i32) -> (i32, i32, i32) {
    %c0_i32 = arith.constant 0 : i32
    %c0_i32_0 = arith.constant 0 : i32
    %c0_i32_1 = arith.constant 0 : i32
    return %arg1, %c0_i32, %c0_i32_0 : i32, i32, i32
  }
  func.func @transform_8(%arg0: i32, %arg1: i32) -> (i32, i32) {
    %c0_i32 = arith.constant 0 : i32
    %c0_i32_0 = arith.constant 0 : i32
    %c0_i32_1 = arith.constant 0 : i32
    return %c0_i32, %c0_i32_0 : i32, i32
  }
  func.func @transform_9(%arg0: i32, %arg1: i32) -> (i32, i32) {
    %c0_i32 = arith.constant 0 : i32
    %c0_i32_0 = arith.constant 0 : i32
    %c0_i32_1 = arith.constant 0 : i32
    return %c0_i32, %c0_i32_0 : i32, i32
  }
  func.func @transform_10(%arg0: i32, %arg1: i32) -> (i32, i32) {
    %c0_i32 = arith.constant 0 : i32
    %c0_i32_0 = arith.constant 0 : i32
    %c0_i32_1 = arith.constant 0 : i32
    return %c0_i32, %c0_i32_0 : i32, i32
  }
  func.func @transform_11(%arg0: i32, %arg1: i32) -> (i32, i32, i32) {
    %c0_i32 = arith.constant 0 : i32
    %c0_i32_0 = arith.constant 0 : i32
    %c0_i32_1 = arith.constant 0 : i32
    return %arg0, %c0_i32, %c0_i32_0 : i32, i32, i32
  }
}

</mosaic_0001>

<bundles_post_ra>
// kernel: mccformers_s_forward.5
= control target key start
LH: loop header
LB: loop body
LE: loop exit
PB: predicated region body
PF: predicated region fallthrough
CT: control target
= control target key end

     0   :  { %s810_s15 = smov 0   ;;  %s812_s16 = smov 0   ;;  %s952_s0 = inlined_call_operand.vmem [shape: f32[2,128,4], index: 0, kind: input, shape index: {}]   ;;  %s953_s1 = inlined_call_operand.vmem [shape: bf16[4,32], index: 1, kind: input, shape index: {}]   ;;  %s954_s2 = inlined_call_operand.vmem [shape: f32[1,32], index: 2, kind: input, shape index: {}]   ;;  %s955_s3 = inlined_call_operand.vmem [shape: f32[2,64,32], index: 3, kind: input, shape index: {}]   ;;  %s956_s4 = inlined_call_operand.vmem [shape: bf16[2,2,64,32], index: 4, kind: output, shape index: {}]  }
   0x1   :  { %s814_s17 = smov 0  }
   0x2 LB: > { %s823_s18 = sadd.s32 4294967295, %s783_s17   ;;  %s825_s19 = sadd.s32 1, %s783_s17   ;;  %s783_s17 = sphi %s814_s17, %s960_s17   ;;  %s779_s16 = sphi %s812_s16, %s959_s16   ;;  %s775_s15 = sphi %s810_s15, %s958_s15  }
   0x3   : > { %s112_s20 = ssub.s32 %s783_s17, %s825_s19  ;;  %s115_s21 = sadd.s32 1, %s779_s16 }
   0x4   : > { %p113_p0 = scmp.eq.s32.totalorder %s112_s20, 0  ;;  %p125_p1 = scmp.ne.s32.totalorder %s779_s16, %s775_s15 }
   0x5   : > { %p126_p2 = scmp.eq.s32.totalorder %s823_s18, 1  ;;  %p651_p3 = scmp.ge.s32.totalorder %s783_s17, 1 }
   0x6   : > { %s833_s22 = scalar_select %p113_p0, %s779_s16, %s115_s21  }
   0x7   : > { %p835_p4 = por %p126_p2, %p125_p1  ;;  %p172_p5 = scmp.lt.s32.totalorder %s783_s17, 3 }
   0x9   : > { %p173_p6 = pnand %p651_p3, %p172_p5 }
   0xa   : > { %v237_v0 = vld [vmem:[%s953_s1] sm:$0x3] (!%p173_p6)  ;;  %vm270_vm0 = vcmask (!%p173_p6), 1041408   ;;  %p202_p7 = scmp.lt.s32.totalorder (!%p173_p6), %s823_s18, 1  ;;  %vm245_vm1 = vcmask (!%p173_p6), 31744   ;;  %s199_s9 = sand.u32 (!%p173_p6), 1, %s775_s15  }
   0xb   : > { %176 = sbr.rel (%p173_p6) target bundleno = 265 (0x109), region = 36  ;;  %735 = vmatprep.subr.msk.bf16.mxu0 (!%p173_p6), %vm270_vm0, %v237_v0  ;;  %736 = vmatprep.subr.msk.bf16.mxu1 (!%p173_p6), %vm270_vm0, %v237_v0  ;;  %v272_v1 = vsel (!%p173_p6), %vm270_vm0, %v237_v0, 0  ;;  %v868_v26 = vld [vmem:[%s954_s2] ss:$0 sm:$0xff] (!%p173_p6)  ;;  %s652_s12 = sshll.u32 (!%p173_p6), %s199_s9, 6  ;;  %vm459_vm2 = vcmask (!%p173_p6), 257024  }
   0xc   : > { %716 = vmatpush3.bf16.msra.mxu0 (!%p173_p6), %v272_v1  ;;  %734 = vmatpush3.bf16.msra.mxu1 (!%p173_p6), %v272_v1  ;;  %s882_s13 = scalar_lea.vmem (!%p173_p6), [#allocation2], %s652_s12 }
  0x12   : > { %s844_s26 = scalar_select %p202_p7, %s823_s18, 1 }
  0x13   : > { %s705_s14 = sshll.u32 (%p835_p4), %s823_s18, 5 }
  0x14   : > { %s687_s27 = sshll.u32 %s844_s26, 7  ;;  %s688_s5 = sshll.u32 %s844_s26, 6 }
  0x15   : > { %s206_s30 = scalar_lea.vmem %s952_s0, %s687_s27  ;;  %s862_s8 = scalar_lea.vmem %s955_s3, %s688_s5 }
  0x16   : > { %v213_v2 = vld [vmem:[%s206_s30] sm:$0xff]  ;;  %v214_v3 = vld [vmem:[%s206_s30 + $0x8] sm:$0xff]  ;;  %v215_v7 = vld [vmem:[%s206_s30 + $0x10] sm:$0xff]  ;;  %s485_s20 = scalar_lea.vmem (%p835_p4), %s956_s4, %s705_s14 }
  0x17   : > { %v221_v4 = vld [vmem:[%s206_s30 + $0x40] sm:$0xff]  ;;  %v229_v5 = vpack.c.bf16 %v214_v3, %v213_v2  ;;  %v222_v6 = vld [vmem:[%s206_s30 + $0x48] sm:$0xff]  ;;  %v216_v8 = vld [vmem:[%s206_s30 + $0x18] sm:$0xff] }
  0x18   : > { %v233_v9 = vpack.c.bf16 %v222_v6, %v221_v4  ;;  %v230_v10 = vpack.c.bf16 %v216_v8, %v215_v7  ;;  %v223_v11 = vld [vmem:[%s206_s30 + $0x50] sm:$0xff]  ;;  %v224_v12 = vld [vmem:[%s206_s30 + $0x58] sm:$0xff]  ;;  %v217_v13 = vld [vmem:[%s206_s30 + $0x20] sm:$0xff] }
  0x19   : > { %717 = vmatprep.mubr.msk.bf16.mxu0 %vm245_vm1, %v229_v5  ;;  %v234_v14 = vpack.c.bf16 %v224_v12, %v223_v11  ;;  %v218_v15 = vld [vmem:[%s206_s30 + $0x28] sm:$0xff]  ;;  %v225_v16 = vld [vmem:[%s206_s30 + $0x60] sm:$0xff]  ;;  %v219_v20 = vld [vmem:[%s206_s30 + $0x30] sm:$0xff] }
  0x1a   : > { %v226_v17 = vld [vmem:[%s206_s30 + $0x68] sm:$0xff]  ;;  %725 = vmatprep.mubr.msk.bf16.mxu1 %vm245_vm1, %v233_v9  ;;  %718 = vmatmul.mubr.msk.bf16.vlgmr.msra.gmra.mrb[0].mxu0 %vm245_vm1, %v230_v10  ;;  %v231_v18 = vpack.c.bf16 %v218_v15, %v217_v13  ;;  %v220_v21 = vld [vmem:[%s206_s30 + $0x38] sm:$0xff]  ;;  %v227_v22 = vld [vmem:[%s206_s30 + $0x70] sm:$0xff] }
  0x1b   : > { %v235_v19 = vpack.c.bf16 %v226_v17, %v225_v16  ;;  %726 = vmatmul.mubr.msk.bf16.vlgmr.msra.gmra.mrb[0].mxu1 %vm245_vm1, %v234_v14  ;;  %v228_v23 = vld [vmem:[%s206_s30 + $0x78] sm:$0xff]  ;;  %v232_v24 = vpack.c.bf16 %v220_v21, %v219_v20  ;;  %v373_v28 = vld [vmem:[%s862_s8 + $0x10] sm:$0xff]  ;;  %v371_v32 = vld [vmem:[%s862_s8] sm:$0xff] }
  0x1c   : > { %721 = vmatprep.mubr.msk.bf16.mxu0 %vm245_vm1, %v231_v18  ;;  %v236_v25 = vpack.c.bf16 %v228_v23, %v227_v22  ;;  %v374_v37 = vld [vmem:[%s862_s8 + $0x18] sm:$0xff]  ;;  %v372_v43 = vld [vmem:[%s862_s8 + $0x8] sm:$0xff]  ;;  %v377_v63 = vld [vmem:[%s862_s8 + $0x30] sm:$0xff] }
  0x1d   : > { %729 = vmatprep.mubr.msk.bf16.mxu1 %vm245_vm1, %v235_v19  ;;  %v375_v4 = vld [vmem:[%s862_s8 + $0x20] sm:$0xff]  ;;  %v378_v9 = vld [vmem:[%s862_s8 + $0x38] sm:$0xff]  ;;  %v376_v15 = vld [vmem:[%s862_s8 + $0x28] sm:$0xff] }
  0x22   : > { %722 = vmatmul.mubr.msk.bf16.gmra.mrb[4].mxu0 %vm245_vm1, %v232_v24 }
  0x23   : > { %730 = vmatmul.mubr.msk.bf16.gmra.mrb[4].mxu1 %vm245_vm1, %v236_v25 }
  0xed   : > { %v719_v27 = vpop.f32.mrb[0].mxu0 }
  0xee   : > { %v317_v29 = vadd.f32 %v719_v27, %v868_v26  ;;  %v727_v30 = vpop.f32.mrb[0].mxu1  ;;  %v308_v31 = vpop.f32.mrb[1].mxu0 }
  0xef   : > { %v349_v33 = vadd.f32 %v727_v30, %v868_v26  ;;  %v309_v34 = vadd.f32 %v868_v26, %v308_v31  ;;  %v340_v35 = vpop.f32.mrb[1].mxu1  ;;  %v720_v36 = vpop.f32.mrb[2].mxu0 }
  0xf0   : > { %v381_v38 = vadd.f32 %v373_v28, %v317_v29  ;;  %v341_v39 = vadd.f32 %v868_v26, %v340_v35  ;;  %v320_v40 = vadd.f32 %v720_v36, %v868_v26  ;;  %v728_v41 = vpop.f32.mrb[2].mxu1  ;;  %v311_v42 = vpop.f32.mrb[3].mxu0 }
  0xf1   : > { %v389_v44 = vadd.f32 %v373_v28, %v349_v33  ;;  %v379_v45 = vadd.f32 %v371_v32, %v309_v34  ;;  %v352_v46 = vadd.f32 %v728_v41, %v868_v26  ;;  %v312_v47 = vadd.f32 %v868_v26, %v311_v42  ;;  %v343_v48 = vpop.f32.mrb[3].mxu1 }
  0xf2   : > { %v691_v49 = vpack.c.bf16 %v381_v38, %v381_v38  ;;  %v387_v50 = vadd.f32 %v371_v32, %v341_v39  ;;  %v382_v51 = vadd.f32 %v374_v37, %v320_v40  ;;  %v344_v52 = vadd.f32 %v868_v26, %v343_v48 }
  0xf3   : > { %v699_v53 = vpack.c.bf16 %v389_v44, %v389_v44  ;;  %v689_v54 = vpack.c.bf16 %v379_v45, %v379_v45  ;;  %v390_v55 = vadd.f32 %v374_v37, %v352_v46  ;;  %v380_v56 = vadd.f32 %v372_v43, %v312_v47 }
  0xf4   : > { %462 = vst.msk [vmem:[%s882_s13 + $0x8] sm:$0xf] %vm459_vm2, %v691_v49  ;;  %v697_v57 = vpack.c.bf16 %v387_v50, %v387_v50  ;;  %v692_v58 = vpack.c.bf16 %v382_v51, %v382_v51  ;;  %v388_v59 = vadd.f32 %v372_v43, %v344_v52 }
  0xf5   : > { %470 = vst.msk [vmem:[%s882_s13 + $0x28] sm:$0xf] %vm459_vm2, %v699_v53  ;;  %460 = vst.msk [vmem:[%s882_s13] sm:$0xf] %vm459_vm2, %v689_v54  ;;  %v700_v60 = vpack.c.bf16 %v390_v55, %v390_v55  ;;  %v690_v61 = vpack.c.bf16 %v380_v56, %v380_v56  ;;  %v723_v62 = vpop.f32.mrb[4].mxu0 }
  0xf6   : > { %468 = vst.msk [vmem:[%s882_s13 + $0x20] sm:$0xf] %vm459_vm2, %v697_v57  ;;  %463 = vst.msk [vmem:[%s882_s13 + $0xc] sm:$0xf] %vm459_vm2, %v692_v58  ;;  %v698_v0 = vpack.c.bf16 %v388_v59, %v388_v59  ;;  %v333_v1 = vadd.f32 %v723_v62, %v868_v26  ;;  %v731_v2 = vpop.f32.mrb[4].mxu1  ;;  %v324_v3 = vpop.f32.mrb[5].mxu0 }
  0xf7   : > { %471 = vst.msk [vmem:[%s882_s13 + $0x2c] sm:$0xf] %vm459_vm2, %v700_v60  ;;  %461 = vst.msk [vmem:[%s882_s13 + $0x4] sm:$0xf] %vm459_vm2, %v690_v61  ;;  %v365_v5 = vadd.f32 %v731_v2, %v868_v26  ;;  %v325_v6 = vadd.f32 %v868_v26, %v324_v3  ;;  %v356_v7 = vpop.f32.mrb[5].mxu1  ;;  %v724_v8 = vpop.f32.mrb[6].mxu0 }
  0xf8   : > { %469 = vst.msk [vmem:[%s882_s13 + $0x24] sm:$0xf] %vm459_vm2, %v698_v0  ;;  %v385_v10 = vadd.f32 %v377_v63, %v333_v1  ;;  %v357_v11 = vadd.f32 %v868_v26, %v356_v7  ;;  %v336_v12 = vadd.f32 %v724_v8, %v868_v26  ;;  %v732_v13 = vpop.f32.mrb[6].mxu1  ;;  %v327_v14 = vpop.f32.mrb[7].mxu0 }
  0xf9   : > { %v393_v16 = vadd.f32 %v377_v63, %v365_v5  ;;  %v383_v17 = vadd.f32 %v375_v4, %v325_v6  ;;  %v368_v18 = vadd.f32 %v732_v13, %v868_v26  ;;  %v328_v19 = vadd.f32 %v868_v26, %v327_v14  ;;  %v359_v20 = vpop.f32.mrb[7].mxu1 }
  0xfa   : > { %v695_v21 = vpack.c.bf16 %v385_v10, %v385_v10  ;;  %v391_v22 = vadd.f32 %v375_v4, %v357_v11  ;;  %v386_v23 = vadd.f32 %v378_v9, %v336_v12  ;;  %v360_v24 = vadd.f32 %v868_v26, %v359_v20  ;;  %482 = sbr.rel (!%p835_p4) target bundleno = 265 (0x109), region = 40 }
  0xfb   : > { %v703_v25 = vpack.c.bf16 %v393_v16, %v393_v16  ;;  %v693_v27 = vpack.c.bf16 %v383_v17, %v383_v17  ;;  %v394_v28 = vadd.f32 %v378_v9, %v368_v18  ;;  %v384_v29 = vadd.f32 %v376_v15, %v328_v19 }
  0xfc   : > { %466 = vst.msk [vmem:[%s882_s13 + $0x18] sm:$0xf] %vm459_vm2, %v695_v21  ;;  %v701_v30 = vpack.c.bf16 %v391_v22, %v391_v22  ;;  %v696_v31 = vpack.c.bf16 %v386_v23, %v386_v23  ;;  %v392_v32 = vadd.f32 %v376_v15, %v360_v24 }
  0xfd   : > { %474 = vst.msk [vmem:[%s882_s13 + $0x38] sm:$0xf] %vm459_vm2, %v703_v25  ;;  %464 = vst.msk [vmem:[%s882_s13 + $0x10] sm:$0xf] %vm459_vm2, %v693_v27  ;;  %v704_v33 = vpack.c.bf16 %v394_v28, %v394_v28  ;;  %v694_v34 = vpack.c.bf16 %v384_v29, %v384_v29  ;;  %v505_v36 = vld [vmem:[%s882_s13 + $0x8] sm:$0xff] (%p835_p4)  }
  0xfe   : > { %472 = vst.msk [vmem:[%s882_s13 + $0x30] sm:$0xf] %vm459_vm2, %v701_v30  ;;  %467 = vst.msk [vmem:[%s882_s13 + $0x1c] sm:$0xf] %vm459_vm2, %v696_v31  ;;  %v702_v26 = vpack.c.bf16 %v392_v32, %v392_v32  ;;  %v501_v35 = vld [vmem:[%s882_s13] sm:$0xff] (%p835_p4)   ;;  %v521_v40 = vld [vmem:[%s882_s13 + $0x28] sm:$0xff] (%p835_p4)  }
  0xff   : > { %475 = vst.msk [vmem:[%s882_s13 + $0x3c] sm:$0xf] %vm459_vm2, %v704_v33  ;;  %465 = vst.msk [vmem:[%s882_s13 + $0x14] sm:$0xf] %vm459_vm2, %v694_v34  ;;  %v517_v39 = vld [vmem:[%s882_s13 + $0x20] sm:$0xff] (%p835_p4)  }
 0x100   : > { %473 = vst.msk [vmem:[%s882_s13 + $0x34] sm:$0xf] %vm459_vm2, %v702_v26  ;;  %502 = vst [vmem:[%s485_s20] sm:$0xff] (%p835_p4), %v501_v35  }
 0x101   : > { %506 = vst [vmem:[%s485_s20 + $0x8] sm:$0xff] %v505_v36   ;;  %518 = vst [vmem:[%s485_s20 + $0x40] sm:$0xff] %v517_v39  }
 0x102   : > { %522 = vst [vmem:[%s485_s20 + $0x48] sm:$0xff] %v521_v40  }
 0x105   : > { %v513_v38 = vld [vmem:[%s882_s13 + $0x18] sm:$0xff]  }
 0x106   : > { %v509_v37 = vld [vmem:[%s882_s13 + $0x10] sm:$0xff]   ;;  %514 = vst [vmem:[%s485_s20 + $0x18] sm:$0xff] %v513_v38   ;;  %v529_v42 = vld [vmem:[%s882_s13 + $0x38] sm:$0xff]  }
 0x107   : > { %510 = vst [vmem:[%s485_s20 + $0x10] sm:$0xff] %v509_v37   ;;  %v525_v41 = vld [vmem:[%s882_s13 + $0x30] sm:$0xff]   ;;  %530 = vst [vmem:[%s485_s20 + $0x58] sm:$0xff] %v529_v42  }
 0x108   : > { %526 = vst [vmem:[%s485_s20 + $0x50] sm:$0xff] %v525_v41  }
 0x109 PF: > { %p11_p8 = scmp.ge.s32.totalorder %s825_s19, 4   ;;  %s958_s15 = smov %s779_s16 }
 0x10a   : > { %s959_s16 = smov %s833_s22  ;;  %s960_s17 = smov %s825_s19 }
 0x10b   :  { %13 = sbr.rel (!%p11_p8) target bundleno = 2 (0x2), region = 110 }

// kernel: mccformers_s_forward.7
= control target key start
LH: loop header
LB: loop body
LE: loop exit
PB: predicated region body
PF: predicated region fallthrough
CT: control target
= control target key end

     0   :  { %s1346_s24 = smov 0   ;;  %s1720_s0 = inlined_call_operand.vmem [shape: bf16[256,32], index: 0, kind: input, shape index: {}]   ;;  %s1721_s1 = inlined_call_operand.vmem [shape: bf16[32,64], index: 1, kind: input, shape index: {}]   ;;  %s1722_s2 = inlined_call_operand.vmem [shape: f32[1,64], index: 2, kind: input, shape index: {}]   ;;  %s1723_s3 = inlined_call_operand.vmem [shape: bf16[64,32], index: 3, kind: input, shape index: {}]   ;;  %s1724_s4 = inlined_call_operand.vmem [shape: f32[1,32], index: 4, kind: input, shape index: {}]   ;;  %s1725_s5 = inlined_call_operand.vmem [shape: f32[1,32], index: 5, kind: input, shape index: {}]   ;;  %s1726_s6 = inlined_call_operand.vmem [shape: f32[1,32], index: 6, kind: input, shape index: {}]   ;;  %s1727_s7 = inlined_call_operand.vmem [shape: bf16[256,32], index: 7, kind: output, shape index: {}]  }
   0x1 LB: > { %s1093_s25 = sadd.s32 4294967295, %s1304_s24   ;;  %p1097_p0 = scmp.ge.s32.totalorder %s1304_s24, 1  ;;  %s1304_s24 = sphi %s1346_s24, %s17_s24  }
   0x2   : > { %p238_p1 = scmp.lt.s32.totalorder %s1304_s24, 3 }
   0x4   : > { %p239_p2 = pnand %p1097_p0, %p238_p1 }
   0x5   : > { %v1244_v0 = vld [vmem:[%s1721_s1] sm:$0xff] (!%p239_p2)   ;;  %s1098_s28 = sshll.u32 (!%p239_p2), %s1093_s25, 4  ;;  %v1245_v1 = vld [vmem:[%s1721_s1 + $0x8] sm:$0xff] (!%p239_p2)   ;;  %vm362_vm0 = vcmask (!%p239_p2), 261120   ;;  %v1256_v12 = vld [vmem:[%s1723_s3 + $0x10] sm:$0xff] (!%p239_p2)   ;;  %vm547_vm1 = vcmask (!%p239_p2), 523264  }
   0x6   : > { %242 = sbr.rel (%p239_p2) target bundleno = 804 (0x324), region = 48  ;;  %p271_p3 = scmp.lt.s32.totalorder (!%p239_p2), %s1098_s28, 31  ;;  %1192 = vmatprep.subr.bf16.mxu0 (!%p239_p2), %v1244_v0  ;;  %v1254_v2 = vld [vmem:[%s1723_s3] sm:$0xff] (!%p239_p2)   ;;  %v1255_v3 = vld [vmem:[%s1723_s3 + $0x8] sm:$0xff] (!%p239_p2)   ;;  %v1257_v13 = vld [vmem:[%s1723_s3 + $0x18] sm:$0xff] (!%p239_p2)   ;;  %vm1020_vm2 = vcmask (!%p239_p2), 257024  }
   0x7   : > { %1193 = vmatpush3.bf16.msra.mxu0 (!%p239_p2), %v1244_v0  ;;  %1212 = vmatprep.subr.bf16.mxu1 (!%p239_p2), %v1254_v2  ;;  %v1102_v14 = vld [vmem:[%s1722_s2] ss:$0 sm:$0xff] (!%p239_p2) }
   0x8   : > { %1194 = vmatprep.subr.bf16.mxu0 (!%p239_p2), %v1245_v1  ;;  %1213 = vmatpush3.bf16.msra.mxu1 (!%p239_p2), %v1254_v2 }
   0x9   : > { %1214 = vmatprep.subr.bf16.mxu1 (!%p239_p2), %v1255_v3 }
   0xb   : > { %1195 = vmatpush3.bf16.msra.mxu0 (!%p239_p2), %v1245_v1 }
   0xc   : > { %1215 = vmatpush3.bf16.msra.mxu1 (!%p239_p2), %v1255_v3 }
   0xd   : > { %s1729_s28 = smov (!%p271_p3, %s1098_s28), 31  ;;  %1216 = vmatprep.subr.bf16.mxu1 %v1256_v12 }
   0xe   : > { %s1099_s12 = sshll.u32 %s1729_s28, 2 }
   0xf   : > { %s274_s15 = scalar_lea.vmem %s1720_s0, %s1099_s12  ;;  %s1639_s9 = scalar_lea.vmem %s1727_s7, %s1099_s12 }
  0x10   : > { %v1374_v4 = vld [vmem:[%s274_s15] sm:$0xff]   ;;  %v1376_v5 = vld [vmem:[%s274_s15 + $0x8] sm:$0xff]   ;;  %v1378_v6 = vld [vmem:[%s274_s15 + $0x10] sm:$0xff]   ;;  %1217 = vmatpush3.bf16.msra.mxu1 %v1256_v12 }
  0x11   : > { %1196 = vmatprep.mubr.msk.bf16.mxu0 %vm362_vm0, %v1374_v4  ;;  %v1386_v7 = vld [vmem:[%s274_s15 + $0x18] sm:$0xff]   ;;  %v1388_v8 = vld [vmem:[%s274_s15 + $0x20] sm:$0xff]   ;;  %v1394_v9 = vld [vmem:[%s274_s15 + $0x28] sm:$0xff]   ;;  %1218 = vmatprep.subr.bf16.mxu1 %v1257_v13 }
  0x12   : > { %1197 = vmatmul.mubr.msk.bf16.vlgmr.msra.gmra.mrb[0].mxu0 %vm362_vm0, %v1376_v5  ;;  %v1396_v10 = vld [vmem:[%s274_s15 + $0x30] sm:$0xff]   ;;  %v1402_v11 = vld [vmem:[%s274_s15 + $0x38] sm:$0xff]  }
  0x13   : > { %1200 = vmatprep.mubr.msk.bf16.mxu0 %vm362_vm0, %v1378_v6 }
  0x14   : > { %1219 = vmatpush3.bf16.msra.mxu1 %v1257_v13 }
  0x1a   : > { %1201 = vmatmul.mubr.msk.bf16.gmra.mrb[4].mxu0 %vm362_vm0, %v1386_v7 }
  0x1b   : > { %1204 = vmatprep.mubr.msk.bf16.mxu0 %vm362_vm0, %v1388_v8 }
  0x22   : > { %1205 = vmatmul.mubr.msk.bf16.gmra.mrb[8].mxu0 %vm362_vm0, %v1394_v9 }
  0x23   : > { %1208 = vmatprep.mubr.msk.bf16.mxu0 %vm362_vm0, %v1396_v10 }
  0x2a   : > { %1209 = vmatmul.mubr.msk.bf16.gmra.mrb[12].mxu0 %vm362_vm0, %v1402_v11 }
  0xe5   : > { %v1198_v15 = vpop.f32.mrb[0].mxu0 }
  0xe6   : > { %v430_v16 = vadd.f32 %v1198_v15, %v1102_v14  ;;  %v421_v17 = vpop.f32.mrb[1].mxu0 }
  0xe7   : > { %v422_v18 = vadd.f32 %v1102_v14, %v421_v17  ;;  %v1199_v19 = vpop.f32.mrb[2].mxu0  ;;  %v671_v17 = vunpack.c.l.bf16 %v1376_v5 }
  0xe8   : > { %v433_v20 = vadd.f32 %v1199_v19, %v1102_v14  ;;  %v424_v21 = vpop.f32.mrb[3].mxu0  ;;  %v486_v23 = vmax.f32 %v430_v16, 0.0  ;;  %v1426_v16 = vld [vmem:[%s1724_s4] ss:$0 sm:$0xff] }
  0xe9   : > { %v425_v22 = vadd.f32 %v1102_v14, %v424_v21  ;;  %v484_v25 = vmax.f32 %v422_v18, 0.0  ;;  %v669_v18 = vunpack.c.l.bf16 %v1374_v4  ;;  %v672_v21 = vunpack.c.h.bf16 %v1376_v5 }
  0xea   : > { %v487_v24 = vmax.f32 %v433_v20, 0.0 }
  0xeb   : > { %v485_v26 = vmax.f32 %v425_v22, 0.0  ;;  %v670_v22 = vunpack.c.h.bf16 %v1374_v4 }
  0xec   : > { %v501_v27 = vpack.c.bf16 %v487_v24, %v486_v23 }
  0xed   : > { %v1202_v28 = vpop.f32.mrb[4].mxu0  ;;  %v500_v29 = vpack.c.bf16 %v485_v26, %v484_v25 }
  0xee   : > { %v446_v30 = vadd.f32 %v1202_v28, %v1102_v14  ;;  %v437_v31 = vpop.f32.mrb[5].mxu0 }
  0xef   : > { %v438_v32 = vadd.f32 %v1102_v14, %v437_v31  ;;  %v1203_v33 = vpop.f32.mrb[6].mxu0  ;;  %1220 = vmatprep.mubr.msk.bf16.mxu1 %vm547_vm1, %v500_v29 }
  0xf0   : > { %v490_v34 = vmax.f32 %v446_v30, 0.0  ;;  %v449_v35 = vadd.f32 %v1203_v33, %v1102_v14  ;;  %v440_v36 = vpop.f32.mrb[7].mxu0  ;;  %1221 = vmatmul.mubr.msk.bf16.vlgmr.msra.gmra.mrb[0].mxu1 %vm547_vm1, %v501_v27 }
  0xf1   : > { %v441_v37 = vadd.f32 %v1102_v14, %v440_v36  ;;  %v488_v39 = vmax.f32 %v438_v32, 0.0  ;;  %v675_v32 = vunpack.c.l.bf16 %v1386_v7 }
  0xf2   : > { %v491_v38 = vmax.f32 %v449_v35, 0.0 }
  0xf3   : > { %v489_v40 = vmax.f32 %v441_v37, 0.0  ;;  %v676_v37 = vunpack.c.h.bf16 %v1386_v7 }
  0xf4   : > { %v503_v41 = vpack.c.bf16 %v491_v38, %v490_v34 }
  0xf5   : > { %v502_v42 = vpack.c.bf16 %v489_v40, %v488_v39  ;;  %v1206_v43 = vpop.f32.mrb[8].mxu0 }
  0xf6   : > { %v462_v44 = vadd.f32 %v1206_v43, %v1102_v14  ;;  %v453_v45 = vpop.f32.mrb[9].mxu0 }
  0xf7   : > { %v454_v46 = vadd.f32 %v1102_v14, %v453_v45  ;;  %v1207_v47 = vpop.f32.mrb[10].mxu0  ;;  %1224 = vmatprep.mubr.msk.bf16.mxu1 %vm547_vm1, %v502_v42  ;;  %v674_v45 = vunpack.c.h.bf16 %v1378_v6 }
  0xf8   : > { %v494_v48 = vmax.f32 %v462_v44, 0.0  ;;  %v465_v49 = vadd.f32 %v1207_v47, %v1102_v14  ;;  %v456_v50 = vpop.f32.mrb[11].mxu0  ;;  %1225 = vmatmul.mubr.msk.bf16.gmra.mrb[4].mxu1 %vm547_vm1, %v503_v41  ;;  %v673_v41 = vunpack.c.l.bf16 %v1378_v6 }
  0xf9   : > { %v457_v51 = vadd.f32 %v1102_v14, %v456_v50  ;;  %v492_v53 = vmax.f32 %v454_v46, 0.0 }
  0xfa   : > { %v495_v52 = vmax.f32 %v465_v49, 0.0 }
  0xfb   : > { %v493_v54 = vmax.f32 %v457_v51, 0.0  ;;  %v679_v51 = vunpack.c.l.bf16 %v1394_v9 }
  0xfc   : > { %v505_v55 = vpack.c.bf16 %v495_v52, %v494_v48 }
  0xfd   : > { %v504_v56 = vpack.c.bf16 %v493_v54, %v492_v53  ;;  %v1210_v57 = vpop.f32.mrb[12].mxu0  ;;  %v680_v54 = vunpack.c.h.bf16 %v1394_v9 }
  0xfe   : > { %v478_v58 = vadd.f32 %v1210_v57, %v1102_v14  ;;  %v469_v59 = vpop.f32.mrb[13].mxu0 }
  0xff   : > { %v470_v60 = vadd.f32 %v1102_v14, %v469_v59  ;;  %v1211_v61 = vpop.f32.mrb[14].mxu0  ;;  %1228 = vmatprep.mubr.msk.bf16.mxu1 %vm547_vm1, %v504_v56 }
 0x100   : > { %v498_v62 = vmax.f32 %v478_v58, 0.0  ;;  %v481_v63 = vadd.f32 %v1211_v61, %v1102_v14  ;;  %v472_v0 = vpop.f32.mrb[15].mxu0  ;;  %1229 = vmatmul.mubr.msk.bf16.gmra.mrb[8].mxu1 %vm547_vm1, %v505_v55  ;;  %v677_v58 = vunpack.c.l.bf16 %v1388_v8 }
 0x101   : > { %v473_v1 = vadd.f32 %v1102_v14, %v472_v0  ;;  %v496_v3 = vmax.f32 %v470_v60, 0.0 }
 0x102   : > { %v499_v2 = vmax.f32 %v481_v63, 0.0  ;;  %v678_v63 = vunpack.c.h.bf16 %v1388_v8  ;;  %v681_v8 = vunpack.c.l.bf16 %v1396_v10 }
 0x103   : > { %v497_v12 = vmax.f32 %v473_v1, 0.0 }
 0x104   : > { %v507_v13 = vpack.c.bf16 %v499_v2, %v498_v62 }
 0x105   : > { %v506_v15 = vpack.c.bf16 %v497_v12, %v496_v3 }
 0x107   : > { %1232 = vmatprep.mubr.msk.bf16.mxu1 %vm547_vm1, %v506_v15 }
 0x108   : > { %1233 = vmatmul.mubr.msk.bf16.gmra.mrb[12].mxu1 %vm547_vm1, %v507_v13 }
 0x1c3   : > { %v1222_v19 = vpop.f32.mrb[0].mxu1 }
 0x1c4   : > { %v615_v14 = vadd.f32 %v1222_v19, %v1426_v16  ;;  %v606_v20 = vpop.f32.mrb[1].mxu1 }
 0x1c5   : > { %v607_v23 = vadd.f32 %v1426_v16, %v606_v20  ;;  %v1223_v24 = vpop.f32.mrb[2].mxu1 }
 0x1c6   : > { %v618_v25 = vadd.f32 %v1223_v24, %v1426_v16  ;;  %v609_v26 = vpop.f32.mrb[3].mxu1  ;;  %v1435_v27 = vadd.f32 %v671_v17, %v615_v14  ;;  %v683_v17 = vunpack.c.l.bf16 %v1402_v11 }
 0x1c7   : > { %v610_v28 = vadd.f32 %v1426_v16, %v609_v26  ;;  %v1438_v29 = vadd.f32 %v669_v18, %v607_v23 }
 0x1c8   : > { %v707_v30 = vsel %vm362_vm0, %v1435_v27, 0.0  ;;  %v1442_v31 = vadd.f32 %v672_v21, %v618_v25  ;;  %v682_v21 = vunpack.c.h.bf16 %v1396_v10 }
 0x1c9   : > { %708 = vadd.xlane.f32.xlu1 %v707_v30  ;;  %v701_v4 = vsel %vm362_vm0, %v1438_v29, 0.0  ;;  %v1446_v5 = vadd.f32 %v670_v22, %v610_v28  ;;  %v684_v28 = vunpack.c.h.bf16 %v1402_v11 }
 0x1ca   : > { %702 = vadd.xlane.f32.xlu0 %v701_v4  ;;  %v710_v36 = vsel %vm362_vm0, %v1442_v31, 0.0 }
 0x1cb   : > { %v1226_v33 = vpop.f32.mrb[4].mxu1  ;;  %v704_v40 = vsel %vm362_vm0, %v1446_v5, 0.0 }
 0x1cc   : > { %v631_v34 = vadd.f32 %v1226_v33, %v1426_v16  ;;  %v622_v35 = vpop.f32.mrb[5].mxu1 }
 0x1cd   : > { %v623_v38 = vadd.f32 %v1426_v16, %v622_v35  ;;  %711 = vadd.xlane.f32.xlu1 %v710_v36  ;;  %v1227_v39 = vpop.f32.mrb[6].mxu1 }
 0x1ce   : > { %v634_v42 = vadd.f32 %v1227_v39, %v1426_v16  ;;  %v625_v43 = vpop.f32.mrb[7].mxu1  ;;  %705 = vadd.xlane.f32.xlu0 %v704_v40  ;;  %v1458_v44 = vadd.f32 %v675_v32, %v631_v34 }
 0x1cf   : > { %v626_v46 = vadd.f32 %v1426_v16, %v625_v43  ;;  %v1466_v48 = vadd.f32 %v673_v41, %v623_v38 }
 0x1d0   : > { %v719_v7 = vsel %vm362_vm0, %v1458_v44, 0.0  ;;  %v1464_v47 = vadd.f32 %v676_v37, %v634_v42 }
 0x1d1   : > { %v1470_v50 = vadd.f32 %v674_v45, %v626_v46  ;;  %v713_v57 = vsel %vm362_vm0, %v1466_v48, 0.0 }
 0x1d2   : > { %720 = vadd.xlane.f32.xlu0 %v719_v7  ;;  %v722_v49 = vsel %vm362_vm0, %v1464_v47, 0.0 }
 0x1d3   : > { %723 = vadd.xlane.f32.xlu1 %v722_v49  ;;  %v1230_v52 = vpop.f32.mrb[8].mxu1  ;;  %v716_v61 = vsel %vm362_vm0, %v1470_v50, 0.0 }
 0x1d4   : > { %v647_v6 = vadd.f32 %v1230_v52, %v1426_v16  ;;  %v638_v53 = vpop.f32.mrb[9].mxu1 }
 0x1d5   : > { %v639_v55 = vadd.f32 %v1426_v16, %v638_v53  ;;  %v1231_v56 = vpop.f32.mrb[10].mxu1 }
 0x1d6   : > { %v650_v59 = vadd.f32 %v1231_v56, %v1426_v16  ;;  %v641_v60 = vpop.f32.mrb[11].mxu1  ;;  %714 = vadd.xlane.f32.xlu0 %v713_v57  ;;  %v1482_v62 = vadd.f32 %v679_v51, %v647_v6 }
 0x1d7   : > { %v642_v9 = vadd.f32 %v1426_v16, %v641_v60  ;;  %717 = vadd.xlane.f32.xlu1 %v716_v61  ;;  %v1490_v2 = vadd.f32 %v677_v58, %v639_v55 }
 0x1d8   : > { %v731_v0 = vsel %vm362_vm0, %v1482_v62, 0.0  ;;  %v1488_v1 = vadd.f32 %v680_v54, %v650_v59 }
 0x1d9   : > { %v1494_v12 = vadd.f32 %v678_v63, %v642_v9  ;;  %v725_v20 = vsel %vm362_vm0, %v1490_v2, 0.0 }
 0x1da   : > { %732 = vadd.xlane.f32.xlu0 %v731_v0  ;;  %v734_v3 = vsel %vm362_vm0, %v1488_v1, 0.0 }
 0x1db   : > { %v1234_v13 = vpop.f32.mrb[12].mxu1  ;;  %735 = vadd.xlane.f32.xlu1 %v734_v3  ;;  %v728_v23 = vsel %vm362_vm0, %v1494_v12, 0.0 }
 0x1dc   : > { %v654_v15 = vpop.f32.mrb[13].mxu1  ;;  %v663_v18 = vadd.f32 %v1234_v13, %v1426_v16 }
 0x1dd   : > { %v655_v19 = vadd.f32 %v1426_v16, %v654_v15  ;;  %v1235_v14 = vpop.f32.mrb[14].mxu1 }
 0x1de   : > { %v657_v22 = vpop.f32.mrb[15].mxu1  ;;  %726 = vadd.xlane.f32.xlu0 %v725_v20  ;;  %v666_v24 = vadd.f32 %v1235_v14, %v1426_v16  ;;  %v1514_v10 = vadd.f32 %v683_v17, %v663_v18 }
 0x1df   : > { %v658_v25 = vadd.f32 %v1426_v16, %v657_v22  ;;  %729 = vadd.xlane.f32.xlu1 %v728_v23  ;;  %v1507_v26 = vadd.f32 %v681_v8, %v655_v19 }
 0x1e0   : > { %v1518_v33 = vadd.f32 %v684_v28, %v666_v24  ;;  %v743_v16 = vsel %vm362_vm0, %v1514_v10, 0.0 }
 0x1e1   : > { %v737_v30 = vsel %vm362_vm0, %v1507_v26, 0.0  ;;  %v1512_v4 = vadd.f32 %v682_v21, %v658_v25 }
 0x1e2   : > { %738 = vadd.xlane.f32.xlu0 %v737_v30  ;;  %v746_v11 = vsel %vm362_vm0, %v1518_v33, 0.0 }
 0x1e3   : > { %v740_v32 = vsel %vm362_vm0, %v1512_v4, 0.0 }
 0x1e4   : > { %741 = vadd.xlane.f32.xlu1 %v740_v32 }
 0x1e6   : > { %744 = vadd.xlane.f32.xlu0 %v743_v16 }
 0x1e8   : > { %747 = vadd.xlane.f32.xlu1 %v746_v11 }
 0x256   : > { %v709_v34 = vpop.xlane.xlu1 %708 }
 0x257   : > { %v752_v35 = vmul.f32 0.03125, %v709_v34  ;;  %v703_v36 = vpop.xlane.xlu0 %702 }
 0x258   : > { %v750_v37 = vmul.f32 0.03125, %v703_v36 }
 0x259   : > { %v1525_v38 = vsub.f32 %v1435_v27, %v752_v35 }
 0x25a   : > { %v1528_v39 = vsub.f32 %v1438_v29, %v750_v37  ;;  %v712_v40 = vpop.xlane.xlu1 %711 }
 0x25b   : > { %v753_v41 = vmul.f32 0.03125, %v712_v40  ;;  %v706_v42 = vpop.xlane.xlu0 %705  ;;  %v784_v43 = vmul.f32 %v1525_v38, %v1525_v38 }
 0x25c   : > { %v751_v45 = vmul.f32 0.03125, %v706_v42  ;;  %v782_v49 = vmul.f32 %v1528_v39, %v1528_v39 }
 0x25d   : > { %v1533_v46 = vsub.f32 %v1442_v31, %v753_v41  ;;  %v804_v7 = vsel %vm362_vm0, %v784_v43, 0.0 }
 0x25e   : > { %v1539_v27 = vsub.f32 %v1446_v5, %v751_v45  ;;  %805 = vadd.xlane.f32.xlu0 %v804_v7  ;;  %v798_v31 = vsel %vm362_vm0, %v782_v49, 0.0 }
 0x25f   : > { %v721_v29 = vpop.xlane.xlu0 %720  ;;  %v785_v51 = vmul.f32 %v1533_v46, %v1533_v46 }
 0x260   : > { %v756_v52 = vmul.f32 0.03125, %v721_v29  ;;  %v724_v6 = vpop.xlane.xlu1 %723  ;;  %v783_v55 = vmul.f32 %v1539_v27, %v1539_v27 }
 0x261   : > { %v757_v53 = vmul.f32 0.03125, %v724_v6  ;;  %v807_v54 = vsel %vm362_vm0, %v785_v51, 0.0 }
 0x262   : > { %v1548_v56 = vsub.f32 %v1458_v44, %v756_v52  ;;  %808 = vadd.xlane.f32.xlu1 %v807_v54  ;;  %799 = vadd.xlane.f32.xlu0 %v798_v31  ;;  %v801_v63 = vsel %vm362_vm0, %v783_v55, 0.0 }
 0x263   : > { %v1551_v5 = vsub.f32 %v1464_v47, %v757_v53  ;;  %v715_v57 = vpop.xlane.xlu0 %714 }
 0x264   : > { %v754_v58 = vmul.f32 0.03125, %v715_v57  ;;  %v718_v59 = vpop.xlane.xlu1 %717  ;;  %v788_v60 = vmul.f32 %v1548_v56, %v1548_v56 }
 0x265   : > { %v755_v61 = vmul.f32 0.03125, %v718_v59  ;;  %v789_v9 = vmul.f32 %v1551_v5, %v1551_v5 }
 0x266   : > { %v1559_v44 = vsub.f32 %v1466_v48, %v754_v58  ;;  %802 = vadd.xlane.f32.xlu1 %v801_v63  ;;  %v816_v0 = vsel %vm362_vm0, %v788_v60, 0.0 }
 0x267   : > { %v1563_v47 = vsub.f32 %v1470_v50, %v755_v61  ;;  %817 = vadd.xlane.f32.xlu0 %v816_v0  ;;  %v733_v3 = vpop.xlane.xlu0 %732  ;;  %v819_v18 = vsel %vm362_vm0, %v789_v9, 0.0 }
 0x268   : > { %v760_v13 = vmul.f32 0.03125, %v733_v3  ;;  %v736_v8 = vpop.xlane.xlu1 %735  ;;  %v786_v15 = vmul.f32 %v1559_v44, %v1559_v44 }
 0x269   : > { %v761_v17 = vmul.f32 0.03125, %v736_v8  ;;  %v787_v48 = vmul.f32 %v1563_v47, %v1563_v47 }
 0x26a   : > { %v1571_v19 = vsub.f32 %v1482_v62, %v760_v13  ;;  %820 = vadd.xlane.f32.xlu1 %v819_v18  ;;  %v810_v50 = vsel %vm362_vm0, %v786_v15, 0.0 }
 0x26b   : > { %v1575_v14 = vsub.f32 %v1488_v1, %v761_v17  ;;  %811 = vadd.xlane.f32.xlu0 %v810_v50  ;;  %v727_v20 = vpop.xlane.xlu0 %726  ;;  %v813_v25 = vsel %vm362_vm0, %v787_v48, 0.0 }
 0x26c   : > { %v758_v21 = vmul.f32 0.03125, %v727_v20  ;;  %v730_v22 = vpop.xlane.xlu1 %729  ;;  %v792_v23 = vmul.f32 %v1571_v19, %v1571_v19 }
 0x26d   : > { %v759_v24 = vmul.f32 0.03125, %v730_v22  ;;  %v793_v62 = vmul.f32 %v1575_v14, %v1575_v14 }
 0x26e   : > { %v1583_v28 = vsub.f32 %v1490_v2, %v758_v21  ;;  %814 = vadd.xlane.f32.xlu1 %v813_v25  ;;  %v828_v1 = vsel %vm362_vm0, %v792_v23, 0.0  ;;  %v1623_v21 = vld [vmem:[%s1725_s5] ss:$0 sm:$0xff] }
 0x26f   : > { %v1587_v30 = vsub.f32 %v1494_v12, %v759_v24  ;;  %829 = vadd.xlane.f32.xlu0 %v828_v1  ;;  %v739_v32 = vpop.xlane.xlu0 %738  ;;  %v831_v35 = vsel %vm362_vm0, %v793_v62, 0.0  ;;  %v1629_v62 = vld [vmem:[%s1726_s6] ss:$0 sm:$0xff] }
 0x270   : > { %v762_v16 = vmul.f32 0.03125, %v739_v32  ;;  %v790_v11 = vmul.f32 %v1583_v28, %v1583_v28 }
 0x271   : > { %v742_v34 = vpop.xlane.xlu1 %741  ;;  %v791_v36 = vmul.f32 %v1587_v30, %v1587_v30 }
 0x272   : > { %v1595_v2 = vsub.f32 %v1507_v26, %v762_v16  ;;  %v763_v37 = vmul.f32 0.03125, %v742_v34  ;;  %832 = vadd.xlane.f32.xlu1 %v831_v35  ;;  %v822_v12 = vsel %vm362_vm0, %v790_v11, 0.0 }
 0x273   : > { %823 = vadd.xlane.f32.xlu0 %v822_v12  ;;  %v745_v40 = vpop.xlane.xlu0 %744  ;;  %v825_v7 = vsel %vm362_vm0, %v791_v36, 0.0 }
 0x274   : > { %v1599_v41 = vsub.f32 %v1512_v4, %v763_v37  ;;  %v764_v42 = vmul.f32 0.03125, %v745_v40  ;;  %v794_v43 = vmul.f32 %v1595_v2, %v1595_v2 }
 0x275   : > { %v748_v45 = vpop.xlane.xlu1 %747 }
 0x276   : > { %v1605_v49 = vsub.f32 %v1514_v10, %v764_v42  ;;  %v765_v26 = vmul.f32 0.03125, %v748_v45  ;;  %826 = vadd.xlane.f32.xlu1 %v825_v7  ;;  %v834_v29 = vsel %vm362_vm0, %v794_v43, 0.0  ;;  %v795_v51 = vmul.f32 %v1599_v41, %v1599_v41 }
 0x277   : > { %835 = vadd.xlane.f32.xlu0 %v834_v29 }
 0x278   : > { %v1611_v4 = vsub.f32 %v1518_v33, %v765_v26  ;;  %v837_v52 = vsel %vm362_vm0, %v795_v51, 0.0  ;;  %v796_v6 = vmul.f32 %v1605_v49, %v1605_v49 }
 0x27a   : > { %838 = vadd.xlane.f32.xlu1 %v837_v52  ;;  %v840_v10 = vsel %vm362_vm0, %v796_v6, 0.0  ;;  %v797_v53 = vmul.f32 %v1611_v4, %v1611_v4 }
 0x27b   : > { %841 = vadd.xlane.f32.xlu0 %v840_v10 }
 0x27c   : > { %v843_v54 = vsel %vm362_vm0, %v797_v53, 0.0 }
 0x27e   : > { %844 = vadd.xlane.f32.xlu1 %v843_v54 }
 0x2eb   : > { %v806_v31 = vpop.xlane.xlu0 %805 }
 0x2ec   : > { %v848_v55 = vmul.f32 0.03125, %v806_v31 }
 0x2ee   : > { %v864_v57 = vadd.f32 1e-05, %v848_v55 }
 0x2ef   : > { %v809_v33 = vpop.xlane.xlu1 %808  ;;  %v800_v58 = vpop.xlane.xlu0 %799 }
 0x2f0   : > { %1266 = vrsqrt.f32 %v864_v57  ;;  %v849_v59 = vmul.f32 0.03125, %v809_v33  ;;  %v846_v60 = vmul.f32 0.03125, %v800_v58 }
 0x2f2   : > { %v865_v61 = vadd.f32 1e-05, %v849_v59  ;;  %v862_v63 = vadd.f32 1e-05, %v846_v60 }
 0x2f3   : > { %v803_v9 = vpop.xlane.xlu1 %802 }
 0x2f4   : > { %1268 = vrsqrt.f32 %v865_v61  ;;  %v847_v0 = vmul.f32 0.03125, %v803_v9  ;;  %v818_v3 = vpop.xlane.xlu0 %817 }
 0x2f5   : > { %1270 = vrsqrt.f32 %v862_v63  ;;  %v852_v13 = vmul.f32 0.03125, %v818_v3 }
 0x2f6   : > { %v863_v8 = vadd.f32 1e-05, %v847_v0 }
 0x2f7   : > { %v868_v15 = vadd.f32 1e-05, %v852_v13  ;;  %v821_v17 = vpop.xlane.xlu1 %820 }
 0x2f8   : > { %1272 = vrsqrt.f32 %v863_v8  ;;  %v853_v18 = vmul.f32 0.03125, %v821_v17  ;;  %v812_v48 = vpop.xlane.xlu0 %811 }
 0x2f9   : > { %1274 = vrsqrt.f32 %v868_v15  ;;  %v850_v50 = vmul.f32 0.03125, %v812_v48 }
 0x2fa   : > { %v1267_v20 = vpop.eup %1266  ;;  %v869_v22 = vadd.f32 1e-05, %v853_v18 }
 0x2fb   : > { %v896_v23 = vmul.f32 %v1267_v20, %v1525_v38  ;;  %v866_v24 = vadd.f32 1e-05, %v850_v50  ;;  %v815_v25 = vpop.xlane.xlu1 %814 }
 0x2fc   : > { %1276 = vrsqrt.f32 %v869_v22  ;;  %v851_v1 = vmul.f32 0.03125, %v815_v25  ;;  %v830_v32 = vpop.xlane.xlu0 %829 }
 0x2fd   : > { %v919_v16 = vmul.f32 %v1623_v21, %v896_v23  ;;  %1278 = vrsqrt.f32 %v866_v24  ;;  %v856_v11 = vmul.f32 0.03125, %v830_v32 }
 0x2fe   : > { %v1269_v34 = vpop.eup %1268  ;;  %v867_v35 = vadd.f32 1e-05, %v851_v1 }
 0x2ff   : > { %v1271_v36 = vpop.eup %1270  ;;  %v942_v38 = vadd.f32 %v1629_v62, %v919_v16  ;;  %v897_v37 = vmul.f32 %v1269_v34, %v1533_v46  ;;  %v872_v12 = vadd.f32 1e-05, %v856_v11  ;;  %v833_v40 = vpop.xlane.xlu1 %832 }
 0x300   : > { %v894_v42 = vmul.f32 %v1271_v36, %v1528_v39  ;;  %1280 = vrsqrt.f32 %v867_v35  ;;  %v857_v43 = vmul.f32 0.03125, %v833_v40  ;;  %v824_v45 = vpop.xlane.xlu0 %823 }
 0x301   : > { %v1156_v7 = vpack.c.bf16 %v942_v38, %v942_v38  ;;  %v920_v26 = vmul.f32 %v1623_v21, %v897_v37  ;;  %1282 = vrsqrt.f32 %v872_v12  ;;  %v854_v46 = vmul.f32 0.03125, %v824_v45 }
 0x302   : > { %v1273_v29 = vpop.eup %1272  ;;  %v917_v51 = vmul.f32 %v1623_v21, %v894_v42  ;;  %v873_v52 = vadd.f32 1e-05, %v857_v43 }
 0x303   : > { %v1275_v6 = vpop.eup %1274  ;;  %1023 = vst.msk [vmem:[%s1639_s9 + $0x8] sm:$0xf] %vm1020_vm2, %v1156_v7  ;;  %v943_v10 = vadd.f32 %v1629_v62, %v920_v26  ;;  %v895_v53 = vmul.f32 %v1273_v29, %v1539_v27  ;;  %v870_v39 = vadd.f32 1e-05, %v854_v46  ;;  %v827_v54 = vpop.xlane.xlu1 %826 }
 0x304   : > { %v940_v31 = vadd.f32 %v1629_v62, %v917_v51  ;;  %v900_v55 = vmul.f32 %v1275_v6, %v1548_v56  ;;  %1284 = vrsqrt.f32 %v873_v52  ;;  %v855_v57 = vmul.f32 0.03125, %v827_v54  ;;  %v836_v33 = vpop.xlane.xlu0 %835 }
 0x305   : > { %v1157_v58 = vpack.c.bf16 %v943_v10, %v943_v10  ;;  %v918_v59 = vmul.f32 %v1623_v21, %v895_v53  ;;  %1286 = vrsqrt.f32 %v870_v39  ;;  %v858_v60 = vmul.f32 0.03125, %v836_v33 }
 0x306   : > { %v1277_v61 = vpop.eup %1276  ;;  %v1154_v63 = vpack.c.bf16 %v940_v31, %v940_v31  ;;  %v923_v27 = vmul.f32 %v1623_v21, %v900_v55  ;;  %v871_v9 = vadd.f32 1e-05, %v855_v57 }
 0x307   : > { %v1279_v0 = vpop.eup %1278  ;;  %1024 = vst.msk [vmem:[%s1639_s9 + $0xc] sm:$0xf] %vm1020_vm2, %v1157_v58  ;;  %v941_v3 = vadd.f32 %v1629_v62, %v918_v59  ;;  %v901_v56 = vmul.f32 %v1277_v61, %v1551_v5  ;;  %v874_v13 = vadd.f32 1e-05, %v858_v60  ;;  %v839_v8 = vpop.xlane.xlu1 %838 }
 0x308   : > { %1021 = vst.msk [vmem:[%s1639_s9] sm:$0xf] %vm1020_vm2, %v1154_v63  ;;  %v946_v15 = vadd.f32 %v1629_v62, %v923_v27  ;;  %v898_v17 = vmul.f32 %v1279_v0, %v1559_v44  ;;  %1288 = vrsqrt.f32 %v871_v9  ;;  %v859_v18 = vmul.f32 0.03125, %v839_v8  ;;  %v842_v48 = vpop.xlane.xlu0 %841 }
 0x309   : > { %v1155_v50 = vpack.c.bf16 %v941_v3, %v941_v3  ;;  %v924_v20 = vmul.f32 %v1623_v21, %v901_v56  ;;  %1290 = vrsqrt.f32 %v874_v13  ;;  %v860_v22 = vmul.f32 0.03125, %v842_v48 }
 0x30a   : > { %v1281_v23 = vpop.eup %1280  ;;  %v1160_v5 = vpack.c.bf16 %v946_v15, %v946_v15  ;;  %v921_v24 = vmul.f32 %v1623_v21, %v898_v17  ;;  %v875_v25 = vadd.f32 1e-05, %v859_v18 }
 0x30b   : > { %v1283_v1 = vpop.eup %1282  ;;  %1022 = vst.msk [vmem:[%s1639_s9 + $0x4] sm:$0xf] %vm1020_vm2, %v1155_v50  ;;  %v947_v32 = vadd.f32 %v1629_v62, %v924_v20  ;;  %v899_v44 = vmul.f32 %v1281_v23, %v1563_v47  ;;  %v876_v16 = vadd.f32 1e-05, %v860_v22  ;;  %v845_v11 = vpop.xlane.xlu1 %844 }
 0x30c   : > { %1027 = vst.msk [vmem:[%s1639_s9 + $0x18] sm:$0xf] %vm1020_vm2, %v1160_v5  ;;  %v944_v34 = vadd.f32 %v1629_v62, %v921_v24  ;;  %v904_v35 = vmul.f32 %v1283_v1, %v1571_v19  ;;  %1292 = vrsqrt.f32 %v875_v25  ;;  %v861_v36 = vmul.f32 0.03125, %v845_v11 }
 0x30d   : > { %v1161_v38 = vpack.c.bf16 %v947_v32, %v947_v32  ;;  %v922_v37 = vmul.f32 %v1623_v21, %v899_v44  ;;  %1294 = vrsqrt.f32 %v876_v16 }
 0x30e   : > { %v1285_v12 = vpop.eup %1284  ;;  %v1158_v40 = vpack.c.bf16 %v944_v34, %v944_v34  ;;  %v927_v47 = vmul.f32 %v1623_v21, %v904_v35  ;;  %v877_v42 = vadd.f32 1e-05, %v861_v36 }
 0x30f   : > { %v1287_v43 = vpop.eup %1286  ;;  %1028 = vst.msk [vmem:[%s1639_s9 + $0x1c] sm:$0xf] %vm1020_vm2, %v1161_v38  ;;  %v945_v45 = vadd.f32 %v1629_v62, %v922_v37  ;;  %v905_v19 = vmul.f32 %v1285_v12, %v1575_v14 }
 0x310   : > { %1025 = vst.msk [vmem:[%s1639_s9 + $0x10] sm:$0xf] %vm1020_vm2, %v1158_v40  ;;  %v950_v7 = vadd.f32 %v1629_v62, %v927_v47  ;;  %v902_v26 = vmul.f32 %v1287_v43, %v1583_v28  ;;  %1296 = vrsqrt.f32 %v877_v42 }
 0x311   : > { %v1159_v46 = vpack.c.bf16 %v945_v45, %v945_v45  ;;  %v928_v29 = vmul.f32 %v1623_v21, %v905_v19 }
 0x312   : > { %v1289_v51 = vpop.eup %1288  ;;  %v1164_v52 = vpack.c.bf16 %v950_v7, %v950_v7  ;;  %v925_v6 = vmul.f32 %v1623_v21, %v902_v26 }
 0x313   : > { %v1291_v10 = vpop.eup %1290  ;;  %1026 = vst.msk [vmem:[%s1639_s9 + $0x14] sm:$0xf] %vm1020_vm2, %v1159_v46  ;;  %v951_v14 = vadd.f32 %v1629_v62, %v928_v29  ;;  %v903_v53 = vmul.f32 %v1289_v51, %v1587_v30 }
 0x314   : > { %1031 = vst.msk [vmem:[%s1639_s9 + $0x28] sm:$0xf] %vm1020_vm2, %v1164_v52  ;;  %v948_v28 = vadd.f32 %v1629_v62, %v925_v6  ;;  %v906_v39 = vmul.f32 %v1291_v10, %v1595_v2 }
 0x315   : > { %v1165_v54 = vpack.c.bf16 %v951_v14, %v951_v14  ;;  %v926_v31 = vmul.f32 %v1623_v21, %v903_v53 }
 0x316   : > { %v1293_v55 = vpop.eup %1292  ;;  %v1162_v57 = vpack.c.bf16 %v948_v28, %v948_v28  ;;  %v929_v33 = vmul.f32 %v1623_v21, %v906_v39 }
 0x317   : > { %v1295_v58 = vpop.eup %1294  ;;  %1032 = vst.msk [vmem:[%s1639_s9 + $0x2c] sm:$0xf] %vm1020_vm2, %v1165_v54  ;;  %v949_v30 = vadd.f32 %v1629_v62, %v926_v31  ;;  %v907_v59 = vmul.f32 %v1293_v55, %v1599_v41 }
 0x318   : > { %1029 = vst.msk [vmem:[%s1639_s9 + $0x20] sm:$0xf] %vm1020_vm2, %v1162_v57  ;;  %v952_v2 = vadd.f32 %v1629_v62, %v929_v33  ;;  %v908_v60 = vmul.f32 %v1295_v58, %v1605_v49 }
 0x319   : > { %v1163_v61 = vpack.c.bf16 %v949_v30, %v949_v30  ;;  %v930_v63 = vmul.f32 %v1623_v21, %v907_v59 }
 0x31a   : > { %v1297_v27 = vpop.eup %1296  ;;  %v1166_v9 = vpack.c.bf16 %v952_v2, %v952_v2  ;;  %v931_v0 = vmul.f32 %v1623_v21, %v908_v60 }
 0x31b   : > { %1030 = vst.msk [vmem:[%s1639_s9 + $0x24] sm:$0xf] %vm1020_vm2, %v1163_v61  ;;  %v953_v41 = vadd.f32 %v1629_v62, %v930_v63  ;;  %v909_v3 = vmul.f32 %v1297_v27, %v1611_v4 }
 0x31c   : > { %1033 = vst.msk [vmem:[%s1639_s9 + $0x30] sm:$0xf] %vm1020_vm2, %v1166_v9  ;;  %v954_v56 = vadd.f32 %v1629_v62, %v931_v0 }
 0x31d   : > { %v1167_v49 = vpack.c.bf16 %v953_v41, %v953_v41  ;;  %v932_v13 = vmul.f32 %v1623_v21, %v909_v3 }
 0x31e   : > { %v1168_v8 = vpack.c.bf16 %v954_v56, %v954_v56 }
 0x31f   : > { %1034 = vst.msk [vmem:[%s1639_s9 + $0x34] sm:$0xf] %vm1020_vm2, %v1167_v49  ;;  %v955_v15 = vadd.f32 %v1629_v62, %v932_v13 }
 0x320   : > { %1035 = vst.msk [vmem:[%s1639_s9 + $0x38] sm:$0xf] %vm1020_vm2, %v1168_v8 }
 0x321   : > { %v1169_v17 = vpack.c.bf16 %v955_v15, %v955_v15 }
 0x323   : > { %1036 = vst.msk [vmem:[%s1639_s9 + $0x3c] sm:$0xf] %vm1020_vm2, %v1169_v17 }
 0x324 PF: > { %s17_s24 = sadd.s32 1, %s1304_s24  }
 0x325   : > { %p14_p4 = scmp.ge.s32.totalorder %s17_s24, 4  }
 0x327   :  { %16 = sbr.rel (!%p14_p4) target bundleno = 1 (0x1), region = 78 }

// kernel: mccformers_s_forward.6
= control target key start
LH: loop header
LB: loop body
LE: loop exit
PB: predicated region body
PF: predicated region fallthrough
CT: control target
= control target key end

     0   :  { %s2800_s17 = smov 0   ;;  %s2802_s18 = smov 0   ;;  %s3541_s0 = inlined_call_operand.vmem [shape: bf16[2,128,32], index: 0, kind: input, shape index: {}]   ;;  %s3542_s1 = inlined_call_operand.vmem [shape: bf16[4,32,8], index: 1, kind: input, shape index: {}]   ;;  %s3543_s2 = inlined_call_operand.vmem [shape: bf16[4,32,8], index: 2, kind: input, shape index: {}]   ;;  %s3544_s3 = inlined_call_operand.vmem [shape: bf16[4,32,8], index: 3, kind: input, shape index: {}]   ;;  %s3545_s4 = inlined_call_operand.vmem [shape: f32[4,1,8], index: 4, kind: input, shape index: {}]   ;;  %s3546_s5 = inlined_call_operand.vmem [shape: f32[4,1,8], index: 5, kind: input, shape index: {}]   ;;  %s3547_s6 = inlined_call_operand.vmem [shape: f32[4,1,8], index: 6, kind: input, shape index: {}]   ;;  %s3548_s7 = inlined_call_operand.vmem [shape: bf16[4,8,32], index: 7, kind: input, shape index: {}]   ;;  %s3549_s8 = inlined_call_operand.vmem [shape: f32[1,32], index: 8, kind: input, shape index: {}]   ;;  %s3550_s9 = inlined_call_operand.vmem [shape: f32[1,32], index: 9, kind: input, shape index: {}]   ;;  %s3551_s10 = inlined_call_operand.vmem [shape: f32[1,32], index: 10, kind: input, shape index: {}]   ;;  %s3552_s11 = inlined_call_operand.vmem [shape: bf16[2,128,32], index: 11, kind: output, shape index: {}]  }
   0x1   :  { %3556 = sst [smem:[#allocation8_spill]] %s3541_s0  ;;  %s2804_s19 = smov 0  }
   0x2   :  { %3557 = sst [smem:[#allocation9_spill]] %s3542_s1  ;;  %s2806_s20 = smov 0  }
   0x3   :  { %3558 = sst [smem:[#allocation10_spill]] %s3543_s2  ;;  %s2808_s21 = smov 0  }
   0x4   :  { %3559 = sst [smem:[#allocation11_spill]] %s3551_s10 }
   0x5 LB: > { %3560 = sst [smem:[#allocation3_spill]] %s2729_s19  ;;  %s30_s22 = sadd.s32 1, %s2729_s19  ;;  %s2737_s21 = sphi %s2808_s21, %s21_s21   ;;  %s2733_s20 = sphi %s2806_s20, %s3573_s20   ;;  %s2729_s19 = sphi %s2804_s19, %s3572_s19   ;;  %s2725_s18 = sphi %s2802_s18, %s3571_s18   ;;  %s2721_s17 = sphi %s2800_s17, %s3570_s17  }
   0x6   : > { %3561 = sst [smem:[#allocation4_spill]] %s2733_s20  ;;  %s33_s23 = sadd.s32 1, %s2733_s20 }
   0x7   : > { %3562 = sst [smem:[#allocation5_spill]] %s2737_s21  ;;  %p31_p0 = scmp.ge.s32.totalorder %s30_s22, 4 }
   0x8   : > { %p2170_p1 = scmp.ge.s32.totalorder %s2737_s21, 1  ;;  %p412_p2 = scmp.lt.s32.totalorder %s2737_s21, 9 }
   0x9   : > { %s3575_s22 = smov (%p31_p0, %s30_s22), 0  ;;  %s3577_s23 = smov (!%p31_p0, %s33_s23), %s2733_s20 }
   0xa   : > { %3563 = sst [smem:[#allocation6_spill]] %s3575_s22  ;;  %p413_p3 = pnand %p2170_p1, %p412_p2 }
   0xb   : > { %p35_p4 = scmp.ge.s32.totalorder %s3577_s23, 2  ;;  %p480_p5 = scmp.lt.s32.totalorder (!%p413_p3), %s2725_s18, 1 }
   0xc   : > { %416 = sbr.rel (%p413_p3) target bundleno = 1665 (0x681), region = 64  ;;  %p485_p6 = scmp.lt.s32.totalorder (!%p413_p3), %s2721_s17, 3 }
   0xd   : > { %s3579_s23 = smov (%p35_p4, %s3577_s23), 0  ;;  %s3565_s0 = sld [smem:[#allocation8_spill]] (!%p413_p3) }
   0xe   : > { %3564 = sst [smem:[#allocation7_spill]] %s3579_s23  ;;  %s3566_s1 = sld [smem:[#allocation9_spill]] (!%p413_p3) }
   0xf   : > { %s3567_s2 = sld [smem:[#allocation10_spill]] (!%p413_p3)  ;;  %p2182_p7 = scmp.ne.s32.totalorder (!%p413_p3), %s2721_s17, 0 }
  0x13   : > { %s3581_s18 = smov (!%p480_p5, %s2725_s18), 1  ;;  %vm523_vm0 = vcmask (!%p2182_p7), 261120   ;;  %v2739_v0 = vmov (!%p2182_p7), 0.0  }
  0x14   : > { %s2834_s24 = scalar_select %p485_p6, %s2721_s17, 3 }
  0x15   : > { %s2262_s25 = sshll.u32 %s3581_s18, 6  ;;  %522 = sbr.rel (%p2182_p7) target bundleno = 29 (0x1d), region = 68  ;;  %524 = vst.msk [vmem:[#allocation2] sm:$0xff] (!%p2182_p7), %vm523_vm0, %v2739_v0  ;;  %525 = vst.msk [vmem:[#allocation2 + $0x8] sm:$0xff] (!%p2182_p7), %vm523_vm0, %v2739_v0 }
  0x16   : > { %s2839_s28 = scalar_lea.vmem %s3565_s0, %s2262_s25  ;;  %s2263_s29 = sshll.u32 %s2834_s24, 4  ;;  %526 = vst.msk [vmem:[#allocation2 + $0x10] sm:$0xff] (!%p2182_p7), %vm523_vm0, %v2739_v0  ;;  %527 = vst.msk [vmem:[#allocation2 + $0x18] sm:$0xff] (!%p2182_p7), %vm523_vm0, %v2739_v0 }
  0x17   : > { %s2845_s13 = scalar_lea.vmem %s3566_s1, %s2263_s29  ;;  %s2850_s16 = scalar_lea.vmem %s3567_s2, %s2263_s29  ;;  %528 = vst.msk [vmem:[#allocation2 + $0x20] sm:$0xff] (!%p2182_p7), %vm523_vm0, %v2739_v0  ;;  %529 = vst.msk [vmem:[#allocation2 + $0x28] sm:$0xff] (!%p2182_p7), %vm523_vm0, %v2739_v0 }
  0x18   : > { %s2855_s18 = scalar_lea.vmem %s3544_s3, %s2263_s29  ;;  %s502_s27 = scalar_lea.vmem %s3545_s4, %s2834_s24  ;;  %530 = vst.msk [vmem:[#allocation2 + $0x30] sm:$0xff] (!%p2182_p7), %vm523_vm0, %v2739_v0  ;;  %531 = vst.msk [vmem:[#allocation2 + $0x38] sm:$0xff] (!%p2182_p7), %vm523_vm0, %v2739_v0 }
  0x19   : > { %s505_s30 = scalar_lea.vmem %s3546_s5, %s2834_s24  ;;  %s508_s21 = scalar_lea.vmem %s3547_s6, %s2834_s24  ;;  %532 = vst.msk [vmem:[#allocation2 + $0x40] sm:$0xff] (!%p2182_p7), %vm523_vm0, %v2739_v0  ;;  %533 = vst.msk [vmem:[#allocation2 + $0x48] sm:$0xff] (!%p2182_p7), %vm523_vm0, %v2739_v0 }
  0x1a   : > { %s2179_s14 = sshll.u32 %s2834_s24, 2  ;;  %s2873_s10 = scalar_lea.vmem %s3552_s11, %s2262_s25  ;;  %534 = vst.msk [vmem:[#allocation2 + $0x50] sm:$0xff] (!%p2182_p7), %vm523_vm0, %v2739_v0  ;;  %535 = vst.msk [vmem:[#allocation2 + $0x58] sm:$0xff] (!%p2182_p7), %vm523_vm0, %v2739_v0 }
  0x1b   : > { %s2878_s29 = scalar_lea.vmem %s3548_s7, %s2179_s14  ;;  %536 = vst.msk [vmem:[#allocation2 + $0x60] sm:$0xff] (!%p2182_p7), %vm523_vm0, %v2739_v0  ;;  %537 = vst.msk [vmem:[#allocation2 + $0x68] sm:$0xff] (!%p2182_p7), %vm523_vm0, %v2739_v0 }
  0x1c   : > { %538 = vst.msk [vmem:[#allocation2 + $0x70] sm:$0xff] %vm523_vm0, %v2739_v0  ;;  %539 = vst.msk [vmem:[#allocation2 + $0x78] sm:$0xff] %vm523_vm0, %v2739_v0 }
  0x1d PF: > { %v2589_v1 = vld [vmem:[%s2845_s13] sm:$0xff]   ;;  %v2590_v2 = vld [vmem:[%s2845_s13 + $0x8] sm:$0xff]   ;;  %vm619_vm1 = vcmask 261120   ;;  %v2909_v6 = vld [vmem:[%s2839_s28 + $0x30] sm:$0xff]   ;;  %vm1013_vm2 = vcmask 64512   ;;  %vm1465_vm3 = vcmask 1043456  }
  0x1e   : > { %2535 = vmatprep.subr.bf16.mxu1 %v2589_v1  ;;  %v2900_v3 = vld [vmem:[%s2839_s28 + $0x20] sm:$0xff]   ;;  %2393 = vmatprep.subr.bf16.mxu0 %v2589_v1  ;;  %v2906_v5 = vld [vmem:[%s2839_s28 + $0x28] sm:$0xff]   ;;  %v2922_v10 = vld [vmem:[%s2839_s28 + $0x10] sm:$0xff]   ;;  %p2240_p8 = scmp.ne.s32.totalorder %s2721_s17, 3 }
  0x1f   : > { %2537 = vmatpush3.bf16.msra.mxu1 %v2589_v1  ;;  %2394 = vmatpush3.bf16.msra.mxu0 %v2589_v1  ;;  %v2593_v4 = vld [vmem:[%s2850_s16] sm:$0xff]   ;;  %v2596_v7 = vld [vmem:[%s2850_s16 + $0x8] sm:$0xff]   ;;  %v2929_v11 = vld [vmem:[%s2839_s28 + $0x38] sm:$0xff]   ;;  %vm2008_vm4 = vcmask (!%p2240_p8), 257024  }
  0x20   : > { %2536 = vmatprep.subr.bf16.mxu1 %v2590_v2  ;;  %2405 = vmatprep.mubr.msk.bf16.mxu1 %vm619_vm1, %v2900_v3  ;;  %v2597_v8 = vld [vmem:[%s2839_s28] sm:$0xff]   ;;  %v2916_v9 = vld [vmem:[%s2839_s28 + $0x8] sm:$0xff]   ;;  %v2934_v12 = vld [vmem:[%s2839_s28 + $0x18] sm:$0xff]  }
  0x21   : > { %2395 = vmatprep.subr.bf16.mxu0 %v2590_v2  ;;  %2397 = vmatprep.mubr.msk.bf16.mxu0 %vm619_vm1, %v2597_v8  ;;  %v2183_v13 = vld [vmem:[%s502_s27] ss:$0 sm:$0xff] }
  0x23   : > { %2538 = vmatpush3.bf16.msra.mxu1 %v2590_v2  ;;  %2396 = vmatpush3.bf16.msra.mxu0 %v2590_v2 }
  0x24   : > { %2413 = vmatprep.subr.bf16.mxu1 %v2593_v4 }
  0x26   : > { %2406 = vmatmul.mubr.msk.bf16.vlgmr.msra.gmra.mrb[0].mxu1 %vm619_vm1, %v2906_v5  ;;  %2398 = vmatmul.mubr.msk.bf16.vlgmr.msra.gmra.mrb[0].mxu0 %vm619_vm1, %v2916_v9 }
  0x27   : > { %2414 = vmatpush3.bf16.msra.mxu1 %v2593_v4  ;;  %2409 = vmatprep.mubr.msk.bf16.mxu1 %vm619_vm1, %v2909_v6 }
  0x28   : > { %2415 = vmatprep.subr.bf16.mxu1 %v2596_v7  ;;  %2401 = vmatprep.mubr.msk.bf16.mxu0 %vm619_vm1, %v2922_v10 }
  0x2b   : > { %2416 = vmatpush3.bf16.msra.mxu1 %v2596_v7  ;;  %v2202_v7 = vld [vmem:[%s505_s30] ss:$0 sm:$0xff] }
  0x2e   : > { %2410 = vmatmul.mubr.msk.bf16.gmra.mrb[4].mxu1 %vm619_vm1, %v2929_v11  ;;  %2402 = vmatmul.mubr.msk.bf16.gmra.mrb[4].mxu0 %vm619_vm1, %v2934_v12 }
  0x2f   : > { %2417 = vmatprep.mubr.msk.bf16.mxu1 %vm619_vm1, %v2597_v8  ;;  %2437 = vmatprep.mubr.msk.bf16.mxu0 %vm619_vm1, %v2597_v8 }
  0x36   : > { %2418 = vmatmul.mubr.msk.bf16.vlgmr.msra.gmra.mrb[8].mxu1 %vm619_vm1, %v2916_v9 }
  0x37   : > { %2421 = vmatprep.mubr.msk.bf16.mxu1 %vm619_vm1, %v2922_v10 }
  0x3e   : > { %2422 = vmatmul.mubr.msk.bf16.gmra.mrb[12].mxu1 %vm619_vm1, %v2934_v12 }
  0x3f   : > { %2425 = vmatprep.mubr.msk.bf16.mxu1 %vm619_vm1, %v2900_v3 }
  0x46   : > { %2426 = vmatmul.mubr.msk.bf16.gmra.mrb[16].mxu1 %vm619_vm1, %v2906_v5 }
  0x47   : > { %2429 = vmatprep.mubr.msk.bf16.mxu1 %vm619_vm1, %v2909_v6 }
  0x4e   : > { %2430 = vmatmul.mubr.msk.bf16.gmra.mrb[20].mxu1 %vm619_vm1, %v2929_v11 }
  0xf9   : > { %v2407_v14 = vpop.f32.mrb[0].mxu1  ;;  %v2399_v19 = vpop.f32.mrb[0].mxu0 }
  0xfa   : > { %v719_v15 = vadd.f32 %v2407_v14, %v2183_v13  ;;  %v710_v16 = vpop.f32.mrb[1].mxu1  ;;  %v687_v22 = vadd.f32 %v2399_v19, %v2183_v13  ;;  %v678_v23 = vpop.f32.mrb[1].mxu0 }
  0xfb   : > { %v711_v17 = vadd.f32 %v2183_v13, %v710_v16  ;;  %v2408_v18 = vpop.f32.mrb[2].mxu1  ;;  %v679_v26 = vadd.f32 %v2183_v13, %v678_v23  ;;  %v2400_v27 = vpop.f32.mrb[2].mxu0 }
  0xfc   : > { %v722_v20 = vadd.f32 %v2408_v18, %v2183_v13  ;;  %v713_v21 = vpop.f32.mrb[3].mxu1  ;;  %v2959_v24 = vmul.f32 0.35355338, %v719_v15  ;;  %v2963_v29 = vmul.f32 0.35355338, %v687_v22  ;;  %v690_v30 = vadd.f32 %v2400_v27, %v2183_v13  ;;  %v681_v31 = vpop.f32.mrb[3].mxu0 }
  0xfd   : > { %v714_v25 = vadd.f32 %v2183_v13, %v713_v21  ;;  %v2965_v32 = vmul.f32 0.35355338, %v711_v17  ;;  %v741_v34 = vmul.f32 0.35355338, %v679_v26  ;;  %v682_v35 = vadd.f32 %v2183_v13, %v681_v31 }
  0xfe   : > { %v2961_v28 = vmul.f32 0.35355338, %v722_v20  ;;  %v2971_v37 = vmul.f32 0.35355338, %v690_v30 }
  0xff   : > { %v2967_v33 = vmul.f32 0.35355338, %v714_v25  ;;  %v742_v40 = vmul.f32 0.35355338, %v682_v35 }
 0x100   : > { %v1002_v36 = vpack.c.bf16 %v2961_v28, %v2959_v24  ;;  %v998_v43 = vpack.c.bf16 %v2971_v37, %v2963_v29  ;;  %v2601_v29 = vld [vmem:[%s2855_s18] sm:$0xff]   ;;  %v2602_v37 = vld [vmem:[%s2855_s18 + $0x8] sm:$0xff]   ;;  %s3568_s18 = sld [smem:[#allocation11_spill]] (!%p2240_p8) }
 0x101   : > { %v1001_v38 = vpack.c.bf16 %v2967_v33, %v2965_v32  ;;  %v2411_v39 = vpop.f32.mrb[4].mxu1  ;;  %v997_v46 = vpack.c.bf16 %v742_v40, %v741_v34  ;;  %v2403_v47 = vpop.f32.mrb[4].mxu0  ;;  %2433 = vmatprep.subr.bf16.mxu0 %v2601_v29 }
 0x102   : > { %v735_v41 = vadd.f32 %v2411_v39, %v2183_v13  ;;  %v726_v42 = vpop.f32.mrb[5].mxu1  ;;  %v703_v50 = vadd.f32 %v2403_v47, %v2183_v13  ;;  %v694_v51 = vpop.f32.mrb[5].mxu0  ;;  %2434 = vmatpush3.bf16.msra.mxu0 %v2601_v29 }
 0x103   : > { %v727_v44 = vadd.f32 %v2183_v13, %v726_v42  ;;  %v2412_v45 = vpop.f32.mrb[6].mxu1  ;;  %2469 = vmatprep.mubr.msk.bf16.mxu1 %vm1013_vm2, %v997_v46  ;;  %v695_v54 = vadd.f32 %v2183_v13, %v694_v51  ;;  %v2404_v55 = vpop.f32.mrb[6].mxu0  ;;  %2435 = vmatprep.subr.bf16.mxu0 %v2602_v37 }
 0x104   : > { %v738_v48 = vadd.f32 %v2412_v45, %v2183_v13  ;;  %v729_v49 = vpop.f32.mrb[7].mxu1  ;;  %v2977_v52 = vmul.f32 0.35355338, %v735_v41  ;;  %v2982_v57 = vmul.f32 0.35355338, %v703_v50  ;;  %v706_v58 = vadd.f32 %v2404_v55, %v2183_v13  ;;  %v697_v59 = vpop.f32.mrb[7].mxu0 }
 0x105   : > { %v730_v53 = vadd.f32 %v2183_v13, %v729_v49  ;;  %v2984_v60 = vmul.f32 0.35355338, %v727_v44  ;;  %v2988_v62 = vmul.f32 0.35355338, %v695_v54  ;;  %v698_v63 = vadd.f32 %v2183_v13, %v697_v59 }
 0x106   : > { %v2980_v56 = vmul.f32 0.35355338, %v738_v48  ;;  %v2992_v1 = vmul.f32 0.35355338, %v706_v58  ;;  %2436 = vmatpush3.bf16.msra.mxu0 %v2602_v37 }
 0x107   : > { %v2986_v61 = vmul.f32 0.35355338, %v730_v53  ;;  %v3001_v8 = vmul.f32 0.35355338, %v698_v63 }
 0x108   : > { %v1004_v0 = vpack.c.bf16 %v2980_v56, %v2977_v52  ;;  %v1000_v13 = vpack.c.bf16 %v2992_v1, %v2982_v57  ;;  %v3120_v57 = vld [vmem:[%s508_s21] ss:$0 sm:$0xff] }
 0x109   : > { %v1003_v2 = vpack.c.bf16 %v2986_v61, %v2984_v60  ;;  %v2419_v4 = vpop.f32.mrb[8].mxu1  ;;  %v999_v16 = vpack.c.bf16 %v3001_v8, %v2988_v62  ;;  %2438 = vmatmul.mubr.msk.bf16.vlgmr.msra.gmra.mrb[8].mxu0 %vm619_vm1, %v2916_v9 }
 0x10a   : > { %v814_v14 = vpop.f32.mrb[9].mxu1  ;;  %v823_v17 = vadd.f32 %v2419_v4, %v2202_v7  ;;  %2441 = vmatprep.mubr.msk.bf16.mxu0 %vm619_vm1, %v2922_v10 }
 0x10b   : > { %v2420_v15 = vpop.f32.mrb[10].mxu1  ;;  %v815_v20 = vadd.f32 %v2202_v7, %v814_v14 }
 0x10c   : > { %v826_v18 = vadd.f32 %v2420_v15, %v2202_v7  ;;  %v817_v19 = vpop.f32.mrb[11].mxu1 }
 0x10d   : > { %v818_v21 = vadd.f32 %v2202_v7, %v817_v19 }
 0x10e   : > { %v1006_v22 = vpack.c.bf16 %v826_v18, %v823_v17 }
 0x10f   : > { %v1005_v23 = vpack.c.bf16 %v818_v21, %v815_v20 }
 0x110   : > { %v1042_v44 = vsel %vm1013_vm2, %v1006_v22, 0 }
 0x111   : > { %2539 = vmatprep.subr.msk.bf16.mxu1 %vm1013_vm2, %v1005_v23  ;;  %v1039_v25 = vsel %vm1013_vm2, %v1005_v23, 0  ;;  %v2423_v26 = vpop.f32.mrb[12].mxu1  ;;  %2442 = vmatmul.mubr.msk.bf16.gmra.mrb[12].mxu0 %vm619_vm1, %v2934_v12 }
 0x112   : > { %2454 = vmatpush3.bf16.xpose.msra.mxu1 %v1039_v25  ;;  %v839_v27 = vadd.f32 %v2423_v26, %v2202_v7  ;;  %v830_v30 = vpop.f32.mrb[13].mxu1  ;;  %2445 = vmatprep.mubr.msk.bf16.mxu0 %vm619_vm1, %v2900_v3 }
 0x113   : > { %2540 = vmatprep.subr.msk.bf16.mxu1 %vm1013_vm2, %v1006_v22  ;;  %v831_v31 = vadd.f32 %v2202_v7, %v830_v30  ;;  %v2424_v34 = vpop.f32.mrb[14].mxu1 }
 0x114   : > { %v842_v35 = vadd.f32 %v2424_v34, %v2202_v7  ;;  %v833_v39 = vpop.f32.mrb[15].mxu1 }
 0x115   : > { %v834_v40 = vadd.f32 %v2202_v7, %v833_v39 }
 0x116   : > { %v1008_v41 = vpack.c.bf16 %v842_v35, %v839_v27 }
 0x117   : > { %v1007_v42 = vpack.c.bf16 %v834_v40, %v831_v31 }
 0x118   : > { %v1048_v22 = vsel %vm1013_vm2, %v1008_v41, 0 }
 0x119   : > { %v2427_v45 = vpop.f32.mrb[16].mxu1  ;;  %v1045_v58 = vsel %vm1013_vm2, %v1007_v42, 0  ;;  %2446 = vmatmul.mubr.msk.bf16.gmra.mrb[16].mxu0 %vm619_vm1, %v2906_v5 }
 0x11a   : > { %2456 = vmatpush3.bf16.xpose.msra.mxu1 %v1042_v44  ;;  %v855_v46 = vadd.f32 %v2427_v45, %v2202_v7  ;;  %v846_v47 = vpop.f32.mrb[17].mxu1  ;;  %2449 = vmatprep.mubr.msk.bf16.mxu0 %vm619_vm1, %v2909_v6 }
 0x11b   : > { %2541 = vmatprep.subr.msk.bf16.mxu1 %vm1013_vm2, %v1007_v42  ;;  %v847_v48 = vadd.f32 %v2202_v7, %v846_v47  ;;  %v2428_v49 = vpop.f32.mrb[18].mxu1 }
 0x11c   : > { %v858_v50 = vadd.f32 %v2428_v49, %v2202_v7  ;;  %v849_v51 = vpop.f32.mrb[19].mxu1 }
 0x11d   : > { %v850_v53 = vadd.f32 %v2202_v7, %v849_v51 }
 0x11e   : > { %v1010_v54 = vpack.c.bf16 %v858_v50, %v855_v46 }
 0x11f   : > { %v1009_v55 = vpack.c.bf16 %v850_v53, %v847_v48 }
 0x120   : > { %v1054_v25 = vsel %vm1013_vm2, %v1010_v54, 0 }
 0x121   : > { %v2431_v59 = vpop.f32.mrb[20].mxu1  ;;  %v1051_v23 = vsel %vm1013_vm2, %v1009_v55, 0  ;;  %2450 = vmatmul.mubr.msk.bf16.gmra.mrb[20].mxu0 %vm619_vm1, %v2929_v11 }
 0x122   : > { %2458 = vmatpush3.bf16.xpose.msra.mxu1 %v1045_v58  ;;  %v871_v63 = vadd.f32 %v2431_v59, %v2202_v7  ;;  %v862_v4 = vpop.f32.mrb[21].mxu1 }
 0x123   : > { %2542 = vmatprep.subr.msk.bf16.mxu1 %vm1013_vm2, %v1008_v41  ;;  %v863_v14 = vadd.f32 %v2202_v7, %v862_v4  ;;  %v2432_v15 = vpop.f32.mrb[22].mxu1 }
 0x124   : > { %v874_v17 = vadd.f32 %v2432_v15, %v2202_v7  ;;  %v865_v18 = vpop.f32.mrb[23].mxu1 }
 0x125   : > { %v866_v19 = vadd.f32 %v2202_v7, %v865_v18 }
 0x126   : > { %v1012_v20 = vpack.c.bf16 %v874_v17, %v871_v63 }
 0x127   : > { %v1011_v21 = vpack.c.bf16 %v866_v19, %v863_v14 }
 0x128   : > { %v1060_v26 = vsel %vm1013_vm2, %v1012_v20, 0 }
 0x129   : > { %v1057_v7 = vsel %vm1013_vm2, %v1011_v21, 0 }
 0x12a   : > { %2460 = vmatpush3.bf16.xpose.msra.mxu1 %v1048_v22 }
 0x12b   : > { %2543 = vmatprep.subr.msk.bf16.mxu1 %vm1013_vm2, %v1009_v55 }
 0x132   : > { %2462 = vmatpush3.bf16.xpose.msra.mxu1 %v1051_v23 }
 0x133   : > { %2544 = vmatprep.subr.msk.bf16.mxu1 %vm1013_vm2, %v1010_v54 }
 0x13a   : > { %2464 = vmatpush3.bf16.xpose.msra.mxu1 %v1054_v25 }
 0x13b   : > { %2545 = vmatprep.subr.msk.bf16.mxu1 %vm1013_vm2, %v1011_v21 }
 0x142   : > { %2466 = vmatpush3.bf16.xpose.msra.mxu1 %v1057_v7 }
 0x143   : > { %2546 = vmatprep.subr.msk.bf16.mxu1 %vm1013_vm2, %v1012_v20 }
 0x14a   : > { %2468 = vmatpush3.bf16.xpose.msra.mxu1 %v1060_v26 }
 0x151   : > { %2470 = vmatmul.mubr.msk.bf16.vlgmr.msra.gmra.mrb[24].mxu1 %vm1013_vm2, %v998_v43 }
 0x152   : > { %2473 = vmatprep.mubr.msk.bf16.mxu1 %vm1013_vm2, %v999_v16 }
 0x159   : > { %2474 = vmatmul.mubr.msk.bf16.gmra.mrb[28].mxu1 %vm1013_vm2, %v1000_v13 }
 0x15a   : > { %2477 = vmatprep.mubr.msk.bf16.mxu1 %vm1013_vm2, %v1001_v38 }
 0x161   : > { %2478 = vmatmul.mubr.msk.bf16.gmra.mrb[32].mxu1 %vm1013_vm2, %v1002_v36 }
 0x162   : > { %2481 = vmatprep.mubr.msk.bf16.mxu1 %vm1013_vm2, %v1003_v2 }
 0x169   : > { %2482 = vmatmul.mubr.msk.bf16.gmra.mrb[36].mxu1 %vm1013_vm2, %v1004_v0 }
 0x1dc   : > { %v2439_v60 = vpop.f32.mrb[8].mxu0 }
 0x1dd   : > { %v943_v61 = vadd.f32 %v2439_v60, %v3120_v57  ;;  %v934_v62 = vpop.f32.mrb[9].mxu0 }
 0x1de   : > { %v935_v0 = vadd.f32 %v3120_v57, %v934_v62  ;;  %v2440_v1 = vpop.f32.mrb[10].mxu0 }
 0x1df   : > { %v946_v2 = vadd.f32 %v2440_v1, %v3120_v57  ;;  %v937_v8 = vpop.f32.mrb[11].mxu0 }
 0x1e0   : > { %v938_v13 = vadd.f32 %v3120_v57, %v937_v8 }
 0x1e1   : > { %v1312_v16 = vpack.c.bf16 %v946_v2, %v943_v61 }
 0x1e2   : > { %v1311_v27 = vpack.c.bf16 %v938_v13, %v935_v0 }
 0x1e4   : > { %v2443_v30 = vpop.f32.mrb[12].mxu0  ;;  %2485 = vmatprep.subr.bf16.mxu0 %v1311_v27 }
 0x1e5   : > { %v959_v31 = vadd.f32 %v2443_v30, %v3120_v57  ;;  %v950_v34 = vpop.f32.mrb[13].mxu0  ;;  %2486 = vmatpush3.bf16.msra.mxu0 %v1311_v27 }
 0x1e6   : > { %v951_v35 = vadd.f32 %v3120_v57, %v950_v34  ;;  %v2444_v39 = vpop.f32.mrb[14].mxu0  ;;  %2487 = vmatprep.subr.bf16.mxu0 %v1312_v16 }
 0x1e7   : > { %v962_v40 = vadd.f32 %v2444_v39, %v3120_v57  ;;  %v953_v41 = vpop.f32.mrb[15].mxu0 }
 0x1e8   : > { %v954_v42 = vadd.f32 %v3120_v57, %v953_v41 }
 0x1e9   : > { %v1314_v44 = vpack.c.bf16 %v962_v40, %v959_v31  ;;  %2488 = vmatpush3.bf16.msra.mxu0 %v1312_v16 }
 0x1ea   : > { %v1313_v45 = vpack.c.bf16 %v954_v42, %v951_v35 }
 0x1ec   : > { %v2447_v46 = vpop.f32.mrb[16].mxu0  ;;  %2489 = vmatprep.subr.bf16.mxu0 %v1313_v45 }
 0x1ed   : > { %v975_v48 = vadd.f32 %v2447_v46, %v3120_v57  ;;  %v966_v49 = vpop.f32.mrb[17].mxu0  ;;  %2490 = vmatpush3.bf16.msra.mxu0 %v1313_v45 }
 0x1ee   : > { %v967_v53 = vadd.f32 %v3120_v57, %v966_v49  ;;  %v2448_v54 = vpop.f32.mrb[18].mxu0  ;;  %2491 = vmatprep.subr.bf16.mxu0 %v1314_v44 }
 0x1ef   : > { %v978_v58 = vadd.f32 %v2448_v54, %v3120_v57  ;;  %v969_v59 = vpop.f32.mrb[19].mxu0 }
 0x1f0   : > { %v970_v63 = vadd.f32 %v3120_v57, %v969_v59 }
 0x1f1   : > { %v1316_v15 = vpack.c.bf16 %v978_v58, %v975_v48  ;;  %2492 = vmatpush3.bf16.msra.mxu0 %v1314_v44 }
 0x1f2   : > { %v1315_v20 = vpack.c.bf16 %v970_v63, %v967_v53 }
 0x1f4   : > { %v3138_v22 = vpop.f32.mrb[20].mxu0  ;;  %2493 = vmatprep.subr.bf16.mxu0 %v1315_v20 }
 0x1f5   : > { %2494 = vmatpush3.bf16.msra.mxu0 %v1315_v20 }
 0x1f6   : > { %2495 = vmatprep.subr.bf16.mxu0 %v1316_v15 }
 0x1f9   : > { %2496 = vmatpush3.bf16.msra.mxu0 %v1316_v15 }
 0x224   : > { %v3067_v24 = vpop.f32.mrb[24].mxu1 }
 0x225   : > { %1163 = vmax.xlane.f32.xlu1 %v3067_v24  ;;  %v3070_v9 = vpop.f32.mrb[25].mxu1 }
 0x226   : > { %1159 = vmax.xlane.f32.xlu0 %v3070_v9  ;;  %v3073_v10 = vpop.f32.mrb[26].mxu1 }
 0x227   : > { %v3075_v3 = vpop.f32.mrb[27].mxu1 }
 0x229   : > { %1165 = vmax.xlane.f32.xlu1 %v3073_v10 }
 0x22a   : > { %1161 = vmax.xlane.f32.xlu0 %v3075_v3 }
 0x22c   : > { %v3079_v5 = vpop.f32.mrb[28].mxu1 }
 0x22d   : > { %v3081_v6 = vpop.f32.mrb[29].mxu1 }
 0x22e   : > { %1167 = vmax.xlane.f32.xlu0 %v3081_v6  ;;  %v3084_v11 = vpop.f32.mrb[30].mxu1 }
 0x22f   : > { %v3086_v12 = vpop.f32.mrb[31].mxu1 }
 0x230   : > { %1169 = vmax.xlane.f32.xlu1 %v3086_v12 }
 0x232   : > { %1171 = vmax.xlane.f32.xlu0 %v3079_v5 }
 0x234   : > { %1173 = vmax.xlane.f32.xlu1 %v3084_v11  ;;  %v3091_v28 = vpop.f32.mrb[32].mxu1 }
 0x235   : > { %v3093_v32 = vpop.f32.mrb[33].mxu1 }
 0x236   : > { %1175 = vmax.xlane.f32.xlu0 %v3093_v32  ;;  %v3096_v33 = vpop.f32.mrb[34].mxu1 }
 0x237   : > { %v3098_v36 = vpop.f32.mrb[35].mxu1 }
 0x238   : > { %1177 = vmax.xlane.f32.xlu1 %v3098_v36 }
 0x23a   : > { %1179 = vmax.xlane.f32.xlu0 %v3091_v28 }
 0x23c   : > { %1181 = vmax.xlane.f32.xlu1 %v3096_v33  ;;  %v3103_v38 = vpop.f32.mrb[36].mxu1 }
 0x23d   : > { %v3105_v43 = vpop.f32.mrb[37].mxu1 }
 0x23e   : > { %1183 = vmax.xlane.f32.xlu0 %v3105_v43  ;;  %v3108_v52 = vpop.f32.mrb[38].mxu1 }
 0x23f   : > { %v3110_v56 = vpop.f32.mrb[39].mxu1 }
 0x240   : > { %1185 = vmax.xlane.f32.xlu1 %v3110_v56 }
 0x242   : > { %1187 = vmax.xlane.f32.xlu0 %v3103_v38 }
 0x244   : > { %1189 = vmax.xlane.f32.xlu1 %v3108_v52 }
 0x2b2   : > { %v1164_v47 = vpop.xlane.xlu1 %1163 }
 0x2b3   : > { %v1193_v50 = vsub.f32 %v3067_v24, %v1164_v47  ;;  %v1160_v51 = vpop.xlane.xlu0 %1159 }
 0x2b4   : > { %v1191_v55 = vsub.f32 %v3070_v9, %v1160_v51  ;;  %v982_v51 = vpop.f32.mrb[21].mxu0 }
 0x2b5   : > { %v1211_v17 = vmul.f32 1.442695, %v1193_v50  ;;  %v991_v50 = vadd.f32 %v3138_v22, %v3120_v57  ;;  %v2452_v58 = vpop.f32.mrb[22].mxu0  ;;  %v1440_v22 = vld [vmem:[%s2878_s29] sm:$0xf] }
 0x2b6   : > { %v1207_v4 = vmul.f32 1.442695, %v1191_v55  ;;  %v1166_v14 = vpop.xlane.xlu1 %1165  ;;  %v983_v55 = vadd.f32 %v3120_v57, %v982_v51  ;;  %v985_v59 = vpop.f32.mrb[23].mxu0 }
 0x2b7   : > { %v1194_v18 = vsub.f32 %v3073_v10, %v1166_v14  ;;  %v1162_v19 = vpop.xlane.xlu0 %1161 }
 0x2b8   : > { %2603 = vpow2.f32 %v1207_v4  ;;  %v1192_v21 = vsub.f32 %v3075_v3, %v1162_v19  ;;  %v986_v4 = vadd.f32 %v3120_v57, %v985_v59 }
 0x2b9   : > { %2605 = vpow2.f32 %v1211_v17  ;;  %v1213_v25 = vmul.f32 1.442695, %v1194_v18 }
 0x2ba   : > { %v1209_v23 = vmul.f32 1.442695, %v1192_v21 }
 0x2bb   : > { %v1168_v7 = vpop.xlane.xlu0 %1167 }
 0x2bc   : > { %2607 = vpow2.f32 %v1209_v23  ;;  %v1195_v26 = vsub.f32 %v3081_v6, %v1168_v7  ;;  %v1467_v23 = vsel %vm1465_vm3, %v1440_v22, 0 }
 0x2bd   : > { %v1170_v29 = vpop.xlane.xlu1 %1169  ;;  %2609 = vpow2.f32 %v1213_v25 }
 0x2be   : > { %v1215_v37 = vmul.f32 1.442695, %v1195_v26  ;;  %v1196_v24 = vsub.f32 %v3086_v12, %v1170_v29 }
 0x2bf   : > { %v1172_v9 = vpop.xlane.xlu0 %1171 }
 0x2c0   : > { %2611 = vpow2.f32 %v1215_v37  ;;  %v1217_v10 = vmul.f32 1.442695, %v1196_v24  ;;  %v1197_v3 = vsub.f32 %v3079_v5, %v1172_v9 }
 0x2c1   : > { %v1174_v60 = vpop.xlane.xlu1 %1173 }
 0x2c2   : > { %v3143_v61 = vpop.eup %2603  ;;  %v1219_v62 = vmul.f32 1.442695, %v1197_v3  ;;  %v1198_v0 = vsub.f32 %v3084_v11, %v1174_v60  ;;  %2613 = vpow2.f32 %v1217_v10 }
 0x2c3   : > { %v1176_v1 = vpop.xlane.xlu0 %1175  ;;  %1239 = vadd.xlane.f32.xlu0 %v3143_v61  ;;  %v3148_v2 = vpop.eup %2605 }
 0x2c4   : > { %2615 = vpow2.f32 %v1219_v62  ;;  %v1221_v6 = vmul.f32 1.442695, %v1198_v0  ;;  %v1199_v12 = vsub.f32 %v3093_v32, %v1176_v1 }
 0x2c5   : > { %v1178_v8 = vpop.xlane.xlu1 %1177 }
 0x2c6   : > { %v3150_v13 = vpop.eup %2607  ;;  %v1223_v5 = vmul.f32 1.442695, %v1199_v12  ;;  %v1200_v16 = vsub.f32 %v3098_v36, %v1178_v8  ;;  %2617 = vpow2.f32 %v1221_v6 }
 0x2c7   : > { %v1180_v27 = vpop.xlane.xlu0 %1179  ;;  %1243 = vadd.xlane.f32.xlu0 %v3148_v2  ;;  %1241 = vadd.xlane.f32.xlu1 %v3150_v13  ;;  %v3156_v31 = vpop.eup %2609 }
 0x2c8   : > { %2619 = vpow2.f32 %v1223_v5  ;;  %v1225_v11 = vmul.f32 1.442695, %v1200_v16  ;;  %v1201_v30 = vsub.f32 %v3091_v28, %v1180_v27 }
 0x2c9   : > { %v1182_v32 = vpop.xlane.xlu1 %1181 }
 0x2ca   : > { %v3158_v34 = vpop.eup %2611  ;;  %v1227_v35 = vmul.f32 1.442695, %v1201_v30  ;;  %v1202_v39 = vsub.f32 %v3096_v33, %v1182_v32  ;;  %2621 = vpow2.f32 %v1225_v11 }
 0x2cb   : > { %1247 = vadd.xlane.f32.xlu0 %v3158_v34  ;;  %v1184_v36 = vpop.xlane.xlu0 %1183  ;;  %1245 = vadd.xlane.f32.xlu1 %v3156_v31 }
 0x2cc   : > { %2623 = vpow2.f32 %v1227_v35  ;;  %v1229_v40 = vmul.f32 1.442695, %v1202_v39  ;;  %v1203_v41 = vsub.f32 %v3105_v43, %v1184_v36  ;;  %v3164_v42 = vpop.eup %2613 }
 0x2cd   : > { %v1186_v28 = vpop.xlane.xlu1 %1185 }
 0x2ce   : > { %v3166_v44 = vpop.eup %2615  ;;  %v1231_v45 = vmul.f32 1.442695, %v1203_v41  ;;  %v1204_v46 = vsub.f32 %v3110_v56, %v1186_v28  ;;  %2625 = vpow2.f32 %v1229_v40 }
 0x2cf   : > { %1251 = vadd.xlane.f32.xlu0 %v3166_v44  ;;  %v1188_v33 = vpop.xlane.xlu0 %1187  ;;  %1249 = vadd.xlane.f32.xlu1 %v3164_v42 }
 0x2d0   : > { %2627 = vpow2.f32 %v1231_v45  ;;  %v1233_v47 = vmul.f32 1.442695, %v1204_v46  ;;  %v1205_v48 = vsub.f32 %v3103_v38, %v1188_v33  ;;  %v3172_v49 = vpop.eup %2617  ;;  %v994_v38 = vadd.f32 %v2452_v58, %v3120_v57 }
 0x2d1   : > { %v1190_v43 = vpop.xlane.xlu1 %1189 }
 0x2d2   : > { %v3176_v53 = vpop.eup %2619  ;;  %v1235_v56 = vmul.f32 1.442695, %v1205_v48  ;;  %v1206_v54 = vsub.f32 %v3108_v52, %v1190_v43  ;;  %2629 = vpow2.f32 %v1233_v47  ;;  %v1318_v15 = vpack.c.bf16 %v994_v38, %v991_v50 }
 0x2d3   : > { %1255 = vadd.xlane.f32.xlu0 %v3176_v53  ;;  %1253 = vadd.xlane.f32.xlu1 %v3172_v49  ;;  %v1317_v52 = vpack.c.bf16 %v986_v4, %v983_v55 }
 0x2d4   : > { %2631 = vpow2.f32 %v1235_v56  ;;  %v1237_v63 = vmul.f32 1.442695, %v1206_v54  ;;  %v3184_v14 = vpop.eup %2621 }
 0x2d5   : > { %2497 = vmatprep.subr.bf16.mxu0 %v1317_v52 }
 0x2d6   : > { %v3186_v17 = vpop.eup %2623  ;;  %2633 = vpow2.f32 %v1237_v63  ;;  %2498 = vmatpush3.bf16.msra.mxu0 %v1317_v52 }
 0x2d7   : > { %1259 = vadd.xlane.f32.xlu0 %v3186_v17  ;;  %1257 = vadd.xlane.f32.xlu1 %v3184_v14 }
 0x2d8   : > { %v3190_v18 = vpop.eup %2625  ;;  %2499 = vmatprep.subr.bf16.mxu0 %v1318_v15 }
 0x2da   : > { %v3192_v19 = vpop.eup %2627  ;;  %2500 = vmatpush3.bf16.msra.mxu0 %v1318_v15 }
 0x2db   : > { %1263 = vadd.xlane.f32.xlu0 %v3192_v19  ;;  %1261 = vadd.xlane.f32.xlu1 %v3190_v18 }
 0x2dc   : > { %v3196_v57 = vpop.eup %2629  ;;  %2547 = vmatprep.subr.msk.bf16.mxu0 %vm1465_vm3, %v1440_v22 }
 0x2de   : > { %v3198_v20 = vpop.eup %2631 }
 0x2df   : > { %1267 = vadd.xlane.f32.xlu0 %v3198_v20  ;;  %1265 = vadd.xlane.f32.xlu1 %v3196_v57 }
 0x2e0   : > { %v3202_v21 = vpop.eup %2633 }
 0x2e3   : > { %1269 = vadd.xlane.f32.xlu1 %v3202_v21 }
 0x350   : > { %v1240_v25 = vpop.xlane.xlu0 %1239 }
 0x351   : > { %2635 = vrcp.f32 %v1240_v25 }
 0x354   : > { %v1244_v7 = vpop.xlane.xlu0 %1243  ;;  %v1242_v26 = vpop.xlane.xlu1 %1241 }
 0x355   : > { %2637 = vrcp.f32 %v1242_v26 }
 0x356   : > { %2639 = vrcp.f32 %v1244_v7 }
 0x358   : > { %v1248_v29 = vpop.xlane.xlu0 %1247  ;;  %v1246_v37 = vpop.xlane.xlu1 %1245 }
 0x359   : > { %2641 = vrcp.f32 %v1246_v37 }
 0x35a   : > { %2643 = vrcp.f32 %v1248_v29 }
 0x35b   : > { %v2636_v10 = vpop.eup %2635 }
 0x35c   : > { %v1252_v24 = vpop.xlane.xlu0 %1251  ;;  %v1250_v9 = vpop.xlane.xlu1 %1249  ;;  %v1287_v0 = vmul.f32 %v2636_v10, %v3143_v61 }
 0x35d   : > { %2645 = vrcp.f32 %v1250_v9 }
 0x35e   : > { %2647 = vrcp.f32 %v1252_v24 }
 0x35f   : > { %v2638_v3 = vpop.eup %2637 }
 0x360   : > { %v1256_v60 = vpop.xlane.xlu0 %1255  ;;  %v1254_v62 = vpop.xlane.xlu1 %1253  ;;  %v1288_v1 = vmul.f32 %v2638_v3, %v3150_v13 }
 0x361   : > { %v2640_v6 = vpop.eup %2639  ;;  %2649 = vrcp.f32 %v1254_v62 }
 0x362   : > { %v1303_v12 = vpack.c.bf16 %v1288_v1, %v1287_v0  ;;  %2651 = vrcp.f32 %v1256_v60  ;;  %v1289_v27 = vmul.f32 %v2640_v6, %v3148_v2 }
 0x363   : > { %v2642_v8 = vpop.eup %2641 }
 0x364   : > { %v1260_v5 = vpop.xlane.xlu0 %1259  ;;  %v1258_v16 = vpop.xlane.xlu1 %1257  ;;  %v1290_v11 = vmul.f32 %v2642_v8, %v3156_v31  ;;  %2501 = vmatprep.mubr.bf16.mxu0 %v1303_v12 }
 0x365   : > { %v2644_v30 = vpop.eup %2643  ;;  %2653 = vrcp.f32 %v1258_v16  ;;  %v1416_v16 = vld [vmem:[#allocation2] sm:$0xff] }
 0x366   : > { %v1304_v32 = vpack.c.bf16 %v1290_v11, %v1289_v27  ;;  %2655 = vrcp.f32 %v1260_v5  ;;  %v1291_v13 = vmul.f32 %v2644_v30, %v3158_v34  ;;  %v1418_v5 = vld [vmem:[#allocation2 + $0x10] sm:$0xff]  ;;  %v1419_v11 = vld [vmem:[#allocation2 + $0x18] sm:$0xff] }
 0x367   : > { %v2646_v35 = vpop.eup %2645 }
 0x368   : > { %v1264_v61 = vpop.xlane.xlu0 %1263  ;;  %v1262_v39 = vpop.xlane.xlu1 %1261  ;;  %2502 = vmatmul.mubr.bf16.vlgmr.msra.gmra.mrb[24].mxu0 %v1304_v32  ;;  %v1292_v36 = vmul.f32 %v2646_v35, %v3164_v42  ;;  %v1417_v35 = vld [vmem:[#allocation2 + $0x8] sm:$0xff] }
 0x369   : > { %v2648_v40 = vpop.eup %2647  ;;  %2657 = vrcp.f32 %v1262_v39  ;;  %2518 = vmatpush3.bf16.msra.mxu0 %v1467_v23 }
 0x36a   : > { %v1305_v41 = vpack.c.bf16 %v1292_v36, %v1291_v13  ;;  %2659 = vrcp.f32 %v1264_v61  ;;  %v1293_v45 = vmul.f32 %v2648_v40, %v3166_v44 }
 0x36b   : > { %v2650_v2 = vpop.eup %2649 }
 0x36c   : > { %v1268_v31 = vpop.xlane.xlu0 %1267  ;;  %v1266_v28 = vpop.xlane.xlu1 %1265  ;;  %2505 = vmatprep.mubr.bf16.mxu0 %v1305_v41  ;;  %v1294_v46 = vmul.f32 %v2650_v2, %v3172_v49  ;;  %v1422_v41 = vld [vmem:[#allocation2 + $0x30] sm:$0xff]  ;;  %v1420_v2 = vld [vmem:[#allocation2 + $0x20] sm:$0xff] }
 0x36d   : > { %v2652_v33 = vpop.eup %2651  ;;  %2661 = vrcp.f32 %v1266_v28  ;;  %v1423_v28 = vld [vmem:[#allocation2 + $0x38] sm:$0xff] }
 0x36e   : > { %2663 = vrcp.f32 %v1268_v31  ;;  %v1306_v47 = vpack.c.bf16 %v1294_v46, %v1293_v45  ;;  %v1295_v42 = vmul.f32 %v2652_v33, %v3176_v53  ;;  %v1421_v33 = vld [vmem:[#allocation2 + $0x28] sm:$0xff] }
 0x36f   : > { %v2654_v34 = vpop.eup %2653 }
 0x370   : > { %v1270_v48 = vpop.xlane.xlu1 %1269  ;;  %2506 = vmatmul.mubr.bf16.gmra.mrb[28].mxu0 %v1306_v47  ;;  %v1296_v43 = vmul.f32 %v2654_v34, %v3184_v14  ;;  %v2656_v50 = vpop.eup %2655 }
 0x371   : > { %2665 = vrcp.f32 %v1270_v48  ;;  %v1297_v44 = vmul.f32 %v2656_v50, %v3186_v17  ;;  %v1426_v50 = vld [vmem:[#allocation2 + $0x50] sm:$0xff] }
 0x372   : > { %v1307_v51 = vpack.c.bf16 %v1296_v43, %v1295_v42 }
 0x373   : > { %v2658_v56 = vpop.eup %2657 }
 0x374   : > { %2509 = vmatprep.mubr.bf16.mxu0 %v1307_v51  ;;  %v1298_v49 = vmul.f32 %v2658_v56, %v3190_v18  ;;  %v2660_v54 = vpop.eup %2659  ;;  %v1424_v51 = vld [vmem:[#allocation2 + $0x40] sm:$0xff] }
 0x375   : > { %v1299_v59 = vmul.f32 %v2660_v54, %v3192_v19 }
 0x376   : > { %v1308_v55 = vpack.c.bf16 %v1298_v49, %v1297_v44  ;;  %v1427_v44 = vld [vmem:[#allocation2 + $0x58] sm:$0xff] }
 0x377   : > { %v2662_v58 = vpop.eup %2661 }
 0x378   : > { %v2664_v38 = vpop.eup %2663  ;;  %2510 = vmatmul.mubr.bf16.gmra.mrb[32].mxu0 %v1308_v55  ;;  %v1300_v63 = vmul.f32 %v2662_v58, %v3196_v57  ;;  %v1425_v55 = vld [vmem:[#allocation2 + $0x48] sm:$0xff] }
 0x379   : > { %v1301_v14 = vmul.f32 %v2664_v38, %v3198_v20 }
 0x37a   : > { %v1309_v4 = vpack.c.bf16 %v1300_v63, %v1299_v59 }
 0x37b   : > { %v2666_v53 = vpop.eup %2665 }
 0x37c   : > { %v1302_v15 = vmul.f32 %v2666_v53, %v3202_v21  ;;  %2513 = vmatprep.mubr.bf16.mxu0 %v1309_v4  ;;  %v1430_v4 = vld [vmem:[#allocation2 + $0x70] sm:$0xff] }
 0x37e   : > { %v1310_v52 = vpack.c.bf16 %v1302_v15, %v1301_v14  ;;  %v1428_v14 = vld [vmem:[#allocation2 + $0x60] sm:$0xff] }
 0x380   : > { %2514 = vmatmul.mubr.bf16.gmra.mrb[36].mxu0 %v1310_v52  ;;  %v1431_v52 = vld [vmem:[#allocation2 + $0x78] sm:$0xff] }
 0x43b   : > { %v2503_v17 = vpop.f32.mrb[24].mxu0 }
 0x43c   : > { %v1353_v18 = vpop.f32.mrb[25].mxu0 }
 0x43d   : > { %v2504_v22 = vpop.f32.mrb[26].mxu0 }
 0x43e   : > { %v1433_v23 = vpack.c.bf16 %v2504_v22, %v2503_v17  ;;  %v1356_v25 = vpop.f32.mrb[27].mxu0  ;;  %v1429_v22 = vld [vmem:[#allocation2 + $0x68] sm:$0xff] }
 0x43f   : > { %v1432_v7 = vpack.c.bf16 %v1356_v25, %v1353_v18 }
 0x441   : > { %2519 = vmatprep.mubr.msk.bf16.mxu0 %vm1013_vm2, %v1432_v7 }
 0x442   : > { %2520 = vmatmul.mubr.msk.bf16.vlgmr.msra.gmra.mrb[40].mxu0 %vm1013_vm2, %v1433_v23 }
 0x443   : > { %v2507_v19 = vpop.f32.mrb[28].mxu0 }
 0x444   : > { %v1369_v57 = vpop.f32.mrb[29].mxu0 }
 0x445   : > { %v2508_v26 = vpop.f32.mrb[30].mxu0 }
 0x446   : > { %v1435_v29 = vpack.c.bf16 %v2508_v26, %v2507_v19  ;;  %v1372_v20 = vpop.f32.mrb[31].mxu0 }
 0x447   : > { %v1434_v37 = vpack.c.bf16 %v1372_v20, %v1369_v57  ;;  %v2284_v20 = vld [vmem:[%s2839_s28] sm:$0xff] (!%p2240_p8)  }
 0x449   : > { %2523 = vmatprep.mubr.msk.bf16.mxu0 %vm1013_vm2, %v1434_v37 }
 0x44a   : > { %2524 = vmatmul.mubr.msk.bf16.gmra.mrb[44].mxu0 %vm1013_vm2, %v1435_v29  ;;  %v3250_v29 = vld [vmem:[%s3549_s8] ss:$0 sm:$0xff] (!%p2240_p8) }
 0x44b   : > { %v2511_v21 = vpop.f32.mrb[32].mxu0 }
 0x44c   : > { %v1385_v24 = vpop.f32.mrb[33].mxu0 }
 0x44d   : > { %v2512_v9 = vpop.f32.mrb[34].mxu0 }
 0x44e   : > { %v1437_v10 = vpack.c.bf16 %v2512_v9, %v2511_v21  ;;  %v1388_v3 = vpop.f32.mrb[35].mxu0  ;;  %v2285_v21 = vunpack.c.l.bf16 (!%p2240_p8), %v2284_v20  ;;  %v2315_v9 = vld [vmem:[%s2839_s28 + $0x8] sm:$0xff] (!%p2240_p8)  }
 0x44f   : > { %v1436_v60 = vpack.c.bf16 %v1388_v3, %v1385_v24  ;;  %v2286_v3 = vunpack.c.h.bf16 (!%p2240_p8), %v2284_v20 }
 0x451   : > { %2527 = vmatprep.mubr.msk.bf16.mxu0 %vm1013_vm2, %v1436_v60 }
 0x452   : > { %2528 = vmatmul.mubr.msk.bf16.gmra.mrb[48].mxu0 %vm1013_vm2, %v1437_v10 }
 0x453   : > { %v2515_v62 = vpop.f32.mrb[36].mxu0 }
 0x454   : > { %v1401_v0 = vpop.f32.mrb[37].mxu0 }
 0x455   : > { %v2516_v1 = vpop.f32.mrb[38].mxu0 }
 0x456   : > { %v1439_v6 = vpack.c.bf16 %v2516_v1, %v2515_v62  ;;  %v1404_v12 = vpop.f32.mrb[39].mxu0  ;;  %v2289_v62 = vunpack.c.l.bf16 (!%p2240_p8), %v2315_v9 }
 0x457   : > { %v1438_v8 = vpack.c.bf16 %v1404_v12, %v1401_v0 }
 0x459   : > { %2531 = vmatprep.mubr.msk.bf16.mxu0 %vm1013_vm2, %v1438_v8  ;;  %v2316_v8 = vld [vmem:[%s2839_s28 + $0x10] sm:$0xff] (!%p2240_p8)  }
 0x45a   : > { %2532 = vmatmul.mubr.msk.bf16.gmra.mrb[52].mxu0 %vm1013_vm2, %v1439_v6  ;;  %v2290_v6 = vunpack.c.h.bf16 (!%p2240_p8), %v2315_v9 }
 0x515   : > { %v2521_v27 = vpop.f32.mrb[40].mxu0 }
 0x516   : > { %v1568_v30 = vadd.f32 %v2521_v27, %v1418_v5  ;;  %v1503_v32 = vpop.f32.mrb[41].mxu0 }
 0x517   : > { %v1566_v61 = vadd.f32 %v1503_v32, %v1416_v16  ;;  %v2522_v39 = vpop.f32.mrb[42].mxu0 }
 0x518   : > { %1584 = vst.msk [vmem:[#allocation2 + $0x10] sm:$0xff] %vm619_vm1, %v1568_v30  ;;  %v1569_v13 = vadd.f32 %v2522_v39, %v1419_v11  ;;  %v1506_v36 = vpop.f32.mrb[43].mxu0  ;;  %v2293_v11 = vunpack.c.l.bf16 (!%p2240_p8), %v2316_v8  ;;  %v2294_v39 = vunpack.c.h.bf16 (!%p2240_p8), %v2316_v8 }
 0x519   : > { %1582 = vst.msk [vmem:[#allocation2] sm:$0xff] %vm619_vm1, %v1566_v61  ;;  %v1567_v40 = vadd.f32 %v1506_v36, %v1417_v35  ;;  %v2317_v36 = vld [vmem:[%s2839_s28 + $0x18] sm:$0xff] (!%p2240_p8)  }
 0x51a   : > { %1585 = vst.msk [vmem:[#allocation2 + $0x18] sm:$0xff] %vm619_vm1, %v1569_v13 }
 0x51b   : > { %1583 = vst.msk [vmem:[#allocation2 + $0x8] sm:$0xff] %vm619_vm1, %v1567_v40 }
 0x51d   : > { %v2525_v31 = vpop.f32.mrb[44].mxu0 }
 0x51e   : > { %v1572_v45 = vadd.f32 %v2525_v31, %v1422_v41  ;;  %v1519_v46 = vpop.f32.mrb[45].mxu0 }
 0x51f   : > { %v1570_v47 = vadd.f32 %v1519_v46, %v1420_v2  ;;  %v2526_v34 = vpop.f32.mrb[46].mxu0  ;;  %v1604_v24 = vld [vmem:[#allocation2 + $0x10] sm:$0xff] (!%p2240_p8) }
 0x520   : > { %1588 = vst.msk [vmem:[#allocation2 + $0x30] sm:$0xff] %vm619_vm1, %v1572_v45  ;;  %v1573_v48 = vadd.f32 %v2526_v34, %v1423_v28  ;;  %v1522_v42 = vpop.f32.mrb[47].mxu0  ;;  %v1602_v26 = vld [vmem:[#allocation2] sm:$0xff] (!%p2240_p8)  ;;  %v1627_v60 = vadd.f32 (!%p2240_p8), %v3250_v29, %v1604_v24 }
 0x521   : > { %1586 = vst.msk [vmem:[#allocation2 + $0x20] sm:$0xff] %vm619_vm1, %v1570_v47  ;;  %v1571_v43 = vadd.f32 %v1522_v42, %v1421_v33  ;;  %v1625_v37 = vadd.f32 (!%p2240_p8), %v3250_v29, %v1602_v26  ;;  %v1605_v1 = vld [vmem:[#allocation2 + $0x18] sm:$0xff] (!%p2240_p8)  ;;  %v2297_v33 = vunpack.c.l.bf16 (!%p2240_p8), %v2317_v36  ;;  %v2298_v42 = vunpack.c.h.bf16 (!%p2240_p8), %v2317_v36 }
 0x522   : > { %1589 = vst.msk [vmem:[#allocation2 + $0x38] sm:$0xff] %vm619_vm1, %v1573_v48  ;;  %v1603_v10 = vld [vmem:[#allocation2 + $0x8] sm:$0xff] (!%p2240_p8)  ;;  %v1628_v16 = vadd.f32 (!%p2240_p8), %v3250_v29, %v1605_v1  ;;  %v3262_v32 = vadd.f32 (!%p2240_p8), %v2289_v62, %v1627_v60  ;;  %v2321_v62 = vld [vmem:[%s2839_s28 + $0x38] sm:$0xff] (!%p2240_p8)  }
 0x523   : > { %1587 = vst.msk [vmem:[#allocation2 + $0x28] sm:$0xff] %vm619_vm1, %v1571_v43  ;;  %v1626_v0 = vadd.f32 (!%p2240_p8), %v3250_v29, %v1603_v10  ;;  %v3258_v5 = vadd.f32 (!%p2240_p8), %v2285_v21, %v1625_v37  ;;  %v2313_v8 = vunpack.c.l.bf16 (!%p2240_p8), %v2321_v62 }
 0x524   : > { %v3270_v41 = vadd.f32 (!%p2240_p8), %v2290_v6, %v1628_v16  ;;  %v1695_v31 = vsel (!%p2240_p8), %vm619_vm1, %v3262_v32, 0.0 }
 0x525   : > { %v2529_v56 = vpop.f32.mrb[48].mxu0  ;;  %v3264_v35 = vadd.f32 (!%p2240_p8), %v2286_v3, %v1626_v0  ;;  %v1689_v40 = vsel (!%p2240_p8), %vm619_vm1, %v3258_v5, 0.0  ;;  %1696 = vadd.xlane.f32.xlu1 (!%p2240_p8), %v1695_v31 }
 0x526   : > { %v1576_v49 = vadd.f32 %v2529_v56, %v1426_v50  ;;  %v1535_v54 = vpop.f32.mrb[49].mxu0  ;;  %1690 = vadd.xlane.f32.xlu0 (!%p2240_p8), %v1689_v40  ;;  %v1698_v47 = vsel (!%p2240_p8), %vm619_vm1, %v3270_v41, 0.0  ;;  %v2318_v50 = vld [vmem:[%s2839_s28 + $0x20] sm:$0xff] (!%p2240_p8)  }
 0x527   : > { %v1574_v58 = vadd.f32 %v1535_v54, %v1424_v51  ;;  %v2530_v38 = vpop.f32.mrb[50].mxu0  ;;  %v1608_v13 = vld [vmem:[#allocation2 + $0x30] sm:$0xff] (!%p2240_p8)  ;;  %v1692_v28 = vsel (!%p2240_p8), %vm619_vm1, %v3264_v35, 0.0  ;;  %v2301_v54 = vunpack.c.l.bf16 (!%p2240_p8), %v2318_v50 }
 0x528   : > { %1592 = vst.msk [vmem:[#allocation2 + $0x50] sm:$0xff] %vm619_vm1, %v1576_v49  ;;  %v1577_v59 = vadd.f32 %v2530_v38, %v1427_v44  ;;  %v1538_v63 = vpop.f32.mrb[51].mxu0  ;;  %v1606_v12 = vld [vmem:[#allocation2 + $0x20] sm:$0xff] (!%p2240_p8)  ;;  %v1631_v46 = vadd.f32 (!%p2240_p8), %v3250_v29, %v1608_v13 }
 0x529   : > { %1590 = vst.msk [vmem:[#allocation2 + $0x40] sm:$0xff] %vm619_vm1, %v1574_v58  ;;  %v1575_v53 = vadd.f32 %v1538_v63, %v1425_v55  ;;  %v1629_v27 = vadd.f32 (!%p2240_p8), %v3250_v29, %v1606_v12  ;;  %v1609_v2 = vld [vmem:[#allocation2 + $0x38] sm:$0xff] (!%p2240_p8)  ;;  %1699 = vadd.xlane.f32.xlu1 (!%p2240_p8), %v1698_v47 }
 0x52a   : > { %1593 = vst.msk [vmem:[#allocation2 + $0x58] sm:$0xff] %vm619_vm1, %v1577_v59  ;;  %v1607_v30 = vld [vmem:[#allocation2 + $0x28] sm:$0xff] (!%p2240_p8)  ;;  %v1632_v48 = vadd.f32 (!%p2240_p8), %v3250_v29, %v1609_v2  ;;  %1693 = vadd.xlane.f32.xlu0 (!%p2240_p8), %v1692_v28  ;;  %v3287_v44 = vadd.f32 (!%p2240_p8), %v2297_v33, %v1631_v46  ;;  %v2302_v59 = vunpack.c.h.bf16 (!%p2240_p8), %v2318_v50 }
 0x52b   : > { %1591 = vst.msk [vmem:[#allocation2 + $0x48] sm:$0xff] %vm619_vm1, %v1575_v53  ;;  %v1630_v61 = vadd.f32 (!%p2240_p8), %v3250_v29, %v1607_v30  ;;  %v3276_v45 = vadd.f32 (!%p2240_p8), %v2293_v11, %v1629_v27  ;;  %v2319_v53 = vld [vmem:[%s2839_s28 + $0x28] sm:$0xff] (!%p2240_p8)   ;;  %v2314_v30 = vunpack.c.h.bf16 (!%p2240_p8), %v2321_v62 }
 0x52c   : > { %v3292_v58 = vadd.f32 (!%p2240_p8), %v2298_v42, %v1632_v48 }
 0x52d   : > { %v2533_v15 = vpop.f32.mrb[52].mxu0  ;;  %1601 = sbr.rel (%p2240_p8) target bundleno = 1665 (0x681), region = 72  ;;  %v3281_v34 = vadd.f32 (!%p2240_p8), %v2294_v39, %v1630_v61  ;;  %v1701_v56 = vsel (!%p2240_p8), %vm619_vm1, %v3276_v45, 0.0 }
 0x52e   : > { %v1580_v17 = vadd.f32 %v2533_v15, %v1430_v4  ;;  %v1551_v18 = vpop.f32.mrb[53].mxu0  ;;  %1702 = vadd.xlane.f32.xlu0 (!%p2240_p8), %v1701_v56 }
 0x52f   : > { %v1578_v23 = vadd.f32 %v1551_v18, %v1428_v14  ;;  %v2534_v25 = vpop.f32.mrb[54].mxu0  ;;  %v1704_v55 = vsel (!%p2240_p8), %vm619_vm1, %v3281_v34, 0.0  ;;  %v1612_v63 = vld [vmem:[#allocation2 + $0x50] sm:$0xff] (!%p2240_p8)  ;;  %v1707_v14 = vsel (!%p2240_p8), %vm619_vm1, %v3287_v44, 0.0  ;;  %v1710_v18 = vsel (!%p2240_p8), %vm619_vm1, %v3292_v58, 0.0 }
 0x530   : > { %1596 = vst.msk [vmem:[#allocation2 + $0x70] sm:$0xff] %vm619_vm1, %v1580_v17  ;;  %v1581_v7 = vadd.f32 %v2534_v25, %v1431_v52  ;;  %v1554_v19 = vpop.f32.mrb[55].mxu0  ;;  %v1610_v43 = vld [vmem:[#allocation2 + $0x40] sm:$0xff] (!%p2240_p8)  ;;  %1705 = vadd.xlane.f32.xlu1 (!%p2240_p8), %v1704_v55  ;;  %v1635_v52 = vadd.f32 (!%p2240_p8), %v3250_v29, %v1612_v63  ;;  %v2305_v17 = vunpack.c.l.bf16 (!%p2240_p8), %v2319_v53  ;;  %v2306_v25 = vunpack.c.h.bf16 (!%p2240_p8), %v2319_v53 }
 0x531   : > { %1594 = vst.msk [vmem:[#allocation2 + $0x60] sm:$0xff] %vm619_vm1, %v1578_v23  ;;  %v1579_v57 = vadd.f32 %v1554_v19, %v1429_v22  ;;  %v1633_v49 = vadd.f32 (!%p2240_p8), %v3250_v29, %v1610_v43  ;;  %v1613_v4 = vld [vmem:[#allocation2 + $0x58] sm:$0xff] (!%p2240_p8)  ;;  %v2320_v19 = vld [vmem:[%s2839_s28 + $0x30] sm:$0xff] (!%p2240_p8)  }
 0x532   : > { %1597 = vst.msk [vmem:[#allocation2 + $0x78] sm:$0xff] %vm619_vm1, %v1581_v7  ;;  %v1611_v51 = vld [vmem:[#allocation2 + $0x48] sm:$0xff] (!%p2240_p8)  ;;  %v1636_v23 = vadd.f32 (!%p2240_p8), %v3250_v29, %v1613_v4  ;;  %1708 = vadd.xlane.f32.xlu0 (!%p2240_p8), %v1707_v14  ;;  %v3309_v20 = vadd.f32 (!%p2240_p8), %v2305_v17, %v1635_v52  ;;  %v2309_v21 = vunpack.c.l.bf16 (!%p2240_p8), %v2320_v19  ;;  %v2310_v3 = vunpack.c.h.bf16 (!%p2240_p8), %v2320_v19 }
 0x533   : > { %1595 = vst.msk [vmem:[#allocation2 + $0x68] sm:$0xff] %vm619_vm1, %v1579_v57  ;;  %v1634_v38 = vadd.f32 (!%p2240_p8), %v3250_v29, %v1611_v51  ;;  %v3298_v15 = vadd.f32 (!%p2240_p8), %v2301_v54, %v1633_v49 }
 0x534   : > { %1711 = vadd.xlane.f32.xlu1 %v1710_v18  ;;  %v3314_v9 = vadd.f32 %v2306_v25, %v1636_v23  ;;  %v1719_v1 = vsel %vm619_vm1, %v3309_v20, 0.0 }
 0x535   : > { %v3303_v22 = vadd.f32 %v2302_v59, %v1634_v38  ;;  %v1713_v26 = vsel %vm619_vm1, %v3298_v15, 0.0 }
 0x536   : > { %1714 = vadd.xlane.f32.xlu0 %v1713_v26  ;;  %v1722_v16 = vsel %vm619_vm1, %v3314_v9, 0.0 }
 0x537   : > { %v1716_v24 = vsel %vm619_vm1, %v3303_v22, 0.0  ;;  %v1616_v60 = vld [vmem:[#allocation2 + $0x70] sm:$0xff] }
 0x538   : > { %v1614_v7 = vld [vmem:[#allocation2 + $0x60] sm:$0xff]  ;;  %1717 = vadd.xlane.f32.xlu1 %v1716_v24  ;;  %v1639_v12 = vadd.f32 %v3250_v29, %v1616_v60 }
 0x539   : > { %v1637_v37 = vadd.f32 %v3250_v29, %v1614_v7  ;;  %v1617_v0 = vld [vmem:[#allocation2 + $0x78] sm:$0xff] }
 0x53a   : > { %v1615_v57 = vld [vmem:[#allocation2 + $0x68] sm:$0xff]  ;;  %v1640_v11 = vadd.f32 %v3250_v29, %v1617_v0  ;;  %1720 = vadd.xlane.f32.xlu0 %v1719_v1  ;;  %v3330_v39 = vadd.f32 %v2313_v8, %v1639_v12 }
 0x53b   : > { %v1638_v10 = vadd.f32 %v3250_v29, %v1615_v57  ;;  %v3320_v6 = vadd.f32 %v2309_v21, %v1637_v37 }
 0x53c   : > { %1723 = vadd.xlane.f32.xlu1 %v1722_v16  ;;  %v3334_v36 = vadd.f32 %v2314_v30, %v1640_v11  ;;  %v1731_v40 = vsel %vm619_vm1, %v3330_v39, 0.0 }
 0x53d   : > { %v3325_v27 = vadd.f32 %v2310_v3, %v1638_v10  ;;  %v1725_v61 = vsel %vm619_vm1, %v3320_v6, 0.0 }
 0x53e   : > { %1726 = vadd.xlane.f32.xlu0 %v1725_v61  ;;  %v1734_v29 = vsel %vm619_vm1, %v3334_v36, 0.0 }
 0x53f   : > { %v1728_v13 = vsel %vm619_vm1, %v3325_v27, 0.0 }
 0x540   : > { %1729 = vadd.xlane.f32.xlu1 %v1728_v13 }
 0x542   : > { %1732 = vadd.xlane.f32.xlu0 %v1731_v40 }
 0x544   : > { %1735 = vadd.xlane.f32.xlu1 %v1734_v29 }
 0x5b2   : > { %v1697_v28 = vpop.xlane.xlu1 %1696 }
 0x5b3   : > { %v1691_v2 = vpop.xlane.xlu0 %1690  ;;  %v1740_v46 = vmul.f32 0.03125, %v1697_v28 }
 0x5b4   : > { %v1738_v31 = vmul.f32 0.03125, %v1691_v2 }
 0x5b5   : > { %v3344_v47 = vsub.f32 %v3262_v32, %v1740_v46 }
 0x5b6   : > { %v3341_v33 = vsub.f32 %v3258_v5, %v1738_v31  ;;  %v1700_v43 = vpop.xlane.xlu1 %1699 }
 0x5b7   : > { %v1694_v48 = vpop.xlane.xlu0 %1693  ;;  %v1741_v51 = vmul.f32 0.03125, %v1700_v43  ;;  %v1772_v56 = vmul.f32 %v3344_v47, %v3344_v47 }
 0x5b8   : > { %v1739_v42 = vmul.f32 0.03125, %v1694_v48  ;;  %v1770_v50 = vmul.f32 %v3341_v33, %v3341_v33 }
 0x5b9   : > { %v3355_v5 = vsub.f32 %v3270_v41, %v1741_v51  ;;  %v1792_v59 = vsel %vm619_vm1, %v1772_v56, 0.0 }
 0x5ba   : > { %v3351_v49 = vsub.f32 %v3264_v35, %v1739_v42  ;;  %v1786_v54 = vsel %vm619_vm1, %v1770_v50, 0.0 }
 0x5bb   : > { %1787 = vadd.xlane.f32.xlu0 %v1786_v54  ;;  %v1703_v32 = vpop.xlane.xlu0 %1702  ;;  %v1773_v4 = vmul.f32 %v3355_v5, %v3355_v5 }
 0x5bc   : > { %v1742_v55 = vmul.f32 0.03125, %v1703_v32  ;;  %v1771_v63 = vmul.f32 %v3351_v49, %v3351_v49 }
 0x5bd   : > { %v1706_v38 = vpop.xlane.xlu1 %1705  ;;  %v1795_v23 = vsel %vm619_vm1, %v1773_v4, 0.0 }
 0x5be   : > { %v1743_v53 = vmul.f32 0.03125, %v1706_v38  ;;  %v3363_v35 = vsub.f32 %v3276_v45, %v1742_v55  ;;  %v1789_v14 = vsel %vm619_vm1, %v1771_v63, 0.0 }
 0x5bf   : > { %1793 = vadd.xlane.f32.xlu0 %v1792_v59  ;;  %1790 = vadd.xlane.f32.xlu1 %v1789_v14  ;;  %v1709_v52 = vpop.xlane.xlu0 %1708 }
 0x5c0   : > { %v3367_v41 = vsub.f32 %v3281_v34, %v1743_v53  ;;  %v1744_v17 = vmul.f32 0.03125, %v1709_v52  ;;  %v1774_v25 = vmul.f32 %v3363_v35, %v3363_v35 }
 0x5c1   : > { %v1712_v18 = vpop.xlane.xlu1 %1711 }
 0x5c2   : > { %v1745_v7 = vmul.f32 0.03125, %v1712_v18  ;;  %v1775_v45 = vmul.f32 %v3367_v41, %v3367_v41  ;;  %v3375_v19 = vsub.f32 %v3287_v44, %v1744_v17  ;;  %v1798_v34 = vsel %vm619_vm1, %v1774_v25, 0.0 }
 0x5c3   : > { %1796 = vadd.xlane.f32.xlu1 %v1795_v23  ;;  %1799 = vadd.xlane.f32.xlu0 %v1798_v34  ;;  %v1715_v26 = vpop.xlane.xlu0 %1714 }
 0x5c4   : > { %v3379_v57 = vsub.f32 %v3292_v58, %v1745_v7  ;;  %v1746_v37 = vmul.f32 0.03125, %v1715_v26  ;;  %v1801_v24 = vsel %vm619_vm1, %v1775_v45, 0.0  ;;  %v1776_v10 = vmul.f32 %v3375_v19, %v3375_v19 }
 0x5c5   : > { %v1718_v21 = vpop.xlane.xlu1 %1717 }
 0x5c6   : > { %v1747_v3 = vmul.f32 0.03125, %v1718_v21  ;;  %v1777_v44 = vmul.f32 %v3379_v57, %v3379_v57  ;;  %v3387_v60 = vsub.f32 %v3298_v15, %v1746_v37  ;;  %v1804_v58 = vsel %vm619_vm1, %v1776_v10, 0.0 }
 0x5c7   : > { %1802 = vadd.xlane.f32.xlu1 %v1801_v24  ;;  %1805 = vadd.xlane.f32.xlu0 %v1804_v58  ;;  %v1721_v0 = vpop.xlane.xlu0 %1720 }
 0x5c8   : > { %v3391_v62 = vsub.f32 %v3303_v22, %v1747_v3  ;;  %v1748_v1 = vmul.f32 0.03125, %v1721_v0  ;;  %v1807_v8 = vsel %vm619_vm1, %v1777_v44, 0.0  ;;  %v1778_v16 = vmul.f32 %v3387_v60, %v3387_v60 }
 0x5c9   : > { %v1724_v12 = vpop.xlane.xlu1 %1723 }
 0x5ca   : > { %v1749_v11 = vmul.f32 0.03125, %v1724_v12  ;;  %v1779_v15 = vmul.f32 %v3391_v62, %v3391_v62  ;;  %v3399_v30 = vsub.f32 %v3309_v20, %v1748_v1  ;;  %v1810_v22 = vsel %vm619_vm1, %v1778_v16, 0.0  ;;  %v3439_v1 = vld [vmem:[%s3550_s9] ss:$0 sm:$0xff] }
 0x5cb   : > { %1808 = vadd.xlane.f32.xlu1 %v1807_v8  ;;  %1811 = vadd.xlane.f32.xlu0 %v1810_v22  ;;  %v1727_v13 = vpop.xlane.xlu0 %1726  ;;  %v3445_v22 = vld [vmem:[%s3568_s18] ss:$0 sm:$0xff] }
 0x5cc   : > { %v3403_v61 = vsub.f32 %v3314_v9, %v1749_v11  ;;  %v1750_v40 = vmul.f32 0.03125, %v1727_v13  ;;  %v1813_v2 = vsel %vm619_vm1, %v1779_v15, 0.0  ;;  %v1780_v31 = vmul.f32 %v3399_v30, %v3399_v30 }
 0x5cd   : > { %v1730_v29 = vpop.xlane.xlu1 %1729 }
 0x5ce   : > { %v1751_v28 = vmul.f32 0.03125, %v1730_v29  ;;  %v1781_v20 = vmul.f32 %v3403_v61, %v3403_v61  ;;  %v3411_v46 = vsub.f32 %v3320_v6, %v1750_v40  ;;  %v1816_v9 = vsel %vm619_vm1, %v1780_v31, 0.0 }
 0x5cf   : > { %1814 = vadd.xlane.f32.xlu1 %v1813_v2  ;;  %1817 = vadd.xlane.f32.xlu0 %v1816_v9  ;;  %v1733_v42 = vpop.xlane.xlu0 %1732 }
 0x5d0   : > { %v3415_v48 = vsub.f32 %v3325_v27, %v1751_v28  ;;  %v1752_v43 = vmul.f32 0.03125, %v1733_v42  ;;  %v1819_v51 = vsel %vm619_vm1, %v1781_v20, 0.0  ;;  %v1782_v56 = vmul.f32 %v3411_v46, %v3411_v46 }
 0x5d1   : > { %v1736_v50 = vpop.xlane.xlu1 %1735 }
 0x5d2   : > { %v1753_v54 = vmul.f32 0.03125, %v1736_v50  ;;  %v1783_v6 = vmul.f32 %v3415_v48, %v3415_v48  ;;  %v3423_v32 = vsub.f32 %v3330_v39, %v1752_v43  ;;  %v1822_v27 = vsel %vm619_vm1, %v1782_v56, 0.0 }
 0x5d3   : > { %1820 = vadd.xlane.f32.xlu1 %v1819_v51  ;;  %1823 = vadd.xlane.f32.xlu0 %v1822_v27 }
 0x5d4   : > { %v3427_v55 = vsub.f32 %v3334_v36, %v1753_v54  ;;  %v1825_v38 = vsel %vm619_vm1, %v1783_v6, 0.0  ;;  %v1784_v59 = vmul.f32 %v3423_v32, %v3423_v32 }
 0x5d6   : > { %v1785_v63 = vmul.f32 %v3427_v55, %v3427_v55  ;;  %v1828_v53 = vsel %vm619_vm1, %v1784_v59, 0.0 }
 0x5d7   : > { %1826 = vadd.xlane.f32.xlu1 %v1825_v38  ;;  %1829 = vadd.xlane.f32.xlu0 %v1828_v53 }
 0x5d8   : > { %v1831_v39 = vsel %vm619_vm1, %v1785_v63, 0.0 }
 0x5db   : > { %1832 = vadd.xlane.f32.xlu1 %v1831_v39 }
 0x648   : > { %v1788_v4 = vpop.xlane.xlu0 %1787 }
 0x649   : > { %v1834_v36 = vmul.f32 0.03125, %v1788_v4 }
 0x64b   : > { %v1850_v14 = vadd.f32 1e-05, %v1834_v36 }
 0x64c   : > { %v1791_v52 = vpop.xlane.xlu1 %1790  ;;  %v1794_v17 = vpop.xlane.xlu0 %1793 }
 0x64d   : > { %2667 = vrsqrt.f32 %v1850_v14  ;;  %v1835_v18 = vmul.f32 0.03125, %v1791_v52  ;;  %v1836_v23 = vmul.f32 0.03125, %v1794_v17 }
 0x64f   : > { %v1851_v25 = vadd.f32 1e-05, %v1835_v18  ;;  %v1852_v7 = vadd.f32 1e-05, %v1836_v23 }
 0x650   : > { %v1797_v45 = vpop.xlane.xlu1 %1796  ;;  %v1800_v34 = vpop.xlane.xlu0 %1799 }
 0x651   : > { %2669 = vrsqrt.f32 %v1851_v25  ;;  %v1837_v26 = vmul.f32 0.03125, %v1797_v45  ;;  %v1838_v37 = vmul.f32 0.03125, %v1800_v34 }
 0x652   : > { %2671 = vrsqrt.f32 %v1852_v7 }
 0x653   : > { %v1853_v21 = vadd.f32 1e-05, %v1837_v26  ;;  %v1854_v24 = vadd.f32 1e-05, %v1838_v37 }
 0x654   : > { %v1803_v10 = vpop.xlane.xlu1 %1802  ;;  %v1806_v3 = vpop.xlane.xlu0 %1805 }
 0x655   : > { %2673 = vrsqrt.f32 %v1853_v21  ;;  %v1839_v44 = vmul.f32 0.03125, %v1803_v10  ;;  %v1840_v58 = vmul.f32 0.03125, %v1806_v3 }
 0x656   : > { %2675 = vrsqrt.f32 %v1854_v24 }
 0x657   : > { %v2668_v0 = vpop.eup %2667  ;;  %v1855_v12 = vadd.f32 1e-05, %v1839_v44  ;;  %v1856_v8 = vadd.f32 1e-05, %v1840_v58 }
 0x658   : > { %v1882_v16 = vmul.f32 %v2668_v0, %v3341_v33  ;;  %v1809_v11 = vpop.xlane.xlu1 %1808  ;;  %v1812_v15 = vpop.xlane.xlu0 %1811 }
 0x659   : > { %2677 = vrsqrt.f32 %v1855_v12  ;;  %v1841_v13 = vmul.f32 0.03125, %v1809_v11  ;;  %v1842_v40 = vmul.f32 0.03125, %v1812_v15 }
 0x65a   : > { %v1905_v29 = vmul.f32 %v3439_v1, %v1882_v16  ;;  %2679 = vrsqrt.f32 %v1856_v8 }
 0x65b   : > { %v2670_v2 = vpop.eup %2669  ;;  %v1857_v31 = vadd.f32 1e-05, %v1841_v13  ;;  %v1858_v28 = vadd.f32 1e-05, %v1842_v40 }
 0x65c   : > { %v2672_v20 = vpop.eup %2671  ;;  %v1928_v33 = vadd.f32 %v3445_v22, %v1905_v29  ;;  %v1883_v9 = vmul.f32 %v2670_v2, %v3351_v49  ;;  %v1815_v42 = vpop.xlane.xlu1 %1814 }
 0x65d   : > { %v1818_v43 = vpop.xlane.xlu0 %1817  ;;  %v1884_v50 = vmul.f32 %v2672_v20, %v3344_v47  ;;  %2681 = vrsqrt.f32 %v1857_v31  ;;  %v1843_v51 = vmul.f32 0.03125, %v1815_v42 }
 0x65e   : > { %v1844_v56 = vmul.f32 0.03125, %v1818_v43  ;;  %v2267_v54 = vpack.c.bf16 %v1928_v33, %v1928_v33  ;;  %v1906_v6 = vmul.f32 %v3439_v1, %v1883_v9  ;;  %2683 = vrsqrt.f32 %v1858_v28 }
 0x65f   : > { %v2674_v27 = vpop.eup %2673  ;;  %v1907_v38 = vmul.f32 %v3439_v1, %v1884_v50  ;;  %v1859_v59 = vadd.f32 1e-05, %v1843_v51 }
 0x660   : > { %v1860_v63 = vadd.f32 1e-05, %v1844_v56  ;;  %v2676_v53 = vpop.eup %2675  ;;  %2009 = vst.msk [vmem:[%s2873_s10] sm:$0xf] %vm2008_vm4, %v2267_v54  ;;  %v1929_v49 = vadd.f32 %v3445_v22, %v1906_v6  ;;  %v1885_v39 = vmul.f32 %v2674_v27, %v3355_v5  ;;  %v1821_v47 = vpop.xlane.xlu1 %1820 }
 0x661   : > { %v1824_v4 = vpop.xlane.xlu0 %1823  ;;  %v1930_v36 = vadd.f32 %v3445_v22, %v1907_v38  ;;  %v1886_v14 = vmul.f32 %v2676_v53, %v3363_v35  ;;  %2685 = vrsqrt.f32 %v1859_v59  ;;  %v1845_v52 = vmul.f32 0.03125, %v1821_v47 }
 0x662   : > { %v2268_v17 = vpack.c.bf16 %v1929_v49, %v1929_v49  ;;  %v1908_v18 = vmul.f32 %v3439_v1, %v1885_v39  ;;  %2687 = vrsqrt.f32 %v1860_v63  ;;  %v1846_v23 = vmul.f32 0.03125, %v1824_v4 }
 0x663   : > { %v2678_v25 = vpop.eup %2677  ;;  %v2269_v7 = vpack.c.bf16 %v1930_v36, %v1930_v36  ;;  %v1909_v45 = vmul.f32 %v3439_v1, %v1886_v14  ;;  %v1861_v5 = vadd.f32 1e-05, %v1845_v52 }
 0x664   : > { %v2680_v34 = vpop.eup %2679  ;;  %2010 = vst.msk [vmem:[%s2873_s10 + $0x4] sm:$0xf] %vm2008_vm4, %v2268_v17  ;;  %v1931_v26 = vadd.f32 %v3445_v22, %v1908_v18  ;;  %v1887_v35 = vmul.f32 %v2678_v25, %v3367_v41  ;;  %v1862_v37 = vadd.f32 1e-05, %v1846_v23  ;;  %v1827_v21 = vpop.xlane.xlu1 %1826 }
 0x665   : > { %v1830_v24 = vpop.xlane.xlu0 %1829  ;;  %2011 = vst.msk [vmem:[%s2873_s10 + $0x8] sm:$0xf] %vm2008_vm4, %v2269_v7  ;;  %v1932_v10 = vadd.f32 %v3445_v22, %v1909_v45  ;;  %v1888_v3 = vmul.f32 %v2680_v34, %v3375_v19  ;;  %2689 = vrsqrt.f32 %v1861_v5  ;;  %v1847_v44 = vmul.f32 0.03125, %v1827_v21 }
 0x666   : > { %v2270_v58 = vpack.c.bf16 %v1931_v26, %v1931_v26  ;;  %v1910_v0 = vmul.f32 %v3439_v1, %v1887_v35  ;;  %2691 = vrsqrt.f32 %v1862_v37  ;;  %v1848_v12 = vmul.f32 0.03125, %v1830_v24 }
 0x667   : > { %v2682_v8 = vpop.eup %2681  ;;  %v2271_v41 = vpack.c.bf16 %v1932_v10, %v1932_v10  ;;  %v1911_v16 = vmul.f32 %v3439_v1, %v1888_v3  ;;  %v1863_v11 = vadd.f32 1e-05, %v1847_v44 }
 0x668   : > { %v2684_v15 = vpop.eup %2683  ;;  %2012 = vst.msk [vmem:[%s2873_s10 + $0xc] sm:$0xf] %vm2008_vm4, %v2270_v58  ;;  %v1933_v13 = vadd.f32 %v3445_v22, %v1910_v0  ;;  %v1889_v19 = vmul.f32 %v2682_v8, %v3379_v57  ;;  %v1864_v40 = vadd.f32 1e-05, %v1848_v12  ;;  %v1833_v29 = vpop.xlane.xlu1 %1832 }
 0x669   : > { %2013 = vst.msk [vmem:[%s2873_s10 + $0x10] sm:$0xf] %vm2008_vm4, %v2271_v41  ;;  %v1934_v2 = vadd.f32 %v3445_v22, %v1911_v16  ;;  %v1890_v31 = vmul.f32 %v2684_v15, %v3387_v60  ;;  %2693 = vrsqrt.f32 %v1863_v11  ;;  %v1849_v28 = vmul.f32 0.03125, %v1833_v29 }
 0x66a   : > { %v2272_v20 = vpack.c.bf16 %v1933_v13, %v1933_v13  ;;  %v1912_v33 = vmul.f32 %v3439_v1, %v1889_v19  ;;  %2695 = vrsqrt.f32 %v1864_v40 }
 0x66b   : > { %v2686_v9 = vpop.eup %2685  ;;  %v2273_v42 = vpack.c.bf16 %v1934_v2, %v1934_v2  ;;  %v1913_v57 = vmul.f32 %v3439_v1, %v1890_v31  ;;  %v1865_v43 = vadd.f32 1e-05, %v1849_v28 }
 0x66c   : > { %v2688_v50 = vpop.eup %2687  ;;  %2014 = vst.msk [vmem:[%s2873_s10 + $0x14] sm:$0xf] %vm2008_vm4, %v2272_v20  ;;  %v1935_v51 = vadd.f32 %v3445_v22, %v1912_v33  ;;  %v1891_v60 = vmul.f32 %v2686_v9, %v3391_v62 }
 0x66d   : > { %2015 = vst.msk [vmem:[%s2873_s10 + $0x18] sm:$0xf] %vm2008_vm4, %v2273_v42  ;;  %v1936_v56 = vadd.f32 %v3445_v22, %v1913_v57  ;;  %v1892_v54 = vmul.f32 %v2688_v50, %v3399_v30  ;;  %2697 = vrsqrt.f32 %v1865_v43 }
 0x66e   : > { %v2274_v6 = vpack.c.bf16 %v1935_v51, %v1935_v51  ;;  %v1914_v27 = vmul.f32 %v3439_v1, %v1891_v60 }
 0x66f   : > { %v2690_v38 = vpop.eup %2689  ;;  %v2275_v59 = vpack.c.bf16 %v1936_v56, %v1936_v56  ;;  %v1915_v63 = vmul.f32 %v3439_v1, %v1892_v54 }
 0x670   : > { %v2692_v53 = vpop.eup %2691  ;;  %2016 = vst.msk [vmem:[%s2873_s10 + $0x1c] sm:$0xf] %vm2008_vm4, %v2274_v6  ;;  %v1937_v62 = vadd.f32 %v3445_v22, %v1914_v27  ;;  %v1893_v49 = vmul.f32 %v2690_v38, %v3403_v61 }
 0x671   : > { %2017 = vst.msk [vmem:[%s2873_s10 + $0x20] sm:$0xf] %vm2008_vm4, %v2275_v59  ;;  %v1938_v30 = vadd.f32 %v3445_v22, %v1915_v63  ;;  %v1894_v39 = vmul.f32 %v2692_v53, %v3411_v46 }
 0x672   : > { %v2276_v47 = vpack.c.bf16 %v1937_v62, %v1937_v62  ;;  %v1916_v4 = vmul.f32 %v3439_v1, %v1893_v49 }
 0x673   : > { %v2694_v36 = vpop.eup %2693  ;;  %v2277_v14 = vpack.c.bf16 %v1938_v30, %v1938_v30  ;;  %v1917_v52 = vmul.f32 %v3439_v1, %v1894_v39 }
 0x674   : > { %v2696_v17 = vpop.eup %2695  ;;  %2018 = vst.msk [vmem:[%s2873_s10 + $0x24] sm:$0xf] %vm2008_vm4, %v2276_v47  ;;  %v1939_v61 = vadd.f32 %v3445_v22, %v1916_v4  ;;  %v1895_v18 = vmul.f32 %v2694_v36, %v3415_v48 }
 0x675   : > { %2019 = vst.msk [vmem:[%s2873_s10 + $0x28] sm:$0xf] %vm2008_vm4, %v2277_v14  ;;  %v1940_v46 = vadd.f32 %v3445_v22, %v1917_v52  ;;  %v1896_v23 = vmul.f32 %v2696_v17, %v3423_v32 }
 0x676   : > { %v2278_v25 = vpack.c.bf16 %v1939_v61, %v1939_v61  ;;  %v1918_v7 = vmul.f32 %v3439_v1, %v1895_v18 }
 0x677   : > { %v2698_v45 = vpop.eup %2697  ;;  %v2279_v5 = vpack.c.bf16 %v1940_v46, %v1940_v46  ;;  %v1919_v34 = vmul.f32 %v3439_v1, %v1896_v23 }
 0x678   : > { %2020 = vst.msk [vmem:[%s2873_s10 + $0x2c] sm:$0xf] %vm2008_vm4, %v2278_v25  ;;  %v1941_v48 = vadd.f32 %v3445_v22, %v1918_v7  ;;  %v1897_v26 = vmul.f32 %v2698_v45, %v3427_v55 }
 0x679   : > { %2021 = vst.msk [vmem:[%s2873_s10 + $0x30] sm:$0xf] %vm2008_vm4, %v2279_v5  ;;  %v1942_v35 = vadd.f32 %v3445_v22, %v1919_v34 }
 0x67a   : > { %v2280_v32 = vpack.c.bf16 %v1941_v48, %v1941_v48  ;;  %v1920_v37 = vmul.f32 %v3439_v1, %v1897_v26 }
 0x67b   : > { %v2281_v21 = vpack.c.bf16 %v1942_v35, %v1942_v35 }
 0x67c   : > { %2022 = vst.msk [vmem:[%s2873_s10 + $0x34] sm:$0xf] %vm2008_vm4, %v2280_v32  ;;  %v1943_v24 = vadd.f32 %v3445_v22, %v1920_v37 }
 0x67d   : > { %2023 = vst.msk [vmem:[%s2873_s10 + $0x38] sm:$0xf] %vm2008_vm4, %v2281_v21 }
 0x67e   : > { %v2282_v10 = vpack.c.bf16 %v1943_v24, %v1943_v24 }
 0x680   : > { %2024 = vst.msk [vmem:[%s2873_s10 + $0x3c] sm:$0xf] %vm2008_vm4, %v2282_v10 }
 0x681 PF: > { %s3569_s26 = sld [smem:[#allocation5_spill]]  ;;  %s3570_s17 = sld [smem:[#allocation3_spill]] }
 0x682   : > { %s3571_s18 = sld [smem:[#allocation4_spill]]  ;;  %s3572_s19 = sld [smem:[#allocation6_spill]] }
 0x683   : > { %s3573_s20 = sld [smem:[#allocation7_spill]] }
 0x687   : > { %s21_s21 = sadd.s32 1, %s3569_s26  }
 0x688   : > { %p18_p9 = scmp.ge.s32.totalorder %s21_s21, 10  }
 0x68a   :  { %20 = sbr.rel (!%p18_p9) target bundleno = 5 (0x5), region = 123 }

</bundles_post_ra>
